<compile_context>
chip_gen: v5e
topology: v5e:2x2
jax: 0.10.0
libtpu: 0.0.40
codegen_flags: <defaults>
</compile_context>

<pallas_src>
import functools

import numpy as np
import jax
import jax.numpy as jnp
from jax.experimental import pallas as pl
from jax.experimental.pallas import tpu as pltpu

EPS = 1e-5  # nn.GroupNorm default eps


def _round_up(x, m):
    return (x + m - 1) // m * m


# ----------------------------------------------------------------------------
# Fused kernel: meta Linear + 2 x Att for one tile of TM lane nodes.
# Edge tensors are (Ap, TM, C) (actor-major) so node-level terms broadcast via
# a leading unit dim and the aggregation is a reduce over axis 0.
# ----------------------------------------------------------------------------
def _make_kernel(TM, Ap, n_map, n_ctx, dist_th):
    th2 = float(dist_th) * float(dist_th)
    n_agt = n_map
    E = Ap * TM

    def gn(y, g, b):
        # GroupNorm(1 group): per-row stats over channels, two-pass, f32.
        m = jnp.mean(y, axis=-1, keepdims=True)
        yc = y - m
        var = jnp.mean(yc * yc, axis=-1, keepdims=True)
        return yc * jax.lax.rsqrt(var + EPS) * g + b

    def mm(a, b):
        # bf16 operands, f32 accumulation on the MXU.
        return jnp.dot(a.astype(jnp.bfloat16), b, preferred_element_type=jnp.float32)

    def kernel(*refs):
        (feat_ref, meta_ref, nctrb_ref, actrb_ref,
         ad0_ref, ad1_ref, ap0_ref, ap1_ref, va_ref, vc_ref, wmf_ref) = refs[:11]
        wb = refs[11:25]
        out_ref = refs[25]

        va = va_ref[...]          # (18, n_agt) f32 packed small params
        vc = vc_ref[...]          # (14, n_ctx) f32 packed small params
        meta4 = meta_ref[...]     # (TM, 4)  f32 turn/control/intersect
        ncb = nctrb_ref[...]      # (TM, 3)  f32 node x, y, batch id
        acb = actrb_ref[...]      # (Ap, 1, 3) f32 actor x, y, batch id

        # ---- validity mask (dist <= th and same sub-batch), built in 3-D ----
        nx = ncb[:, 0:1][None]            # (1, TM, 1)
        ny = ncb[:, 1:2][None]
        nbt = ncb[:, 2:3][None]
        ax = acb[:, :, 0:1]               # (Ap, 1, 1)
        ay = acb[:, :, 1:2]
        abt = acb[:, :, 2:3]
        dx = nx - ax                      # (Ap, TM, 1)
        dy = ny - ay
        mask3 = jnp.where((dx * dx + dy * dy <= th2) & (nbt == abt),
                          1.0, 0.0).astype(jnp.float32)          # (Ap, TM, 1)

        # ---- self.meta: Linear(n_map+4, n_map, GN) + ReLU --------------------
        # K = n_map part on the MXU + 4-term VPU rank update for the meta cols.
        y = mm(feat_ref[...], wmf_ref[...])
        y = (y + meta4[:, 0:1] * va[2:3] + meta4[:, 1:2] * va[3:4]
             + meta4[:, 2:3] * va[4:5] + meta4[:, 3:4] * va[5:6])
        feat = jnp.maximum(gn(y, va[0:1], va[1:2]), 0.0)          # (TM, n_map)

        ad3s = (ad0_ref, ad1_ref)         # actor_ctrs @ wd0   (Ap, 1, n_ctx)
        ap3s = (ap0_ref, ap1_ref)         # actors    @ wc1a   (Ap, 1, n_agt)
        for blk in range(2):              # two Att blocks, unrolled
            wd1, wq, wc1d, wc1q, wc2, wagt, wl = wb[7 * blk:7 * (blk + 1)]
            c = 7 * blk
            bd0, gd1, bd1, gq_, bq_, wd0_x, wd0_y = (vc[c + i:c + i + 1]
                                                     for i in range(7))
            a = 6 + 6 * blk
            gc1, bc1, gng, gnb, gl_, bl_ = (va[a + i:a + i + 1] for i in range(6))

            res = feat
            # self.dist[0]: nn.Linear(2, n_ctx)+ReLU, separable node/actor terms
            nd = ncb[:, 0:1] * wd0_x + ncb[:, 1:2] * wd0_y + bd0   # (TM, n_ctx)
            d0 = jnp.maximum(nd[None] - ad3s[blk][...], 0.0)       # (Ap,TM,n_ctx)
            # self.dist[2]: Linear(n_ctx, n_ctx, GN) + ReLU  (2-D over edges)
            dfeat = jnp.maximum(
                gn(mm(d0.reshape(E, n_ctx), wd1[...]), gd1, bd1), 0.0)
            # self.query: Linear(n_agt, n_ctx, GN) + ReLU  (node level)
            q = jnp.maximum(gn(mm(feat, wq[...]), gq_, bq_), 0.0)  # (TM, n_ctx)
            # self.ctx[0]: Linear(3*n_ctx, n_agt, GN)+ReLU as split-weight
            # matmuls; query / actor terms stay node / actor level.
            dp = mm(dfeat, wc1d[...]).reshape(Ap, TM, n_agt)
            qp = mm(q, wc1q[...])[None]                            # (1,TM,n_agt)
            c1 = dp + qp + ap3s[blk][...]                          # (Ap,TM,n_agt)
            c1 = jnp.maximum(gn(c1.reshape(E, n_agt), gc1, bc1), 0.0)
            # self.ctx[1]: nn.Linear(n_agt, n_agt, bias=False)
            msg = mm(c1, wc2[...]).reshape(Ap, TM, n_agt)
            # agts = self.agt(agts); agts.index_add_(0, hi, ctx)
            #   -> mask-weighted sum over the actor axis (VPU mul + reduce).
            agg = mm(feat, wagt[...]) + jnp.sum(msg * mask3, axis=0)
            # self.norm (GN) + ReLU; self.linear (GN, act=False); += res; ReLU
            agg = jnp.maximum(gn(agg, gng, gnb), 0.0)
            feat = jnp.maximum(gn(mm(agg, wl[...]), gl_, bl_) + res, 0.0)

        out_ref[...] = feat.astype(out_ref.dtype)

    return kernel


# ----------------------------------------------------------------------------
# Forward wrapper: O(M + A) glue, actor-side hoisting, one tiled pallas_call.
# ----------------------------------------------------------------------------
def a2m_forward(feat, turn, control, intersect, node_ctrs, node_batch,
                actors, actor_ctrs, actor_batch, params, dist_th, *, tile_m=128):
    M, n_map = feat.shape
    A, n_actor = actors.shape
    n_ctx = n_actor

    TM = _round_up(min(int(tile_m), _round_up(M, 8)), 8)
    Mp = _round_up(M, TM)
    Ap = _round_up(A, 8)
    grid = (Mp // TM,)

    f32, bf16 = jnp.float32, jnp.bfloat16

    # ---- node-side tiled inputs ---------------------------------------------
    featp = jnp.pad(feat.astype(bf16), ((0, Mp - M), (0, 0)))
    meta4 = jnp.concatenate(
        [turn, control[:, None], intersect[:, None]], axis=1).astype(f32)
    meta4p = jnp.pad(meta4, ((0, Mp - M), (0, 0)))
    nb = jnp.pad(node_batch.astype(f32), (0, Mp - M), constant_values=-1.0)
    nctrb = jnp.concatenate(
        [jnp.pad(node_ctrs.astype(f32), ((0, Mp - M), (0, 0))), nb[:, None]], axis=1)

    # ---- actor-side constants (hoisted out of the edge dimension) ----------
    actp = jnp.pad(actors.astype(f32), ((0, Ap - A), (0, 0)))
    actrp = jnp.pad(actor_ctrs.astype(f32), ((0, Ap - A), (0, 0)))
    ab = jnp.pad(actor_batch.astype(f32), (0, Ap - A), constant_values=-2.0)
    actrb3 = jnp.concatenate([actrp, ab[:, None]], axis=1)[:, None, :]  # (Ap,1,3)

    att = params["att"]
    ad3 = [(actrp @ p["wd0"].astype(f32))[:, None, :] for p in att]     # (Ap,1,n_ctx)
    ap3 = [(actp @ p["wc1a"].astype(f32))[:, None, :] for p in att]     # (Ap,1,n_map)

    # ---- packed small vectors (two DMAs instead of ~30) ---------------------
    va_rows = [params["gm"], params["bm"], params["wm"][n_map:]]
    for p in att:
        va_rows += [p["gc1"], p["bc1"], p["gn_g"], p["gn_b"], p["gl"], p["bl"]]
    vec_agt = jnp.concatenate(va_rows, axis=0).astype(f32)              # (18, n_map)
    vc_rows = []
    for p in att:
        vc_rows += [p["bd0"], p["gd1"], p["bd1"], p["gq"], p["bq"], p["wd0"]]
    vec_ctx = jnp.concatenate(vc_rows, axis=0).astype(f32)              # (14, n_ctx)

    # ---- bf16 MXU weights ----------------------------------------------------
    wmf = params["wm"][:n_map].astype(bf16)
    wblk = []
    for p in att:
        wblk += [p["wd1"].astype(bf16), p["wq"].astype(bf16),
                 p["wc1d"].astype(bf16), p["wc1q"].astype(bf16),
                 p["wc2"].astype(bf16), p["wagt"].astype(bf16), p["wl"].astype(bf16)]

    args = [featp, meta4p, nctrb, actrb3, ad3[0], ad3[1], ap3[0], ap3[1],
            vec_agt, vec_ctx, wmf] + wblk

    def tiled(c):
        return pl.BlockSpec((TM, c), lambda i: (i, 0))

    def const(x):
        n = x.ndim
        return pl.BlockSpec(x.shape, lambda i, _n=n: (0,) * _n)

    in_specs = [tiled(n_map), tiled(4), tiled(3)] + [const(a) for a in args[3:]]
    out_spec = pl.BlockSpec((TM, n_map), lambda i: (i, 0))

    # Rough cost hint so XLA schedules the surrounding glue sensibly.
    E = Mp * Ap
    c2 = n_map * n_ctx
    flops = 2 * (Mp * n_map * n_map + 2 * (3 * E + 4 * Mp) * c2)
    transc = Mp + 2 * (2 * E + 3 * Mp)
    bytes_acc = sum(int(np.prod(a.shape)) * a.dtype.itemsize for a in args) \
        + Mp * n_map * 4

    kernel = _make_kernel(TM, Ap, n_map, n_ctx, float(dist_th))
    out = pl.pallas_call(
        kernel,
        out_shape=jax.ShapeDtypeStruct((Mp, n_map), f32),
        grid=grid,
        in_specs=in_specs,
        out_specs=out_spec,
        compiler_params=pltpu.CompilerParams(
            dimension_semantics=("parallel",),
            vmem_limit_bytes=48 * 1024 * 1024),
        cost_estimate=pl.CostEstimate(
            flops=int(flops), transcendentals=int(transc),
            bytes_accessed=int(bytes_acc)),
    )(*args)
    return out[:M]


# ----------------------------------------------------------------------------
# Parameter init (PyTorch nn.Linear weights stored pre-transposed (n_in, n_out)).
# ----------------------------------------------------------------------------
def _linear_w(key, n_in, n_out):
    return jax.random.normal(key, (n_in, n_out), jnp.float32) / np.sqrt(n_in)


def _gn_p(key, c):
    k1, k2 = jax.random.split(key)
    return (1.0 + 0.1 * jax.random.normal(k1, (1, c), jnp.float32),
            0.1 * jax.random.normal(k2, (1, c), jnp.float32))


def _init_att(key, n_agt, n_ctx):
    ks = jax.random.split(key, 13)
    p = {}
    p["wd0"] = _linear_w(ks[0], 2, n_ctx)                     # nn.Linear(2, n_ctx)
    p["bd0"] = 0.1 * jax.random.normal(ks[1], (1, n_ctx), jnp.float32)
    p["wd1"] = _linear_w(ks[2], n_ctx, n_ctx)                 # Linear(n_ctx,n_ctx,GN)
    p["gd1"], p["bd1"] = _gn_p(ks[3], n_ctx)
    p["wq"] = _linear_w(ks[4], n_agt, n_ctx)                  # query
    p["gq"], p["bq"] = _gn_p(ks[5], n_ctx)
    wc1 = _linear_w(ks[6], 3 * n_ctx, n_agt)                  # Linear(3*n_ctx,n_agt)
    p["wc1d"] = wc1[:n_ctx]
    p["wc1q"] = wc1[n_ctx:2 * n_ctx]
    p["wc1a"] = wc1[2 * n_ctx:]
    p["gc1"], p["bc1"] = _gn_p(ks[7], n_agt)
    p["wc2"] = _linear_w(ks[8], n_agt, n_agt)                 # nn.Linear(bias=False)
    p["wagt"] = _linear_w(ks[9], n_agt, n_agt)                # self.agt
    p["gn_g"], p["gn_b"] = _gn_p(ks[10], n_agt)               # self.norm
    p["wl"] = _linear_w(ks[11], n_agt, n_agt)                 # self.linear
    p["gl"], p["bl"] = _gn_p(ks[12], n_agt)
    return p


def init_a2m_params(key, n_map, n_actor):
    k1, k2, k3, k4 = jax.random.split(key, 4)
    params = {"wm": _linear_w(k1, n_map + 4, n_map)}          # self.meta
    params["gm"], params["bm"] = _gn_p(k2, n_map)
    params["att"] = [_init_att(k3, n_map, n_actor), _init_att(k4, n_map, n_actor)]
    return params


# ----------------------------------------------------------------------------
# Pure-JAX f32 reference (mirrors the PyTorch forward, dense-mask formulation).
# ----------------------------------------------------------------------------
def a2m_reference(feat, turn, control, intersect, node_ctrs, node_batch,
                  actors, actor_ctrs, actor_batch, params, dist_th):
    def gn(y, g, b):
        m = jnp.mean(y, axis=1, keepdims=True)
        v = jnp.mean((y - m) ** 2, axis=1, keepdims=True)
        return (y - m) / jnp.sqrt(v + EPS) * g + b

    def lin_gn(x, w, g, b, act=True):
        y = gn(x @ w, g, b)
        return jnp.maximum(y, 0.0) if act else y

    M, A = feat.shape[0], actors.shape[0]
    meta = jnp.concatenate([turn, control[:, None], intersect[:, None]], axis=1)
    h = lin_gn(jnp.concatenate([feat, meta], axis=1),
               params["wm"], params["gm"], params["bm"])

    d = node_ctrs[:, None, :] - actor_ctrs[None, :, :]
    dist = jnp.sqrt(jnp.sum(d * d, axis=2))
    valid = ((dist <= dist_th) &
             (node_batch[:, None] == actor_batch[None, :])).astype(jnp.float32)
    dxy = d.reshape(M * A, 2)
    ae = jnp.tile(actors, (M, 1))

    for p in params["att"]:
        res = h
        d0 = jnp.maximum(dxy @ p["wd0"] + p["bd0"], 0.0)
        dfeat = lin_gn(d0, p["wd1"], p["gd1"], p["bd1"])
        q = lin_gn(h, p["wq"], p["gq"], p["bq"])
        qe = jnp.repeat(q, A, axis=0)
        cat = jnp.concatenate([dfeat, qe, ae], axis=1)
        wc1 = jnp.concatenate([p["wc1d"], p["wc1q"], p["wc1a"]], axis=0)
        c1 = lin_gn(cat, wc1, p["gc1"], p["bc1"])
        msg = (c1 @ p["wc2"]).reshape(M, A, -1)
        agg = h @ p["wagt"] + jnp.sum(valid[:, :, None] * msg, axis=1)
        agg = jnp.maximum(gn(agg, p["gn_g"], p["gn_b"]), 0.0)
        lin = lin_gn(agg, p["wl"], p["gl"], p["bl"], act=False)
        h = jnp.maximum(lin + res, 0.0)
    return h


# ----------------------------------------------------------------------------
if __name__ == "__main__":
    key = jax.random.PRNGKey(0)
    n_map, n_actor = 128, 128          # LaneGCN config defaults
    dist_th = 7.0                      # config['actor2map_dist']
    node_counts = (18, 14)             # lane nodes per sample  -> M = 32
    actor_counts = (5, 3)              # actors per sample      -> A = 8
    M, A = sum(node_counts), sum(actor_counts)

    ks = jax.random.split(key, 8)
    feat = jax.random.normal(ks[0], (M, n_map), jnp.float32)
    turn = jax.random.normal(ks[1], (M, 2), jnp.float32)
    control = jax.random.bernoulli(ks[2], 0.5, (M,)).astype(jnp.float32)
    intersect = jax.random.bernoulli(ks[3], 0.5, (M,)).astype(jnp.float32)
    node_ctrs = jax.random.uniform(ks[4], (M, 2), jnp.float32, -5.0, 5.0)
    actors = jax.random.normal(ks[5], (A, n_actor), jnp.float32)
    actor_ctrs = jax.random.uniform(ks[6], (A, 2), jnp.float32, -5.0, 5.0)
    node_batch = jnp.asarray(np.repeat(np.arange(len(node_counts)), node_counts),
                             jnp.int32)
    actor_batch = jnp.asarray(np.repeat(np.arange(len(actor_counts)), actor_counts),
                              jnp.int32)
    params = init_a2m_params(ks[7], n_map, n_actor)

    # dist_th / tile size are static configuration -> bind before jit.
    fwd = jax.jit(functools.partial(a2m_forward, dist_th=dist_th, tile_m=16))
    out = fwd(feat, turn, control, intersect, node_ctrs, node_batch,
              actors, actor_ctrs, actor_batch, params)
    jax.block_until_ready(out)

    assert out.shape == (M, n_map) and out.dtype == jnp.float32
    ref = a2m_reference(feat, turn, control, intersect, node_ctrs, node_batch,
                        actors, actor_ctrs, actor_batch, params, dist_th)
    np.testing.assert_allclose(np.asarray(out), np.asarray(ref),
                               rtol=5e-2, atol=5e-2)
    assert np.all(np.isfinite(np.asarray(out)))
    print("KERNEL_OK")
</pallas_src>

<mosaic_0001>
module attributes {stable_mosaic.version = 11 : i64} {
  func.func @kernel(%arg0: i32, %arg1: memref<16x128xbf16, #tpu.memory_space<vmem>>, %arg2: memref<16x4xf32, #tpu.memory_space<vmem>>, %arg3: memref<16x3xf32, #tpu.memory_space<vmem>>, %arg4: memref<8x1x3xf32, #tpu.memory_space<vmem>>, %arg5: memref<8x1x128xf32, #tpu.memory_space<vmem>>, %arg6: memref<8x1x128xf32, #tpu.memory_space<vmem>>, %arg7: memref<8x1x128xf32, #tpu.memory_space<vmem>>, %arg8: memref<8x1x128xf32, #tpu.memory_space<vmem>>, %arg9: memref<18x128xf32, #tpu.memory_space<vmem>>, %arg10: memref<14x128xf32, #tpu.memory_space<vmem>>, %arg11: memref<128x128xbf16, #tpu.memory_space<vmem>>, %arg12: memref<128x128xbf16, #tpu.memory_space<vmem>>, %arg13: memref<128x128xbf16, #tpu.memory_space<vmem>>, %arg14: memref<128x128xbf16, #tpu.memory_space<vmem>>, %arg15: memref<128x128xbf16, #tpu.memory_space<vmem>>, %arg16: memref<128x128xbf16, #tpu.memory_space<vmem>>, %arg17: memref<128x128xbf16, #tpu.memory_space<vmem>>, %arg18: memref<128x128xbf16, #tpu.memory_space<vmem>>, %arg19: memref<128x128xbf16, #tpu.memory_space<vmem>>, %arg20: memref<128x128xbf16, #tpu.memory_space<vmem>>, %arg21: memref<128x128xbf16, #tpu.memory_space<vmem>>, %arg22: memref<128x128xbf16, #tpu.memory_space<vmem>>, %arg23: memref<128x128xbf16, #tpu.memory_space<vmem>>, %arg24: memref<128x128xbf16, #tpu.memory_space<vmem>>, %arg25: memref<128x128xbf16, #tpu.memory_space<vmem>>, %arg26: memref<16x128xf32, #tpu.memory_space<vmem>>) attributes {dimension_semantics = [#tpu.dimension_semantics<parallel>], iteration_bounds = array<i64: 2>, scalar_prefetch = 0 : i64, scratch_operands = 0 : i64, tpu.core_type = #tpu.core_type<tc>, window_params = [{transform_indices = @transform_0, window_bounds = array<i64: 16, 128>}, {transform_indices = @transform_1, window_bounds = array<i64: 16, 4>}, {transform_indices = @transform_2, window_bounds = array<i64: 16, 3>}, {pipeline_mode = #tpu.pipeline_mode<synchronous>, transform_indices = @transform_3, window_bounds = array<i64: 8, 1, 3>}, {pipeline_mode = #tpu.pipeline_mode<synchronous>, transform_indices = @transform_4, window_bounds = array<i64: 8, 1, 128>}, {pipeline_mode = #tpu.pipeline_mode<synchronous>, transform_indices = @transform_5, window_bounds = array<i64: 8, 1, 128>}, {pipeline_mode = #tpu.pipeline_mode<synchronous>, transform_indices = @transform_6, window_bounds = array<i64: 8, 1, 128>}, {pipeline_mode = #tpu.pipeline_mode<synchronous>, transform_indices = @transform_7, window_bounds = array<i64: 8, 1, 128>}, {pipeline_mode = #tpu.pipeline_mode<synchronous>, transform_indices = @transform_8, window_bounds = array<i64: 18, 128>}, {pipeline_mode = #tpu.pipeline_mode<synchronous>, transform_indices = @transform_9, window_bounds = array<i64: 14, 128>}, {pipeline_mode = #tpu.pipeline_mode<synchronous>, transform_indices = @transform_10, window_bounds = array<i64: 128, 128>}, {pipeline_mode = #tpu.pipeline_mode<synchronous>, transform_indices = @transform_11, window_bounds = array<i64: 128, 128>}, {pipeline_mode = #tpu.pipeline_mode<synchronous>, transform_indices = @transform_12, window_bounds = array<i64: 128, 128>}, {pipeline_mode = #tpu.pipeline_mode<synchronous>, transform_indices = @transform_13, window_bounds = array<i64: 128, 128>}, {pipeline_mode = #tpu.pipeline_mode<synchronous>, transform_indices = @transform_14, window_bounds = array<i64: 128, 128>}, {pipeline_mode = #tpu.pipeline_mode<synchronous>, transform_indices = @transform_15, window_bounds = array<i64: 128, 128>}, {pipeline_mode = #tpu.pipeline_mode<synchronous>, transform_indices = @transform_16, window_bounds = array<i64: 128, 128>}, {pipeline_mode = #tpu.pipeline_mode<synchronous>, transform_indices = @transform_17, window_bounds = array<i64: 128, 128>}, {pipeline_mode = #tpu.pipeline_mode<synchronous>, transform_indices = @transform_18, window_bounds = array<i64: 128, 128>}, {pipeline_mode = #tpu.pipeline_mode<synchronous>, transform_indices = @transform_19, window_bounds = array<i64: 128, 128>}, {pipeline_mode = #tpu.pipeline_mode<synchronous>, transform_indices = @transform_20, window_bounds = array<i64: 128, 128>}, {pipeline_mode = #tpu.pipeline_mode<synchronous>, transform_indices = @transform_21, window_bounds = array<i64: 128, 128>}, {pipeline_mode = #tpu.pipeline_mode<synchronous>, transform_indices = @transform_22, window_bounds = array<i64: 128, 128>}, {pipeline_mode = #tpu.pipeline_mode<synchronous>, transform_indices = @transform_23, window_bounds = array<i64: 128, 128>}, {pipeline_mode = #tpu.pipeline_mode<synchronous>, transform_indices = @transform_24, window_bounds = array<i64: 128, 128>}, {transform_indices = @transform_25, window_bounds = array<i64: 16, 128>}]} {
    %c0 = arith.constant 0 : index
    %c0_0 = arith.constant 0 : index
    %0 = vector.load %arg9[%c0, %c0_0] : memref<18x128xf32, #tpu.memory_space<vmem>>, vector<18x128xf32>
    %c0_1 = arith.constant 0 : index
    %c0_2 = arith.constant 0 : index
    %1 = vector.load %arg10[%c0_1, %c0_2] : memref<14x128xf32, #tpu.memory_space<vmem>>, vector<14x128xf32>
    %c0_3 = arith.constant 0 : index
    %c0_4 = arith.constant 0 : index
    %2 = vector.load %arg2[%c0_3, %c0_4] : memref<16x4xf32, #tpu.memory_space<vmem>>, vector<16x4xf32>
    %c0_5 = arith.constant 0 : index
    %c0_6 = arith.constant 0 : index
    %3 = vector.load %arg3[%c0_5, %c0_6] : memref<16x3xf32, #tpu.memory_space<vmem>>, vector<16x3xf32>
    %c0_7 = arith.constant 0 : index
    %c0_8 = arith.constant 0 : index
    %c0_9 = arith.constant 0 : index
    %4 = vector.load %arg4[%c0_7, %c0_8, %c0_9] : memref<8x1x3xf32, #tpu.memory_space<vmem>>, vector<8x1x3xf32>
    %5 = vector.extract_strided_slice %3 {offsets = [0, 0], sizes = [16, 1], strides = [1, 1]} : vector<16x3xf32> to vector<16x1xf32>
    %6 = vector.shape_cast %5 : vector<16x1xf32> to vector<1x16x1xf32>
    %7 = vector.extract_strided_slice %3 {offsets = [0, 1], sizes = [16, 1], strides = [1, 1]} : vector<16x3xf32> to vector<16x1xf32>
    %8 = vector.shape_cast %7 : vector<16x1xf32> to vector<1x16x1xf32>
    %9 = vector.extract_strided_slice %3 {offsets = [0, 2], sizes = [16, 1], strides = [1, 1]} : vector<16x3xf32> to vector<16x1xf32>
    %10 = vector.shape_cast %9 : vector<16x1xf32> to vector<1x16x1xf32>
    %11 = vector.extract_strided_slice %4 {offsets = [0, 0, 0], sizes = [8, 1, 1], strides = [1, 1, 1]} : vector<8x1x3xf32> to vector<8x1x1xf32>
    %12 = vector.extract_strided_slice %4 {offsets = [0, 0, 1], sizes = [8, 1, 1], strides = [1, 1, 1]} : vector<8x1x3xf32> to vector<8x1x1xf32>
    %13 = vector.extract_strided_slice %4 {offsets = [0, 0, 2], sizes = [8, 1, 1], strides = [1, 1, 1]} : vector<8x1x3xf32> to vector<8x1x1xf32>
    %14 = vector.broadcast %6 : vector<1x16x1xf32> to vector<8x16x1xf32>
    %15 = vector.broadcast %11 : vector<8x1x1xf32> to vector<8x16x1xf32>
    %16 = arith.subf %14, %15 : vector<8x16x1xf32>
    %17 = vector.broadcast %8 : vector<1x16x1xf32> to vector<8x16x1xf32>
    %18 = vector.broadcast %12 : vector<8x1x1xf32> to vector<8x16x1xf32>
    %19 = arith.subf %17, %18 : vector<8x16x1xf32>
    %20 = arith.mulf %16, %16 : vector<8x16x1xf32>
    %21 = arith.mulf %19, %19 : vector<8x16x1xf32>
    %22 = arith.addf %20, %21 : vector<8x16x1xf32>
    %cst = arith.constant 4.900000e+01 : f32
    %23 = vector.broadcast %cst : f32 to vector<8x16x1xf32>
    %24 = arith.cmpf ole, %22, %23 : vector<8x16x1xf32>
    %25 = vector.broadcast %10 : vector<1x16x1xf32> to vector<8x16x1xf32>
    %26 = vector.broadcast %13 : vector<8x1x1xf32> to vector<8x16x1xf32>
    %27 = arith.cmpf oeq, %25, %26 : vector<8x16x1xf32>
    %28 = arith.andi %24, %27 : vector<8x16x1xi1>
    %cst_10 = arith.constant 1.000000e+00 : f32
    %cst_11 = arith.constant 0.000000e+00 : f32
    %29 = vector.broadcast %cst_10 : f32 to vector<8x16x1xf32>
    %30 = vector.broadcast %cst_11 : f32 to vector<8x16x1xf32>
    %31 = arith.select %28, %29, %30 : vector<8x16x1xi1>, vector<8x16x1xf32>
    %c0_12 = arith.constant 0 : index
    %c0_13 = arith.constant 0 : index
    %32 = vector.load %arg1[%c0_12, %c0_13] : memref<16x128xbf16, #tpu.memory_space<vmem>>, vector<16x128xbf16>
    %c0_14 = arith.constant 0 : index
    %c0_15 = arith.constant 0 : index
    %33 = vector.load %arg11[%c0_14, %c0_15] : memref<128x128xbf16, #tpu.memory_space<vmem>>, vector<128x128xbf16>
    %cst_16 = arith.constant dense<0.000000e+00> : vector<16x128xf32>
    %34 = tpu.matmul %32, %33, %cst_16 {dimension_numbers = #tpu.dot_dimension_numbers<[1], [0], [0], [1], [0, 0, 1, 1], [], []>} : vector<16x128xbf16>, vector<128x128xbf16>, vector<16x128xf32> -> vector<16x128xf32>
    %35 = vector.extract_strided_slice %2 {offsets = [0, 0], sizes = [16, 1], strides = [1, 1]} : vector<16x4xf32> to vector<16x1xf32>
    %36 = vector.extract_strided_slice %0 {offsets = [2, 0], sizes = [1, 128], strides = [1, 1]} : vector<18x128xf32> to vector<1x128xf32>
    %37 = vector.broadcast %35 : vector<16x1xf32> to vector<16x128xf32>
    %38 = vector.broadcast %36 : vector<1x128xf32> to vector<16x128xf32>
    %39 = arith.mulf %37, %38 : vector<16x128xf32>
    %40 = arith.addf %34, %39 : vector<16x128xf32>
    %41 = vector.extract_strided_slice %2 {offsets = [0, 1], sizes = [16, 1], strides = [1, 1]} : vector<16x4xf32> to vector<16x1xf32>
    %42 = vector.extract_strided_slice %0 {offsets = [3, 0], sizes = [1, 128], strides = [1, 1]} : vector<18x128xf32> to vector<1x128xf32>
    %43 = vector.broadcast %41 : vector<16x1xf32> to vector<16x128xf32>
    %44 = vector.broadcast %42 : vector<1x128xf32> to vector<16x128xf32>
    %45 = arith.mulf %43, %44 : vector<16x128xf32>
    %46 = arith.addf %40, %45 : vector<16x128xf32>
    %47 = vector.extract_strided_slice %2 {offsets = [0, 2], sizes = [16, 1], strides = [1, 1]} : vector<16x4xf32> to vector<16x1xf32>
    %48 = vector.extract_strided_slice %0 {offsets = [4, 0], sizes = [1, 128], strides = [1, 1]} : vector<18x128xf32> to vector<1x128xf32>
    %49 = vector.broadcast %47 : vector<16x1xf32> to vector<16x128xf32>
    %50 = vector.broadcast %48 : vector<1x128xf32> to vector<16x128xf32>
    %51 = arith.mulf %49, %50 : vector<16x128xf32>
    %52 = arith.addf %46, %51 : vector<16x128xf32>
    %53 = vector.extract_strided_slice %2 {offsets = [0, 3], sizes = [16, 1], strides = [1, 1]} : vector<16x4xf32> to vector<16x1xf32>
    %54 = vector.extract_strided_slice %0 {offsets = [5, 0], sizes = [1, 128], strides = [1, 1]} : vector<18x128xf32> to vector<1x128xf32>
    %55 = vector.broadcast %53 : vector<16x1xf32> to vector<16x128xf32>
    %56 = vector.broadcast %54 : vector<1x128xf32> to vector<16x128xf32>
    %57 = arith.mulf %55, %56 : vector<16x128xf32>
    %58 = arith.addf %52, %57 : vector<16x128xf32>
    %59 = vector.extract_strided_slice %0 {offsets = [0, 0], sizes = [1, 128], strides = [1, 1]} : vector<18x128xf32> to vector<1x128xf32>
    %60 = vector.extract_strided_slice %0 {offsets = [1, 0], sizes = [1, 128], strides = [1, 1]} : vector<18x128xf32> to vector<1x128xf32>
    %cst_17 = arith.constant dense<0.000000e+00> : vector<16xf32>
    %61 = vector.multi_reduction <add>, %58, %cst_17 [1] : vector<16x128xf32> to vector<16xf32>
    %62 = vector.shape_cast %61 : vector<16xf32> to vector<16x1xf32>
    %cst_18 = arith.constant 1.280000e+02 : f32
    %63 = vector.broadcast %cst_18 : f32 to vector<16x1xf32>
    %64 = arith.divf %62, %63 : vector<16x1xf32>
    %65 = vector.broadcast %64 : vector<16x1xf32> to vector<16x128xf32>
    %66 = arith.subf %58, %65 : vector<16x128xf32>
    %67 = arith.mulf %66, %66 : vector<16x128xf32>
    %cst_19 = arith.constant dense<0.000000e+00> : vector<16xf32>
    %68 = vector.multi_reduction <add>, %67, %cst_19 [1] : vector<16x128xf32> to vector<16xf32>
    %69 = vector.shape_cast %68 : vector<16xf32> to vector<16x1xf32>
    %cst_20 = arith.constant 1.280000e+02 : f32
    %70 = vector.broadcast %cst_20 : f32 to vector<16x1xf32>
    %71 = arith.divf %69, %70 : vector<16x1xf32>
    %cst_21 = arith.constant 9.99999974E-6 : f32
    %72 = vector.broadcast %cst_21 : f32 to vector<16x1xf32>
    %73 = arith.addf %71, %72 : vector<16x1xf32>
    %74 = math.rsqrt %73 : vector<16x1xf32>
    %75 = vector.broadcast %74 : vector<16x1xf32> to vector<16x128xf32>
    %76 = arith.mulf %66, %75 : vector<16x128xf32>
    %77 = vector.broadcast %59 : vector<1x128xf32> to vector<16x128xf32>
    %78 = arith.mulf %76, %77 : vector<16x128xf32>
    %79 = vector.broadcast %60 : vector<1x128xf32> to vector<16x128xf32>
    %80 = arith.addf %78, %79 : vector<16x128xf32>
    %cst_22 = arith.constant 0.000000e+00 : f32
    %81 = vector.broadcast %cst_22 : f32 to vector<16x128xf32>
    %82 = arith.maximumf %80, %81 : vector<16x128xf32>
    %83 = vector.extract_strided_slice %1 {offsets = [0, 0], sizes = [1, 128], strides = [1, 1]} : vector<14x128xf32> to vector<1x128xf32>
    %84 = vector.extract_strided_slice %1 {offsets = [1, 0], sizes = [1, 128], strides = [1, 1]} : vector<14x128xf32> to vector<1x128xf32>
    %85 = vector.extract_strided_slice %1 {offsets = [2, 0], sizes = [1, 128], strides = [1, 1]} : vector<14x128xf32> to vector<1x128xf32>
    %86 = vector.extract_strided_slice %1 {offsets = [3, 0], sizes = [1, 128], strides = [1, 1]} : vector<14x128xf32> to vector<1x128xf32>
    %87 = vector.extract_strided_slice %1 {offsets = [4, 0], sizes = [1, 128], strides = [1, 1]} : vector<14x128xf32> to vector<1x128xf32>
    %88 = vector.extract_strided_slice %1 {offsets = [5, 0], sizes = [1, 128], strides = [1, 1]} : vector<14x128xf32> to vector<1x128xf32>
    %89 = vector.extract_strided_slice %1 {offsets = [6, 0], sizes = [1, 128], strides = [1, 1]} : vector<14x128xf32> to vector<1x128xf32>
    %90 = vector.extract_strided_slice %0 {offsets = [6, 0], sizes = [1, 128], strides = [1, 1]} : vector<18x128xf32> to vector<1x128xf32>
    %91 = vector.extract_strided_slice %0 {offsets = [7, 0], sizes = [1, 128], strides = [1, 1]} : vector<18x128xf32> to vector<1x128xf32>
    %92 = vector.extract_strided_slice %0 {offsets = [8, 0], sizes = [1, 128], strides = [1, 1]} : vector<18x128xf32> to vector<1x128xf32>
    %93 = vector.extract_strided_slice %0 {offsets = [9, 0], sizes = [1, 128], strides = [1, 1]} : vector<18x128xf32> to vector<1x128xf32>
    %94 = vector.extract_strided_slice %0 {offsets = [10, 0], sizes = [1, 128], strides = [1, 1]} : vector<18x128xf32> to vector<1x128xf32>
    %95 = vector.extract_strided_slice %0 {offsets = [11, 0], sizes = [1, 128], strides = [1, 1]} : vector<18x128xf32> to vector<1x128xf32>
    %96 = vector.extract_strided_slice %3 {offsets = [0, 0], sizes = [16, 1], strides = [1, 1]} : vector<16x3xf32> to vector<16x1xf32>
    %97 = vector.broadcast %96 : vector<16x1xf32> to vector<16x128xf32>
    %98 = vector.broadcast %88 : vector<1x128xf32> to vector<16x128xf32>
    %99 = arith.mulf %97, %98 : vector<16x128xf32>
    %100 = vector.extract_strided_slice %3 {offsets = [0, 1], sizes = [16, 1], strides = [1, 1]} : vector<16x3xf32> to vector<16x1xf32>
    %101 = vector.broadcast %100 : vector<16x1xf32> to vector<16x128xf32>
    %102 = vector.broadcast %89 : vector<1x128xf32> to vector<16x128xf32>
    %103 = arith.mulf %101, %102 : vector<16x128xf32>
    %104 = arith.addf %99, %103 : vector<16x128xf32>
    %105 = vector.broadcast %83 : vector<1x128xf32> to vector<16x128xf32>
    %106 = arith.addf %104, %105 : vector<16x128xf32>
    %107 = vector.shape_cast %106 : vector<16x128xf32> to vector<1x16x128xf32>
    %c0_23 = arith.constant 0 : index
    %c0_24 = arith.constant 0 : index
    %c0_25 = arith.constant 0 : index
    %108 = vector.load %arg5[%c0_23, %c0_24, %c0_25] : memref<8x1x128xf32, #tpu.memory_space<vmem>>, vector<8x1x128xf32>
    %109 = vector.broadcast %107 : vector<1x16x128xf32> to vector<8x16x128xf32>
    %110 = vector.broadcast %108 : vector<8x1x128xf32> to vector<8x16x128xf32>
    %111 = arith.subf %109, %110 : vector<8x16x128xf32>
    %cst_26 = arith.constant 0.000000e+00 : f32
    %112 = vector.broadcast %cst_26 : f32 to vector<8x16x128xf32>
    %113 = arith.maximumf %111, %112 : vector<8x16x128xf32>
    %114 = vector.shape_cast %113 : vector<8x16x128xf32> to vector<128x128xf32>
    %c0_27 = arith.constant 0 : index
    %c0_28 = arith.constant 0 : index
    %115 = vector.load %arg12[%c0_27, %c0_28] : memref<128x128xbf16, #tpu.memory_space<vmem>>, vector<128x128xbf16>
    %116 = arith.truncf %114 : vector<128x128xf32> to vector<128x128xbf16>
    %cst_29 = arith.constant dense<0.000000e+00> : vector<128x128xf32>
    %117 = tpu.matmul %116, %115, %cst_29 {dimension_numbers = #tpu.dot_dimension_numbers<[1], [0], [0], [1], [0, 0, 1, 1], [], []>} : vector<128x128xbf16>, vector<128x128xbf16>, vector<128x128xf32> -> vector<128x128xf32>
    %cst_30 = arith.constant dense<0.000000e+00> : vector<128xf32>
    %118 = vector.multi_reduction <add>, %117, %cst_30 [1] : vector<128x128xf32> to vector<128xf32>
    %119 = vector.shape_cast %118 : vector<128xf32> to vector<128x1xf32>
    %cst_31 = arith.constant 1.280000e+02 : f32
    %120 = vector.broadcast %cst_31 : f32 to vector<128x1xf32>
    %121 = arith.divf %119, %120 : vector<128x1xf32>
    %122 = vector.broadcast %121 : vector<128x1xf32> to vector<128x128xf32>
    %123 = arith.subf %117, %122 : vector<128x128xf32>
    %124 = arith.mulf %123, %123 : vector<128x128xf32>
    %cst_32 = arith.constant dense<0.000000e+00> : vector<128xf32>
    %125 = vector.multi_reduction <add>, %124, %cst_32 [1] : vector<128x128xf32> to vector<128xf32>
    %126 = vector.shape_cast %125 : vector<128xf32> to vector<128x1xf32>
    %cst_33 = arith.constant 1.280000e+02 : f32
    %127 = vector.broadcast %cst_33 : f32 to vector<128x1xf32>
    %128 = arith.divf %126, %127 : vector<128x1xf32>
    %cst_34 = arith.constant 9.99999974E-6 : f32
    %129 = vector.broadcast %cst_34 : f32 to vector<128x1xf32>
    %130 = arith.addf %128, %129 : vector<128x1xf32>
    %131 = math.rsqrt %130 : vector<128x1xf32>
    %132 = vector.broadcast %131 : vector<128x1xf32> to vector<128x128xf32>
    %133 = arith.mulf %123, %132 : vector<128x128xf32>
    %134 = vector.broadcast %84 : vector<1x128xf32> to vector<128x128xf32>
    %135 = arith.mulf %133, %134 : vector<128x128xf32>
    %136 = vector.broadcast %85 : vector<1x128xf32> to vector<128x128xf32>
    %137 = arith.addf %135, %136 : vector<128x128xf32>
    %cst_35 = arith.constant 0.000000e+00 : f32
    %138 = vector.broadcast %cst_35 : f32 to vector<128x128xf32>
    %139 = arith.maximumf %137, %138 : vector<128x128xf32>
    %c0_36 = arith.constant 0 : index
    %c0_37 = arith.constant 0 : index
    %140 = vector.load %arg13[%c0_36, %c0_37] : memref<128x128xbf16, #tpu.memory_space<vmem>>, vector<128x128xbf16>
    %141 = arith.truncf %82 : vector<16x128xf32> to vector<16x128xbf16>
    %cst_38 = arith.constant dense<0.000000e+00> : vector<16x128xf32>
    %142 = tpu.matmul %141, %140, %cst_38 {dimension_numbers = #tpu.dot_dimension_numbers<[1], [0], [0], [1], [0, 0, 1, 1], [], []>} : vector<16x128xbf16>, vector<128x128xbf16>, vector<16x128xf32> -> vector<16x128xf32>
    %cst_39 = arith.constant dense<0.000000e+00> : vector<16xf32>
    %143 = vector.multi_reduction <add>, %142, %cst_39 [1] : vector<16x128xf32> to vector<16xf32>
    %144 = vector.shape_cast %143 : vector<16xf32> to vector<16x1xf32>
    %cst_40 = arith.constant 1.280000e+02 : f32
    %145 = vector.broadcast %cst_40 : f32 to vector<16x1xf32>
    %146 = arith.divf %144, %145 : vector<16x1xf32>
    %147 = vector.broadcast %146 : vector<16x1xf32> to vector<16x128xf32>
    %148 = arith.subf %142, %147 : vector<16x128xf32>
    %149 = arith.mulf %148, %148 : vector<16x128xf32>
    %cst_41 = arith.constant dense<0.000000e+00> : vector<16xf32>
    %150 = vector.multi_reduction <add>, %149, %cst_41 [1] : vector<16x128xf32> to vector<16xf32>
    %151 = vector.shape_cast %150 : vector<16xf32> to vector<16x1xf32>
    %cst_42 = arith.constant 1.280000e+02 : f32
    %152 = vector.broadcast %cst_42 : f32 to vector<16x1xf32>
    %153 = arith.divf %151, %152 : vector<16x1xf32>
    %cst_43 = arith.constant 9.99999974E-6 : f32
    %154 = vector.broadcast %cst_43 : f32 to vector<16x1xf32>
    %155 = arith.addf %153, %154 : vector<16x1xf32>
    %156 = math.rsqrt %155 : vector<16x1xf32>
    %157 = vector.broadcast %156 : vector<16x1xf32> to vector<16x128xf32>
    %158 = arith.mulf %148, %157 : vector<16x128xf32>
    %159 = vector.broadcast %86 : vector<1x128xf32> to vector<16x128xf32>
    %160 = arith.mulf %158, %159 : vector<16x128xf32>
    %161 = vector.broadcast %87 : vector<1x128xf32> to vector<16x128xf32>
    %162 = arith.addf %160, %161 : vector<16x128xf32>
    %cst_44 = arith.constant 0.000000e+00 : f32
    %163 = vector.broadcast %cst_44 : f32 to vector<16x128xf32>
    %164 = arith.maximumf %162, %163 : vector<16x128xf32>
    %c0_45 = arith.constant 0 : index
    %c0_46 = arith.constant 0 : index
    %165 = vector.load %arg14[%c0_45, %c0_46] : memref<128x128xbf16, #tpu.memory_space<vmem>>, vector<128x128xbf16>
    %166 = arith.truncf %139 : vector<128x128xf32> to vector<128x128xbf16>
    %cst_47 = arith.constant dense<0.000000e+00> : vector<128x128xf32>
    %167 = tpu.matmul %166, %165, %cst_47 {dimension_numbers = #tpu.dot_dimension_numbers<[1], [0], [0], [1], [0, 0, 1, 1], [], []>} : vector<128x128xbf16>, vector<128x128xbf16>, vector<128x128xf32> -> vector<128x128xf32>
    %168 = vector.shape_cast %167 : vector<128x128xf32> to vector<8x16x128xf32>
    %c0_48 = arith.constant 0 : index
    %c0_49 = arith.constant 0 : index
    %169 = vector.load %arg15[%c0_48, %c0_49] : memref<128x128xbf16, #tpu.memory_space<vmem>>, vector<128x128xbf16>
    %170 = arith.truncf %164 : vector<16x128xf32> to vector<16x128xbf16>
    %cst_50 = arith.constant dense<0.000000e+00> : vector<16x128xf32>
    %171 = tpu.matmul %170, %169, %cst_50 {dimension_numbers = #tpu.dot_dimension_numbers<[1], [0], [0], [1], [0, 0, 1, 1], [], []>} : vector<16x128xbf16>, vector<128x128xbf16>, vector<16x128xf32> -> vector<16x128xf32>
    %172 = vector.shape_cast %171 : vector<16x128xf32> to vector<1x16x128xf32>
    %173 = vector.broadcast %172 : vector<1x16x128xf32> to vector<8x16x128xf32>
    %174 = arith.addf %168, %173 : vector<8x16x128xf32>
    %c0_51 = arith.constant 0 : index
    %c0_52 = arith.constant 0 : index
    %c0_53 = arith.constant 0 : index
    %175 = vector.load %arg7[%c0_51, %c0_52, %c0_53] : memref<8x1x128xf32, #tpu.memory_space<vmem>>, vector<8x1x128xf32>
    %176 = vector.broadcast %175 : vector<8x1x128xf32> to vector<8x16x128xf32>
    %177 = arith.addf %174, %176 : vector<8x16x128xf32>
    %178 = vector.shape_cast %177 : vector<8x16x128xf32> to vector<128x128xf32>
    %cst_54 = arith.constant dense<0.000000e+00> : vector<128xf32>
    %179 = vector.multi_reduction <add>, %178, %cst_54 [1] : vector<128x128xf32> to vector<128xf32>
    %180 = vector.shape_cast %179 : vector<128xf32> to vector<128x1xf32>
    %cst_55 = arith.constant 1.280000e+02 : f32
    %181 = vector.broadcast %cst_55 : f32 to vector<128x1xf32>
    %182 = arith.divf %180, %181 : vector<128x1xf32>
    %183 = vector.broadcast %182 : vector<128x1xf32> to vector<128x128xf32>
    %184 = arith.subf %178, %183 : vector<128x128xf32>
    %185 = arith.mulf %184, %184 : vector<128x128xf32>
    %cst_56 = arith.constant dense<0.000000e+00> : vector<128xf32>
    %186 = vector.multi_reduction <add>, %185, %cst_56 [1] : vector<128x128xf32> to vector<128xf32>
    %187 = vector.shape_cast %186 : vector<128xf32> to vector<128x1xf32>
    %cst_57 = arith.constant 1.280000e+02 : f32
    %188 = vector.broadcast %cst_57 : f32 to vector<128x1xf32>
    %189 = arith.divf %187, %188 : vector<128x1xf32>
    %cst_58 = arith.constant 9.99999974E-6 : f32
    %190 = vector.broadcast %cst_58 : f32 to vector<128x1xf32>
    %191 = arith.addf %189, %190 : vector<128x1xf32>
    %192 = math.rsqrt %191 : vector<128x1xf32>
    %193 = vector.broadcast %192 : vector<128x1xf32> to vector<128x128xf32>
    %194 = arith.mulf %184, %193 : vector<128x128xf32>
    %195 = vector.broadcast %90 : vector<1x128xf32> to vector<128x128xf32>
    %196 = arith.mulf %194, %195 : vector<128x128xf32>
    %197 = vector.broadcast %91 : vector<1x128xf32> to vector<128x128xf32>
    %198 = arith.addf %196, %197 : vector<128x128xf32>
    %cst_59 = arith.constant 0.000000e+00 : f32
    %199 = vector.broadcast %cst_59 : f32 to vector<128x128xf32>
    %200 = arith.maximumf %198, %199 : vector<128x128xf32>
    %c0_60 = arith.constant 0 : index
    %c0_61 = arith.constant 0 : index
    %201 = vector.load %arg16[%c0_60, %c0_61] : memref<128x128xbf16, #tpu.memory_space<vmem>>, vector<128x128xbf16>
    %202 = arith.truncf %200 : vector<128x128xf32> to vector<128x128xbf16>
    %cst_62 = arith.constant dense<0.000000e+00> : vector<128x128xf32>
    %203 = tpu.matmul %202, %201, %cst_62 {dimension_numbers = #tpu.dot_dimension_numbers<[1], [0], [0], [1], [0, 0, 1, 1], [], []>} : vector<128x128xbf16>, vector<128x128xbf16>, vector<128x128xf32> -> vector<128x128xf32>
    %204 = vector.shape_cast %203 : vector<128x128xf32> to vector<8x16x128xf32>
    %c0_63 = arith.constant 0 : index
    %c0_64 = arith.constant 0 : index
    %205 = vector.load %arg17[%c0_63, %c0_64] : memref<128x128xbf16, #tpu.memory_space<vmem>>, vector<128x128xbf16>
    %206 = arith.truncf %82 : vector<16x128xf32> to vector<16x128xbf16>
    %cst_65 = arith.constant dense<0.000000e+00> : vector<16x128xf32>
    %207 = tpu.matmul %206, %205, %cst_65 {dimension_numbers = #tpu.dot_dimension_numbers<[1], [0], [0], [1], [0, 0, 1, 1], [], []>} : vector<16x128xbf16>, vector<128x128xbf16>, vector<16x128xf32> -> vector<16x128xf32>
    %208 = vector.broadcast %31 : vector<8x16x1xf32> to vector<8x16x128xf32>
    %209 = arith.mulf %204, %208 : vector<8x16x128xf32>
    %cst_66 = arith.constant dense<0.000000e+00> : vector<16x128xf32>
    %210 = vector.multi_reduction <add>, %209, %cst_66 [0] : vector<8x16x128xf32> to vector<16x128xf32>
    %211 = arith.addf %207, %210 : vector<16x128xf32>
    %cst_67 = arith.constant dense<0.000000e+00> : vector<16xf32>
    %212 = vector.multi_reduction <add>, %211, %cst_67 [1] : vector<16x128xf32> to vector<16xf32>
    %213 = vector.shape_cast %212 : vector<16xf32> to vector<16x1xf32>
    %cst_68 = arith.constant 1.280000e+02 : f32
    %214 = vector.broadcast %cst_68 : f32 to vector<16x1xf32>
    %215 = arith.divf %213, %214 : vector<16x1xf32>
    %216 = vector.broadcast %215 : vector<16x1xf32> to vector<16x128xf32>
    %217 = arith.subf %211, %216 : vector<16x128xf32>
    %218 = arith.mulf %217, %217 : vector<16x128xf32>
    %cst_69 = arith.constant dense<0.000000e+00> : vector<16xf32>
    %219 = vector.multi_reduction <add>, %218, %cst_69 [1] : vector<16x128xf32> to vector<16xf32>
    %220 = vector.shape_cast %219 : vector<16xf32> to vector<16x1xf32>
    %cst_70 = arith.constant 1.280000e+02 : f32
    %221 = vector.broadcast %cst_70 : f32 to vector<16x1xf32>
    %222 = arith.divf %220, %221 : vector<16x1xf32>
    %cst_71 = arith.constant 9.99999974E-6 : f32
    %223 = vector.broadcast %cst_71 : f32 to vector<16x1xf32>
    %224 = arith.addf %222, %223 : vector<16x1xf32>
    %225 = math.rsqrt %224 : vector<16x1xf32>
    %226 = vector.broadcast %225 : vector<16x1xf32> to vector<16x128xf32>
    %227 = arith.mulf %217, %226 : vector<16x128xf32>
    %228 = vector.broadcast %92 : vector<1x128xf32> to vector<16x128xf32>
    %229 = arith.mulf %227, %228 : vector<16x128xf32>
    %230 = vector.broadcast %93 : vector<1x128xf32> to vector<16x128xf32>
    %231 = arith.addf %229, %230 : vector<16x128xf32>
    %cst_72 = arith.constant 0.000000e+00 : f32
    %232 = vector.broadcast %cst_72 : f32 to vector<16x128xf32>
    %233 = arith.maximumf %231, %232 : vector<16x128xf32>
    %c0_73 = arith.constant 0 : index
    %c0_74 = arith.constant 0 : index
    %234 = vector.load %arg18[%c0_73, %c0_74] : memref<128x128xbf16, #tpu.memory_space<vmem>>, vector<128x128xbf16>
    %235 = arith.truncf %233 : vector<16x128xf32> to vector<16x128xbf16>
    %cst_75 = arith.constant dense<0.000000e+00> : vector<16x128xf32>
    %236 = tpu.matmul %235, %234, %cst_75 {dimension_numbers = #tpu.dot_dimension_numbers<[1], [0], [0], [1], [0, 0, 1, 1], [], []>} : vector<16x128xbf16>, vector<128x128xbf16>, vector<16x128xf32> -> vector<16x128xf32>
    %cst_76 = arith.constant dense<0.000000e+00> : vector<16xf32>
    %237 = vector.multi_reduction <add>, %236, %cst_76 [1] : vector<16x128xf32> to vector<16xf32>
    %238 = vector.shape_cast %237 : vector<16xf32> to vector<16x1xf32>
    %cst_77 = arith.constant 1.280000e+02 : f32
    %239 = vector.broadcast %cst_77 : f32 to vector<16x1xf32>
    %240 = arith.divf %238, %239 : vector<16x1xf32>
    %241 = vector.broadcast %240 : vector<16x1xf32> to vector<16x128xf32>
    %242 = arith.subf %236, %241 : vector<16x128xf32>
    %243 = arith.mulf %242, %242 : vector<16x128xf32>
    %cst_78 = arith.constant dense<0.000000e+00> : vector<16xf32>
    %244 = vector.multi_reduction <add>, %243, %cst_78 [1] : vector<16x128xf32> to vector<16xf32>
    %245 = vector.shape_cast %244 : vector<16xf32> to vector<16x1xf32>
    %cst_79 = arith.constant 1.280000e+02 : f32
    %246 = vector.broadcast %cst_79 : f32 to vector<16x1xf32>
    %247 = arith.divf %245, %246 : vector<16x1xf32>
    %cst_80 = arith.constant 9.99999974E-6 : f32
    %248 = vector.broadcast %cst_80 : f32 to vector<16x1xf32>
    %249 = arith.addf %247, %248 : vector<16x1xf32>
    %250 = math.rsqrt %249 : vector<16x1xf32>
    %251 = vector.broadcast %250 : vector<16x1xf32> to vector<16x128xf32>
    %252 = arith.mulf %242, %251 : vector<16x128xf32>
    %253 = vector.broadcast %94 : vector<1x128xf32> to vector<16x128xf32>
    %254 = arith.mulf %252, %253 : vector<16x128xf32>
    %255 = vector.broadcast %95 : vector<1x128xf32> to vector<16x128xf32>
    %256 = arith.addf %254, %255 : vector<16x128xf32>
    %257 = arith.addf %256, %82 : vector<16x128xf32>
    %cst_81 = arith.constant 0.000000e+00 : f32
    %258 = vector.broadcast %cst_81 : f32 to vector<16x128xf32>
    %259 = arith.maximumf %257, %258 : vector<16x128xf32>
    %260 = vector.extract_strided_slice %1 {offsets = [7, 0], sizes = [1, 128], strides = [1, 1]} : vector<14x128xf32> to vector<1x128xf32>
    %261 = vector.extract_strided_slice %1 {offsets = [8, 0], sizes = [1, 128], strides = [1, 1]} : vector<14x128xf32> to vector<1x128xf32>
    %262 = vector.extract_strided_slice %1 {offsets = [9, 0], sizes = [1, 128], strides = [1, 1]} : vector<14x128xf32> to vector<1x128xf32>
    %263 = vector.extract_strided_slice %1 {offsets = [10, 0], sizes = [1, 128], strides = [1, 1]} : vector<14x128xf32> to vector<1x128xf32>
    %264 = vector.extract_strided_slice %1 {offsets = [11, 0], sizes = [1, 128], strides = [1, 1]} : vector<14x128xf32> to vector<1x128xf32>
    %265 = vector.extract_strided_slice %1 {offsets = [12, 0], sizes = [1, 128], strides = [1, 1]} : vector<14x128xf32> to vector<1x128xf32>
    %266 = vector.extract_strided_slice %1 {offsets = [13, 0], sizes = [1, 128], strides = [1, 1]} : vector<14x128xf32> to vector<1x128xf32>
    %267 = vector.extract_strided_slice %0 {offsets = [12, 0], sizes = [1, 128], strides = [1, 1]} : vector<18x128xf32> to vector<1x128xf32>
    %268 = vector.extract_strided_slice %0 {offsets = [13, 0], sizes = [1, 128], strides = [1, 1]} : vector<18x128xf32> to vector<1x128xf32>
    %269 = vector.extract_strided_slice %0 {offsets = [14, 0], sizes = [1, 128], strides = [1, 1]} : vector<18x128xf32> to vector<1x128xf32>
    %270 = vector.extract_strided_slice %0 {offsets = [15, 0], sizes = [1, 128], strides = [1, 1]} : vector<18x128xf32> to vector<1x128xf32>
    %271 = vector.extract_strided_slice %0 {offsets = [16, 0], sizes = [1, 128], strides = [1, 1]} : vector<18x128xf32> to vector<1x128xf32>
    %272 = vector.extract_strided_slice %0 {offsets = [17, 0], sizes = [1, 128], strides = [1, 1]} : vector<18x128xf32> to vector<1x128xf32>
    %273 = vector.extract_strided_slice %3 {offsets = [0, 0], sizes = [16, 1], strides = [1, 1]} : vector<16x3xf32> to vector<16x1xf32>
    %274 = vector.broadcast %273 : vector<16x1xf32> to vector<16x128xf32>
    %275 = vector.broadcast %265 : vector<1x128xf32> to vector<16x128xf32>
    %276 = arith.mulf %274, %275 : vector<16x128xf32>
    %277 = vector.extract_strided_slice %3 {offsets = [0, 1], sizes = [16, 1], strides = [1, 1]} : vector<16x3xf32> to vector<16x1xf32>
    %278 = vector.broadcast %277 : vector<16x1xf32> to vector<16x128xf32>
    %279 = vector.broadcast %266 : vector<1x128xf32> to vector<16x128xf32>
    %280 = arith.mulf %278, %279 : vector<16x128xf32>
    %281 = arith.addf %276, %280 : vector<16x128xf32>
    %282 = vector.broadcast %260 : vector<1x128xf32> to vector<16x128xf32>
    %283 = arith.addf %281, %282 : vector<16x128xf32>
    %284 = vector.shape_cast %283 : vector<16x128xf32> to vector<1x16x128xf32>
    %c0_82 = arith.constant 0 : index
    %c0_83 = arith.constant 0 : index
    %c0_84 = arith.constant 0 : index
    %285 = vector.load %arg6[%c0_82, %c0_83, %c0_84] : memref<8x1x128xf32, #tpu.memory_space<vmem>>, vector<8x1x128xf32>
    %286 = vector.broadcast %284 : vector<1x16x128xf32> to vector<8x16x128xf32>
    %287 = vector.broadcast %285 : vector<8x1x128xf32> to vector<8x16x128xf32>
    %288 = arith.subf %286, %287 : vector<8x16x128xf32>
    %cst_85 = arith.constant 0.000000e+00 : f32
    %289 = vector.broadcast %cst_85 : f32 to vector<8x16x128xf32>
    %290 = arith.maximumf %288, %289 : vector<8x16x128xf32>
    %291 = vector.shape_cast %290 : vector<8x16x128xf32> to vector<128x128xf32>
    %c0_86 = arith.constant 0 : index
    %c0_87 = arith.constant 0 : index
    %292 = vector.load %arg19[%c0_86, %c0_87] : memref<128x128xbf16, #tpu.memory_space<vmem>>, vector<128x128xbf16>
    %293 = arith.truncf %291 : vector<128x128xf32> to vector<128x128xbf16>
    %cst_88 = arith.constant dense<0.000000e+00> : vector<128x128xf32>
    %294 = tpu.matmul %293, %292, %cst_88 {dimension_numbers = #tpu.dot_dimension_numbers<[1], [0], [0], [1], [0, 0, 1, 1], [], []>} : vector<128x128xbf16>, vector<128x128xbf16>, vector<128x128xf32> -> vector<128x128xf32>
    %cst_89 = arith.constant dense<0.000000e+00> : vector<128xf32>
    %295 = vector.multi_reduction <add>, %294, %cst_89 [1] : vector<128x128xf32> to vector<128xf32>
    %296 = vector.shape_cast %295 : vector<128xf32> to vector<128x1xf32>
    %cst_90 = arith.constant 1.280000e+02 : f32
    %297 = vector.broadcast %cst_90 : f32 to vector<128x1xf32>
    %298 = arith.divf %296, %297 : vector<128x1xf32>
    %299 = vector.broadcast %298 : vector<128x1xf32> to vector<128x128xf32>
    %300 = arith.subf %294, %299 : vector<128x128xf32>
    %301 = arith.mulf %300, %300 : vector<128x128xf32>
    %cst_91 = arith.constant dense<0.000000e+00> : vector<128xf32>
    %302 = vector.multi_reduction <add>, %301, %cst_91 [1] : vector<128x128xf32> to vector<128xf32>
    %303 = vector.shape_cast %302 : vector<128xf32> to vector<128x1xf32>
    %cst_92 = arith.constant 1.280000e+02 : f32
    %304 = vector.broadcast %cst_92 : f32 to vector<128x1xf32>
    %305 = arith.divf %303, %304 : vector<128x1xf32>
    %cst_93 = arith.constant 9.99999974E-6 : f32
    %306 = vector.broadcast %cst_93 : f32 to vector<128x1xf32>
    %307 = arith.addf %305, %306 : vector<128x1xf32>
    %308 = math.rsqrt %307 : vector<128x1xf32>
    %309 = vector.broadcast %308 : vector<128x1xf32> to vector<128x128xf32>
    %310 = arith.mulf %300, %309 : vector<128x128xf32>
    %311 = vector.broadcast %261 : vector<1x128xf32> to vector<128x128xf32>
    %312 = arith.mulf %310, %311 : vector<128x128xf32>
    %313 = vector.broadcast %262 : vector<1x128xf32> to vector<128x128xf32>
    %314 = arith.addf %312, %313 : vector<128x128xf32>
    %cst_94 = arith.constant 0.000000e+00 : f32
    %315 = vector.broadcast %cst_94 : f32 to vector<128x128xf32>
    %316 = arith.maximumf %314, %315 : vector<128x128xf32>
    %c0_95 = arith.constant 0 : index
    %c0_96 = arith.constant 0 : index
    %317 = vector.load %arg20[%c0_95, %c0_96] : memref<128x128xbf16, #tpu.memory_space<vmem>>, vector<128x128xbf16>
    %318 = arith.truncf %259 : vector<16x128xf32> to vector<16x128xbf16>
    %cst_97 = arith.constant dense<0.000000e+00> : vector<16x128xf32>
    %319 = tpu.matmul %318, %317, %cst_97 {dimension_numbers = #tpu.dot_dimension_numbers<[1], [0], [0], [1], [0, 0, 1, 1], [], []>} : vector<16x128xbf16>, vector<128x128xbf16>, vector<16x128xf32> -> vector<16x128xf32>
    %cst_98 = arith.constant dense<0.000000e+00> : vector<16xf32>
    %320 = vector.multi_reduction <add>, %319, %cst_98 [1] : vector<16x128xf32> to vector<16xf32>
    %321 = vector.shape_cast %320 : vector<16xf32> to vector<16x1xf32>
    %cst_99 = arith.constant 1.280000e+02 : f32
    %322 = vector.broadcast %cst_99 : f32 to vector<16x1xf32>
    %323 = arith.divf %321, %322 : vector<16x1xf32>
    %324 = vector.broadcast %323 : vector<16x1xf32> to vector<16x128xf32>
    %325 = arith.subf %319, %324 : vector<16x128xf32>
    %326 = arith.mulf %325, %325 : vector<16x128xf32>
    %cst_100 = arith.constant dense<0.000000e+00> : vector<16xf32>
    %327 = vector.multi_reduction <add>, %326, %cst_100 [1] : vector<16x128xf32> to vector<16xf32>
    %328 = vector.shape_cast %327 : vector<16xf32> to vector<16x1xf32>
    %cst_101 = arith.constant 1.280000e+02 : f32
    %329 = vector.broadcast %cst_101 : f32 to vector<16x1xf32>
    %330 = arith.divf %328, %329 : vector<16x1xf32>
    %cst_102 = arith.constant 9.99999974E-6 : f32
    %331 = vector.broadcast %cst_102 : f32 to vector<16x1xf32>
    %332 = arith.addf %330, %331 : vector<16x1xf32>
    %333 = math.rsqrt %332 : vector<16x1xf32>
    %334 = vector.broadcast %333 : vector<16x1xf32> to vector<16x128xf32>
    %335 = arith.mulf %325, %334 : vector<16x128xf32>
    %336 = vector.broadcast %263 : vector<1x128xf32> to vector<16x128xf32>
    %337 = arith.mulf %335, %336 : vector<16x128xf32>
    %338 = vector.broadcast %264 : vector<1x128xf32> to vector<16x128xf32>
    %339 = arith.addf %337, %338 : vector<16x128xf32>
    %cst_103 = arith.constant 0.000000e+00 : f32
    %340 = vector.broadcast %cst_103 : f32 to vector<16x128xf32>
    %341 = arith.maximumf %339, %340 : vector<16x128xf32>
    %c0_104 = arith.constant 0 : index
    %c0_105 = arith.constant 0 : index
    %342 = vector.load %arg21[%c0_104, %c0_105] : memref<128x128xbf16, #tpu.memory_space<vmem>>, vector<128x128xbf16>
    %343 = arith.truncf %316 : vector<128x128xf32> to vector<128x128xbf16>
    %cst_106 = arith.constant dense<0.000000e+00> : vector<128x128xf32>
    %344 = tpu.matmul %343, %342, %cst_106 {dimension_numbers = #tpu.dot_dimension_numbers<[1], [0], [0], [1], [0, 0, 1, 1], [], []>} : vector<128x128xbf16>, vector<128x128xbf16>, vector<128x128xf32> -> vector<128x128xf32>
    %345 = vector.shape_cast %344 : vector<128x128xf32> to vector<8x16x128xf32>
    %c0_107 = arith.constant 0 : index
    %c0_108 = arith.constant 0 : index
    %346 = vector.load %arg22[%c0_107, %c0_108] : memref<128x128xbf16, #tpu.memory_space<vmem>>, vector<128x128xbf16>
    %347 = arith.truncf %341 : vector<16x128xf32> to vector<16x128xbf16>
    %cst_109 = arith.constant dense<0.000000e+00> : vector<16x128xf32>
    %348 = tpu.matmul %347, %346, %cst_109 {dimension_numbers = #tpu.dot_dimension_numbers<[1], [0], [0], [1], [0, 0, 1, 1], [], []>} : vector<16x128xbf16>, vector<128x128xbf16>, vector<16x128xf32> -> vector<16x128xf32>
    %349 = vector.shape_cast %348 : vector<16x128xf32> to vector<1x16x128xf32>
    %350 = vector.broadcast %349 : vector<1x16x128xf32> to vector<8x16x128xf32>
    %351 = arith.addf %345, %350 : vector<8x16x128xf32>
    %c0_110 = arith.constant 0 : index
    %c0_111 = arith.constant 0 : index
    %c0_112 = arith.constant 0 : index
    %352 = vector.load %arg8[%c0_110, %c0_111, %c0_112] : memref<8x1x128xf32, #tpu.memory_space<vmem>>, vector<8x1x128xf32>
    %353 = vector.broadcast %352 : vector<8x1x128xf32> to vector<8x16x128xf32>
    %354 = arith.addf %351, %353 : vector<8x16x128xf32>
    %355 = vector.shape_cast %354 : vector<8x16x128xf32> to vector<128x128xf32>
    %cst_113 = arith.constant dense<0.000000e+00> : vector<128xf32>
    %356 = vector.multi_reduction <add>, %355, %cst_113 [1] : vector<128x128xf32> to vector<128xf32>
    %357 = vector.shape_cast %356 : vector<128xf32> to vector<128x1xf32>
    %cst_114 = arith.constant 1.280000e+02 : f32
    %358 = vector.broadcast %cst_114 : f32 to vector<128x1xf32>
    %359 = arith.divf %357, %358 : vector<128x1xf32>
    %360 = vector.broadcast %359 : vector<128x1xf32> to vector<128x128xf32>
    %361 = arith.subf %355, %360 : vector<128x128xf32>
    %362 = arith.mulf %361, %361 : vector<128x128xf32>
    %cst_115 = arith.constant dense<0.000000e+00> : vector<128xf32>
    %363 = vector.multi_reduction <add>, %362, %cst_115 [1] : vector<128x128xf32> to vector<128xf32>
    %364 = vector.shape_cast %363 : vector<128xf32> to vector<128x1xf32>
    %cst_116 = arith.constant 1.280000e+02 : f32
    %365 = vector.broadcast %cst_116 : f32 to vector<128x1xf32>
    %366 = arith.divf %364, %365 : vector<128x1xf32>
    %cst_117 = arith.constant 9.99999974E-6 : f32
    %367 = vector.broadcast %cst_117 : f32 to vector<128x1xf32>
    %368 = arith.addf %366, %367 : vector<128x1xf32>
    %369 = math.rsqrt %368 : vector<128x1xf32>
    %370 = vector.broadcast %369 : vector<128x1xf32> to vector<128x128xf32>
    %371 = arith.mulf %361, %370 : vector<128x128xf32>
    %372 = vector.broadcast %267 : vector<1x128xf32> to vector<128x128xf32>
    %373 = arith.mulf %371, %372 : vector<128x128xf32>
    %374 = vector.broadcast %268 : vector<1x128xf32> to vector<128x128xf32>
    %375 = arith.addf %373, %374 : vector<128x128xf32>
    %cst_118 = arith.constant 0.000000e+00 : f32
    %376 = vector.broadcast %cst_118 : f32 to vector<128x128xf32>
    %377 = arith.maximumf %375, %376 : vector<128x128xf32>
    %c0_119 = arith.constant 0 : index
    %c0_120 = arith.constant 0 : index
    %378 = vector.load %arg23[%c0_119, %c0_120] : memref<128x128xbf16, #tpu.memory_space<vmem>>, vector<128x128xbf16>
    %379 = arith.truncf %377 : vector<128x128xf32> to vector<128x128xbf16>
    %cst_121 = arith.constant dense<0.000000e+00> : vector<128x128xf32>
    %380 = tpu.matmul %379, %378, %cst_121 {dimension_numbers = #tpu.dot_dimension_numbers<[1], [0], [0], [1], [0, 0, 1, 1], [], []>} : vector<128x128xbf16>, vector<128x128xbf16>, vector<128x128xf32> -> vector<128x128xf32>
    %381 = vector.shape_cast %380 : vector<128x128xf32> to vector<8x16x128xf32>
    %c0_122 = arith.constant 0 : index
    %c0_123 = arith.constant 0 : index
    %382 = vector.load %arg24[%c0_122, %c0_123] : memref<128x128xbf16, #tpu.memory_space<vmem>>, vector<128x128xbf16>
    %383 = arith.truncf %259 : vector<16x128xf32> to vector<16x128xbf16>
    %cst_124 = arith.constant dense<0.000000e+00> : vector<16x128xf32>
    %384 = tpu.matmul %383, %382, %cst_124 {dimension_numbers = #tpu.dot_dimension_numbers<[1], [0], [0], [1], [0, 0, 1, 1], [], []>} : vector<16x128xbf16>, vector<128x128xbf16>, vector<16x128xf32> -> vector<16x128xf32>
    %385 = vector.broadcast %31 : vector<8x16x1xf32> to vector<8x16x128xf32>
    %386 = arith.mulf %381, %385 : vector<8x16x128xf32>
    %cst_125 = arith.constant dense<0.000000e+00> : vector<16x128xf32>
    %387 = vector.multi_reduction <add>, %386, %cst_125 [0] : vector<8x16x128xf32> to vector<16x128xf32>
    %388 = arith.addf %384, %387 : vector<16x128xf32>
    %cst_126 = arith.constant dense<0.000000e+00> : vector<16xf32>
    %389 = vector.multi_reduction <add>, %388, %cst_126 [1] : vector<16x128xf32> to vector<16xf32>
    %390 = vector.shape_cast %389 : vector<16xf32> to vector<16x1xf32>
    %cst_127 = arith.constant 1.280000e+02 : f32
    %391 = vector.broadcast %cst_127 : f32 to vector<16x1xf32>
    %392 = arith.divf %390, %391 : vector<16x1xf32>
    %393 = vector.broadcast %392 : vector<16x1xf32> to vector<16x128xf32>
    %394 = arith.subf %388, %393 : vector<16x128xf32>
    %395 = arith.mulf %394, %394 : vector<16x128xf32>
    %cst_128 = arith.constant dense<0.000000e+00> : vector<16xf32>
    %396 = vector.multi_reduction <add>, %395, %cst_128 [1] : vector<16x128xf32> to vector<16xf32>
    %397 = vector.shape_cast %396 : vector<16xf32> to vector<16x1xf32>
    %cst_129 = arith.constant 1.280000e+02 : f32
    %398 = vector.broadcast %cst_129 : f32 to vector<16x1xf32>
    %399 = arith.divf %397, %398 : vector<16x1xf32>
    %cst_130 = arith.constant 9.99999974E-6 : f32
    %400 = vector.broadcast %cst_130 : f32 to vector<16x1xf32>
    %401 = arith.addf %399, %400 : vector<16x1xf32>
    %402 = math.rsqrt %401 : vector<16x1xf32>
    %403 = vector.broadcast %402 : vector<16x1xf32> to vector<16x128xf32>
    %404 = arith.mulf %394, %403 : vector<16x128xf32>
    %405 = vector.broadcast %269 : vector<1x128xf32> to vector<16x128xf32>
    %406 = arith.mulf %404, %405 : vector<16x128xf32>
    %407 = vector.broadcast %270 : vector<1x128xf32> to vector<16x128xf32>
    %408 = arith.addf %406, %407 : vector<16x128xf32>
    %cst_131 = arith.constant 0.000000e+00 : f32
    %409 = vector.broadcast %cst_131 : f32 to vector<16x128xf32>
    %410 = arith.maximumf %408, %409 : vector<16x128xf32>
    %c0_132 = arith.constant 0 : index
    %c0_133 = arith.constant 0 : index
    %411 = vector.load %arg25[%c0_132, %c0_133] : memref<128x128xbf16, #tpu.memory_space<vmem>>, vector<128x128xbf16>
    %412 = arith.truncf %410 : vector<16x128xf32> to vector<16x128xbf16>
    %cst_134 = arith.constant dense<0.000000e+00> : vector<16x128xf32>
    %413 = tpu.matmul %412, %411, %cst_134 {dimension_numbers = #tpu.dot_dimension_numbers<[1], [0], [0], [1], [0, 0, 1, 1], [], []>} : vector<16x128xbf16>, vector<128x128xbf16>, vector<16x128xf32> -> vector<16x128xf32>
    %cst_135 = arith.constant dense<0.000000e+00> : vector<16xf32>
    %414 = vector.multi_reduction <add>, %413, %cst_135 [1] : vector<16x128xf32> to vector<16xf32>
    %415 = vector.shape_cast %414 : vector<16xf32> to vector<16x1xf32>
    %cst_136 = arith.constant 1.280000e+02 : f32
    %416 = vector.broadcast %cst_136 : f32 to vector<16x1xf32>
    %417 = arith.divf %415, %416 : vector<16x1xf32>
    %418 = vector.broadcast %417 : vector<16x1xf32> to vector<16x128xf32>
    %419 = arith.subf %413, %418 : vector<16x128xf32>
    %420 = arith.mulf %419, %419 : vector<16x128xf32>
    %cst_137 = arith.constant dense<0.000000e+00> : vector<16xf32>
    %421 = vector.multi_reduction <add>, %420, %cst_137 [1] : vector<16x128xf32> to vector<16xf32>
    %422 = vector.shape_cast %421 : vector<16xf32> to vector<16x1xf32>
    %cst_138 = arith.constant 1.280000e+02 : f32
    %423 = vector.broadcast %cst_138 : f32 to vector<16x1xf32>
    %424 = arith.divf %422, %423 : vector<16x1xf32>
    %cst_139 = arith.constant 9.99999974E-6 : f32
    %425 = vector.broadcast %cst_139 : f32 to vector<16x1xf32>
    %426 = arith.addf %424, %425 : vector<16x1xf32>
    %427 = math.rsqrt %426 : vector<16x1xf32>
    %428 = vector.broadcast %427 : vector<16x1xf32> to vector<16x128xf32>
    %429 = arith.mulf %419, %428 : vector<16x128xf32>
    %430 = vector.broadcast %271 : vector<1x128xf32> to vector<16x128xf32>
    %431 = arith.mulf %429, %430 : vector<16x128xf32>
    %432 = vector.broadcast %272 : vector<1x128xf32> to vector<16x128xf32>
    %433 = arith.addf %431, %432 : vector<16x128xf32>
    %434 = arith.addf %433, %259 : vector<16x128xf32>
    %cst_140 = arith.constant 0.000000e+00 : f32
    %435 = vector.broadcast %cst_140 : f32 to vector<16x128xf32>
    %436 = arith.maximumf %434, %435 : vector<16x128xf32>
    %c0_141 = arith.constant 0 : index
    %c0_142 = arith.constant 0 : index
    %437 = vector.load %arg26[%c0_141, %c0_142] : memref<16x128xf32, #tpu.memory_space<vmem>>, vector<16x128xf32>
    tpu.vector_store %arg26[%c0_141, %c0_142], %436 {strides = array<i32>} : memref<16x128xf32, #tpu.memory_space<vmem>>, vector<16x128xf32>,
    return
  }
  func.func @transform_0(%arg0: i32) -> (i32, i32) {
    %c0_i32 = arith.constant 0 : i32
    %c0_i32_0 = arith.constant 0 : i32
    return %arg0, %c0_i32 : i32, i32
  }
  func.func @transform_1(%arg0: i32) -> (i32, i32) {
    %c0_i32 = arith.constant 0 : i32
    %c0_i32_0 = arith.constant 0 : i32
    return %arg0, %c0_i32 : i32, i32
  }
  func.func @transform_2(%arg0: i32) -> (i32, i32) {
    %c0_i32 = arith.constant 0 : i32
    %c0_i32_0 = arith.constant 0 : i32
    return %arg0, %c0_i32 : i32, i32
  }
  func.func @transform_3(%arg0: i32) -> (i32, i32, i32) {
    %c0_i32 = arith.constant 0 : i32
    %c0_i32_0 = arith.constant 0 : i32
    %c0_i32_1 = arith.constant 0 : i32
    %c0_i32_2 = arith.constant 0 : i32
    return %c0_i32, %c0_i32_0, %c0_i32_1 : i32, i32, i32
  }
  func.func @transform_4(%arg0: i32) -> (i32, i32, i32) {
    %c0_i32 = arith.constant 0 : i32
    %c0_i32_0 = arith.constant 0 : i32
    %c0_i32_1 = arith.constant 0 : i32
    %c0_i32_2 = arith.constant 0 : i32
    return %c0_i32, %c0_i32_0, %c0_i32_1 : i32, i32, i32
  }
  func.func @transform_5(%arg0: i32) -> (i32, i32, i32) {
    %c0_i32 = arith.constant 0 : i32
    %c0_i32_0 = arith.constant 0 : i32
    %c0_i32_1 = arith.constant 0 : i32
    %c0_i32_2 = arith.constant 0 : i32
    return %c0_i32, %c0_i32_0, %c0_i32_1 : i32, i32, i32
  }
  func.func @transform_6(%arg0: i32) -> (i32, i32, i32) {
    %c0_i32 = arith.constant 0 : i32
    %c0_i32_0 = arith.constant 0 : i32
    %c0_i32_1 = arith.constant 0 : i32
    %c0_i32_2 = arith.constant 0 : i32
    return %c0_i32, %c0_i32_0, %c0_i32_1 : i32, i32, i32
  }
  func.func @transform_7(%arg0: i32) -> (i32, i32, i32) {
    %c0_i32 = arith.constant 0 : i32
    %c0_i32_0 = arith.constant 0 : i32
    %c0_i32_1 = arith.constant 0 : i32
    %c0_i32_2 = arith.constant 0 : i32
    return %c0_i32, %c0_i32_0, %c0_i32_1 : i32, i32, i32
  }
  func.func @transform_8(%arg0: i32) -> (i32, i32) {
    %c0_i32 = arith.constant 0 : i32
    %c0_i32_0 = arith.constant 0 : i32
    %c0_i32_1 = arith.constant 0 : i32
    return %c0_i32, %c0_i32_0 : i32, i32
  }
  func.func @transform_9(%arg0: i32) -> (i32, i32) {
    %c0_i32 = arith.constant 0 : i32
    %c0_i32_0 = arith.constant 0 : i32
    %c0_i32_1 = arith.constant 0 : i32
    return %c0_i32, %c0_i32_0 : i32, i32
  }
  func.func @transform_10(%arg0: i32) -> (i32, i32) {
    %c0_i32 = arith.constant 0 : i32
    %c0_i32_0 = arith.constant 0 : i32
    %c0_i32_1 = arith.constant 0 : i32
    return %c0_i32, %c0_i32_0 : i32, i32
  }
  func.func @transform_11(%arg0: i32) -> (i32, i32) {
    %c0_i32 = arith.constant 0 : i32
    %c0_i32_0 = arith.constant 0 : i32
    %c0_i32_1 = arith.constant 0 : i32
    return %c0_i32, %c0_i32_0 : i32, i32
  }
  func.func @transform_12(%arg0: i32) -> (i32, i32) {
    %c0_i32 = arith.constant 0 : i32
    %c0_i32_0 = arith.constant 0 : i32
    %c0_i32_1 = arith.constant 0 : i32
    return %c0_i32, %c0_i32_0 : i32, i32
  }
  func.func @transform_13(%arg0: i32) -> (i32, i32) {
    %c0_i32 = arith.constant 0 : i32
    %c0_i32_0 = arith.constant 0 : i32
    %c0_i32_1 = arith.constant 0 : i32
    return %c0_i32, %c0_i32_0 : i32, i32
  }
  func.func @transform_14(%arg0: i32) -> (i32, i32) {
    %c0_i32 = arith.constant 0 : i32
    %c0_i32_0 = arith.constant 0 : i32
    %c0_i32_1 = arith.constant 0 : i32
    return %c0_i32, %c0_i32_0 : i32, i32
  }
  func.func @transform_15(%arg0: i32) -> (i32, i32) {
    %c0_i32 = arith.constant 0 : i32
    %c0_i32_0 = arith.constant 0 : i32
    %c0_i32_1 = arith.constant 0 : i32
    return %c0_i32, %c0_i32_0 : i32, i32
  }
  func.func @transform_16(%arg0: i32) -> (i32, i32) {
    %c0_i32 = arith.constant 0 : i32
    %c0_i32_0 = arith.constant 0 : i32
    %c0_i32_1 = arith.constant 0 : i32
    return %c0_i32, %c0_i32_0 : i32, i32
  }
  func.func @transform_17(%arg0: i32) -> (i32, i32) {
    %c0_i32 = arith.constant 0 : i32
    %c0_i32_0 = arith.constant 0 : i32
    %c0_i32_1 = arith.constant 0 : i32
    return %c0_i32, %c0_i32_0 : i32, i32
  }
  func.func @transform_18(%arg0: i32) -> (i32, i32) {
    %c0_i32 = arith.constant 0 : i32
    %c0_i32_0 = arith.constant 0 : i32
    %c0_i32_1 = arith.constant 0 : i32
    return %c0_i32, %c0_i32_0 : i32, i32
  }
  func.func @transform_19(%arg0: i32) -> (i32, i32) {
    %c0_i32 = arith.constant 0 : i32
    %c0_i32_0 = arith.constant 0 : i32
    %c0_i32_1 = arith.constant 0 : i32
    return %c0_i32, %c0_i32_0 : i32, i32
  }
  func.func @transform_20(%arg0: i32) -> (i32, i32) {
    %c0_i32 = arith.constant 0 : i32
    %c0_i32_0 = arith.constant 0 : i32
    %c0_i32_1 = arith.constant 0 : i32
    return %c0_i32, %c0_i32_0 : i32, i32
  }
  func.func @transform_21(%arg0: i32) -> (i32, i32) {
    %c0_i32 = arith.constant 0 : i32
    %c0_i32_0 = arith.constant 0 : i32
    %c0_i32_1 = arith.constant 0 : i32
    return %c0_i32, %c0_i32_0 : i32, i32
  }
  func.func @transform_22(%arg0: i32) -> (i32, i32) {
    %c0_i32 = arith.constant 0 : i32
    %c0_i32_0 = arith.constant 0 : i32
    %c0_i32_1 = arith.constant 0 : i32
    return %c0_i32, %c0_i32_0 : i32, i32
  }
  func.func @transform_23(%arg0: i32) -> (i32, i32) {
    %c0_i32 = arith.constant 0 : i32
    %c0_i32_0 = arith.constant 0 : i32
    %c0_i32_1 = arith.constant 0 : i32
    return %c0_i32, %c0_i32_0 : i32, i32
  }
  func.func @transform_24(%arg0: i32) -> (i32, i32) {
    %c0_i32 = arith.constant 0 : i32
    %c0_i32_0 = arith.constant 0 : i32
    %c0_i32_1 = arith.constant 0 : i32
    return %c0_i32, %c0_i32_0 : i32, i32
  }
  func.func @transform_25(%arg0: i32) -> (i32, i32) {
    %c0_i32 = arith.constant 0 : i32
    %c0_i32_0 = arith.constant 0 : i32
    return %arg0, %c0_i32 : i32, i32
  }
}

</mosaic_0001>

<bundles_post_ra>
// kernel: a2m_forward.1
= control target key start
LH: loop header
LB: loop body
LE: loop exit
PB: predicated region body
PF: predicated region fallthrough
CT: control target
= control target key end

     0   :  { %s8379_s0 = inlined_call_operand.vmem [shape: bf16[32,128], index: 0, kind: input, shape index: {}]   ;;  %s8380_s1 = inlined_call_operand.vmem [shape: f32[32,4], index: 1, kind: input, shape index: {}]   ;;  %s8381_s2 = inlined_call_operand.vmem [shape: f32[32,3], index: 2, kind: input, shape index: {}]   ;;  %s8382_s3 = inlined_call_operand.vmem [shape: f32[8,1,3], index: 3, kind: input, shape index: {}]   ;;  %s8383_s4 = inlined_call_operand.vmem [shape: f32[8,1,128], index: 4, kind: input, shape index: {}]   ;;  %s8384_s5 = inlined_call_operand.vmem [shape: f32[8,1,128], index: 5, kind: input, shape index: {}]   ;;  %s8385_s6 = inlined_call_operand.vmem [shape: f32[8,1,128], index: 6, kind: input, shape index: {}]   ;;  %s8386_s7 = inlined_call_operand.vmem [shape: f32[8,1,128], index: 7, kind: input, shape index: {}]   ;;  %s8387_s8 = inlined_call_operand.vmem [shape: f32[18,128], index: 8, kind: input, shape index: {}]   ;;  %s8388_s9 = inlined_call_operand.vmem [shape: f32[14,128], index: 9, kind: input, shape index: {}]   ;;  %s8389_s10 = inlined_call_operand.vmem [shape: bf16[128,128], index: 10, kind: input, shape index: {}]   ;;  %s8390_s11 = inlined_call_operand.vmem [shape: bf16[128,128], index: 11, kind: input, shape index: {}]   ;;  %s8391_s12 = inlined_call_operand.vmem [shape: bf16[128,128], index: 12, kind: input, shape index: {}]   ;;  %s8392_s13 = inlined_call_operand.vmem [shape: bf16[128,128], index: 13, kind: input, shape index: {}]   ;;  %s8393_s14 = inlined_call_operand.vmem [shape: bf16[128,128], index: 14, kind: input, shape index: {}]   ;;  %s8394_s15 = inlined_call_operand.vmem [shape: bf16[128,128], index: 15, kind: input, shape index: {}]   ;;  %s8395_s16 = inlined_call_operand.vmem [shape: bf16[128,128], index: 16, kind: input, shape index: {}]   ;;  %s8396_s17 = inlined_call_operand.vmem [shape: bf16[128,128], index: 17, kind: input, shape index: {}]   ;;  %s8397_s18 = inlined_call_operand.vmem [shape: bf16[128,128], index: 18, kind: input, shape index: {}]   ;;  %s8398_s19 = inlined_call_operand.vmem [shape: bf16[128,128], index: 19, kind: input, shape index: {}]   ;;  %s8399_s20 = inlined_call_operand.vmem [shape: bf16[128,128], index: 20, kind: input, shape index: {}]   ;;  %s8400_s21 = inlined_call_operand.vmem [shape: bf16[128,128], index: 21, kind: input, shape index: {}]   ;;  %s8401_s22 = inlined_call_operand.vmem [shape: bf16[128,128], index: 22, kind: input, shape index: {}]   ;;  %s8402_s23 = inlined_call_operand.vmem [shape: bf16[128,128], index: 23, kind: input, shape index: {}]   ;;  %s8403_s24 = inlined_call_operand.vmem [shape: bf16[128,128], index: 24, kind: input, shape index: {}]   ;;  %s8404_s25 = inlined_call_operand.hbm [shape: f32[32,128], index: 25, kind: output, shape index: {}]  }
   0x1   :  { %8436 = sst [smem:[#allocation12_spill]] %s8379_s0 }
   0x2   :  { %8437 = sst [smem:[#allocation13_spill]] %s8380_s1 }
   0x3   :  { %8438 = sst [smem:[#allocation14_spill]] %s8381_s2 }
   0x4   :  { %8439 = sst [smem:[#allocation15_spill]] %s8382_s3 }
   0x5   :  { %8440 = sst [smem:[#allocation16_spill]] %s8383_s4 }
   0x6   :  { %8441 = sst [smem:[#allocation17_spill]] %s8384_s5 }
   0x7   :  { %8442 = sst [smem:[#allocation18_spill]] %s8385_s6 }
   0x8   :  { %8443 = sst [smem:[#allocation19_spill]] %s8386_s7 }
   0x9   :  { %8444 = sst [smem:[#allocation20_spill]] %s8387_s8 }
   0xa   :  { %8445 = sst [smem:[#allocation21_spill]] %s8388_s9 }
   0xb   :  { %8446 = sst [smem:[#allocation22_spill]] %s8389_s10 }
   0xc   :  { %8447 = sst [smem:[#allocation23_spill]] %s8390_s11 }
   0xd   :  { %8448 = sst [smem:[#allocation24_spill]] %s8404_s25 }
   0xe   :  { %30 = vsyncpa [#allocation3], 0 }
   0xf   :  { %32 = vsyncpa [#allocation3 + $0x1], 0  ;;  %s6081_s29 = smov 0   ;;  %s6083_s2 = smov 0  }
  0x10   :  { %s6085_s6 = smov 0   ;;  %s6087_s30 = smov 0  }
  0x11 LB: > { %8449 = sst [smem:[#allocation5_spill]] %s5927_s29  ;;  %s6102_s7 = sadd.s32 4294967295, %s5939_s30   ;;  %s5939_s30 = sphi %s6087_s30, %s8508_s30   ;;  %s5935_s6 = sphi %s6085_s6, %s8510_s6   ;;  %s5931_s2 = sphi %s6083_s2, %s8512_s2   ;;  %s5927_s29 = sphi %s6081_s29, %s8511_s29  }
  0x12   : > { %8450 = sst [smem:[#allocation6_spill]] %s5935_s6  ;;  %s4952_s3 = sadd.s32 4294967294, %s5939_s30  }
  0x13   : > { %8451 = sst [smem:[#allocation7_spill]] %s5939_s30  ;;  %s6106_s26 = sadd.s32 1, %s5939_s30  }
  0x14   : > { %8452 = sst [smem:[#allocation8_spill]] %s6106_s26  ;;  %s585_s1 = sadd.s32 1, %s5935_s6 }
  0x15   : > { %s582_s8 = ssub.s32 %s5939_s30, %s6106_s26  ;;  %p595_p0 = scmp.ne.s32.totalorder %s5935_s6, %s5931_s2 }
  0x16   : > { %p583_p1 = scmp.eq.s32.totalorder %s582_s8, 0  ;;  %p596_p2 = scmp.eq.s32.totalorder %s6102_s7, 1 }
  0x17   : > { %p601_p3 = scmp.ne.s32.totalorder %s5931_s2, %s5927_s29  ;;  %p602_p4 = scmp.eq.s32.totalorder %s4952_s3, 1 }
  0x18   : > { %s6117_s27 = scalar_select %p583_p1, %s5935_s6, %s585_s1  }
  0x19   : > { %p6119_p5 = por %p596_p2, %p595_p0  ;;  %p6123_p6 = por %p602_p4, %p601_p3 }
  0x1a   : > { %8453 = sst [smem:[#allocation9_spill]] %s6117_s27  ;;  %p4955_p7 = scmp.ge.s32.totalorder %s5939_s30, 1 }
  0x1b   : > { %s8454_s4 = scalar_select %p6119_p5, 1, 0 }
  0x1c   : > { %s8456_s28 = scalar_select %p6123_p6, 1, 0 }
  0x1d   : > { %8455 = sst [smem:[#allocation10_spill]] %s8454_s4  ;;  %p713_p8 = scmp.lt.s32.totalorder %s5939_s30, 3 }
  0x1e   : > { %8457 = sst [smem:[#allocation11_spill]] %s8456_s28 }
  0x1f   : > { %p714_p9 = pnand %p4955_p7, %p713_p8 }
  0x20   : > { %s8458_s10 = sld [smem:[#allocation22_spill]] (!%p714_p9)  ;;  %s4957_s0 = sshll.u32 (!%p714_p9), %s6102_s7, 1 }
  0x21   : > { %717 = sbr.rel (%p714_p9) target bundleno = 4336 (0x10f0), region = 120  ;;  %p792_p10 = scmp.lt.s32.totalorder (!%p714_p9), %s4957_s0, 3 }
  0x22   : > { %s8459_s11 = sld [smem:[#allocation23_spill]] (!%p714_p9)  ;;  %s5946_s30 = smov (!%p714_p9), 127  }
  0x23   : > { %s8460_s3 = sld [smem:[#allocation14_spill]] (!%p714_p9) }
  0x24   : > { %s8461_s4 = sld [smem:[#allocation13_spill]] (!%p714_p9) }
  0x25   : > { %s8462_s28 = sld [smem:[#allocation12_spill]] (!%p714_p9) }
  0x26   : > { %v5460_v0 = vld [vmem:[%s8458_s10 + $0x38] sm:$0xff]  ;;  %v5941_v1 = vmov 1   ;;  %v5942_v2 = vmov 0   ;;  %v5459_v3 = vld [vmem:[%s8458_s10 + $0x30] sm:$0xff]  ;;  %s8514_s0 = smov (!%p792_p10, %s4957_s0), 3  ;;  %v5458_v6 = vld [vmem:[%s8458_s10 + $0x28] sm:$0xff] }
  0x27   : > { %5624 = vset.pattern.permute.xlu1 %v5941_v1  ;;  %5623 = vset.pattern.permute.xlu0 %v5942_v2  ;;  %s4960_s5 = sshll.u32 %s8514_s0, 3  ;;  %v5457_v8 = vld [vmem:[%s8458_s10 + $0x20] sm:$0xff]  ;;  %v5456_v12 = vld [vmem:[%s8458_s10 + $0x18] sm:$0xff]  ;;  %v5455_v14 = vld [vmem:[%s8458_s10 + $0x10] sm:$0xff]  ;;  %s4958_s9 = sshll.u32 %s8514_s0, 2  ;;  %v5943_v16 = vmov 2  }
  0x28   : > { %1176 = vmatpush.bf16.msra.mxu0 %v5460_v0  ;;  %5625 = vset.pattern.permute.xlu2 %v5942_v2  ;;  %v5468_v4 = vld [vmem:[%s8459_s11 + $0x38] sm:$0xff]  ;;  %v5467_v5 = vld [vmem:[%s8459_s11 + $0x30] sm:$0xff]  ;;  %v5466_v10 = vld [vmem:[%s8459_s11 + $0x28] sm:$0xff]  ;;  %v5944_v19 = vmov 3   ;;  %s8465_s8 = sld [smem:[#allocation16_spill]] }
  0x29   : > { %1449 = vmatpush.bf16.msra.mxu1 %v5468_v4  ;;  %s6150_s1 = scalar_lea.vmem %s8460_s3, %s4960_s5  ;;  %v5454_v15 = vld [vmem:[%s8458_s10 + $0x8] sm:$0xff]  ;;  %v5453_v17 = vld [vmem:[%s8458_s10] sm:$0xff]  ;;  %v5464_v21 = vld [vmem:[%s8459_s11 + $0x18] sm:$0xff]  ;;  %s8466_s3 = sld [smem:[#allocation17_spill]] }
  0x2a   : > { %v817_v7 = vld [vmem:[%s6150_s1] sm:$0xff]  ;;  %s801_s25 = scalar_lea.vmem %s8461_s4, %s4960_s5  ;;  %v818_v11 = vld [vmem:[%s6150_s1 + $0x8] sm:$0xff]  ;;  %v5463_v22 = vld [vmem:[%s8459_s11 + $0x10] sm:$0xff]  ;;  %s8472_s4 = sld [smem:[#allocation18_spill]] }
  0x2b   : > { %1298 = vperm.xlu1 %5624, %v817_v7   ;;  %1286 = vperm.xlu0 %5623, %v817_v7   ;;  %v815_v9 = vld [vmem:[%s801_s25] sm:$0xff]  ;;  %v816_v13 = vld [vmem:[%s801_s25 + $0x8] sm:$0xff]  ;;  %s795_s29 = scalar_lea.vmem %s8462_s28, %s4958_s9  ;;  %s8467_s9 = sld [smem:[#allocation20_spill]] }
  0x2c   : > { %1177 = vmatpush.bf16.msra.mxu0 %v5459_v3  ;;  %1111 = vperm.xlu2 %5625, %v815_v9   ;;  %v5452_v18 = vld [vmem:[%s795_s29] sm:$0xff]  ;;  %v5462_v23 = vld [vmem:[%s8459_s11 + $0x8] sm:$0xff]  ;;  %s8463_s29 = sld [smem:[#allocation21_spill]]  ;;  %s5573_s10 = sshll.u32 %s6102_s7, 4 }
  0x2d   : > { %1450 = vmatpush.bf16.msra.mxu1 %v5467_v5  ;;  %v5465_v20 = vld [vmem:[%s8459_s11 + $0x20] sm:$0xff]  ;;  %s8502_s27 = sld [smem:[#allocation24_spill]] }
  0x2e   : > { %v5461_v24 = vld [vmem:[%s8459_s11] sm:$0xff] }
  0x2f   : > { %v5674_v40 = vld [vmem:[%s8465_s8] ss:$0 sm:$0xff]  ;;  %v5678_v41 = vld [vmem:[%s8465_s8 + $0x4] ss:$0 sm:$0xff]  ;;  %v5679_v43 = vld [vmem:[%s8465_s8 + $0x5] ss:$0 sm:$0xff] }
  0x30   : > { %1178 = vmatpush.bf16.msra.mxu0 %v5458_v6  ;;  %v5680_v48 = vld [vmem:[%s8465_s8 + $0x6] ss:$0 sm:$0xff]  ;;  %v5681_v53 = vld [vmem:[%s8465_s8 + $0x7] ss:$0 sm:$0xff] }
  0x31   : > { %1451 = vmatpush.bf16.msra.mxu1 %v5466_v10 }
  0x32   : > { %s8464_s0 = smov %s8463_s29  ;;  %v6203_v25 = vld [vmem:[%s8463_s29] sm:$0xff]  ;;  %s8477_s29 = sld [smem:[#allocation15_spill]] }
  0x33   : > { %1302 = vperm.xlu1 %5624, %v818_v11   ;;  %1291 = vperm.xlu0 %5623, %v818_v11   ;;  %v1305_v26 = vperm.slane %v6203_v25, 6  ;;  %v1294_v27 = vperm.slane %v6203_v25, 5  ;;  %v814_v28 = vld [vmem:[%s8464_s0 + $0x8] sm:$0x3f]  ;;  %v1310_v34 = vperm.slane %v6203_v25, 0  ;;  %v3123_v49 = vperm.slane %v6203_v25, 7  ;;  %s4862_s26 = scalar_lea.hbm %s8502_s27, %s5573_s10 }
  0x34   : > { %1179 = vmatpush.bf16.msra.mxu0 %v5457_v8  ;;  %1116 = vperm.xlu2 %5625, %v816_v13   ;;  %v3118_v33 = vperm.slane %v814_v28, 5  ;;  %v3115_v35 = vperm.slane %v814_v28, 4  ;;  %v5702_v8 = vld [vmem:[%s8466_s3 + $0x4] ss:$0 sm:$0xff]  ;;  %v5704_v28 = vld [vmem:[%s8466_s3 + $0x6] ss:$0 sm:$0xff] }
  0x35   : > { %1452 = vmatpush.bf16.msra.mxu1 %v5465_v20 }
  0x38   : > { %1180 = vmatpush.bf16.msra.mxu0 %v5456_v12  ;;  %s8478_s5 = smov %s8477_s29 }
  0x39   : > { %1453 = vmatpush.bf16.msra.mxu1 %v5464_v21 }
  0x3b   : > { %1195 = vperm.xlu1 %5624, %v816_v13   ;;  %5626 = vset.pattern.permute.xlu0 %v5941_v1 }
  0x3c   : > { %1181 = vmatpush.bf16.msra.mxu0 %v5455_v14  ;;  %1191 = vperm.xlu0 %5626, %v815_v9  }
  0x3d   : > { %5627 = vset.pattern.permute.xlu2 %v5943_v16  ;;  %1454 = vmatpush.bf16.msra.mxu1 %v5463_v22  ;;  %v5703_v22 = vld [vmem:[%s8466_s3 + $0x5] ss:$0 sm:$0xff] }
  0x3e   : > { %1204 = vperm.xlu2 %5627, %v815_v9  }
  0x40   : > { %1182 = vmatpush.bf16.msra.mxu0 %v5454_v15 }
  0x41   : > { %1455 = vmatpush.bf16.msra.mxu1 %v5462_v23 }
  0x43   : > { %5628 = vset.pattern.permute.xlu1 %v5943_v16 }
  0x44   : > { %1183 = vmatpush.bf16.msra.mxu0 %v5453_v17  ;;  %1208 = vperm.xlu1 %5628, %v816_v13  }
  0x45   : > { %5630 = vset.pattern.permute.xlu0 %v5944_v19  ;;  %1456 = vmatpush.bf16.msra.mxu1 %v5461_v24  ;;  %v5675_v24 = vld [vmem:[%s8465_s8 + $0x1] ss:$0 sm:$0xff] }
  0x46   : > { %5629 = vset.pattern.permute.xlu2 %v5944_v19  ;;  %1221 = vperm.xlu0 %5630, %v816_v13  }
  0x47   : > { %1184 = vmatmul.bf16.vlgmr.msra.gmra.mxu0 %v5452_v18  ;;  %1217 = vperm.xlu2 %5629, %v815_v9  }
  0x4c   : > { %5637 = vset.pattern.permute.xlu1 %v5942_v2 }
  0x4e   : > { %5643 = vset.pattern.permute.xlu0 %v5942_v2 }
  0x4f   : > { %5631 = vset.pattern.permute.xlu2 %v5942_v2 }
  0x86   : > { %v6219_v42 = vpop.permute.xlu2 %1111 }
  0x8e   : > { %v1117_v11 = vpop.permute.xlu2 %1116 }
  0x9d   : > { %v1299_v29 = vpop.permute.xlu1 %1298  ;;  %v1287_v30 = vpop.permute.xlu0 %1286 }
  0x9e   : > { %v1306_v31 = vmul.f32 %v1305_v26, %v1299_v29  ;;  %v1295_v32 = vmul.f32 %v1294_v27, %v1287_v30  ;;  %v3119_v37 = vmul.f32 %v3118_v33, %v1299_v29  ;;  %v3116_v39 = vmul.f32 %v3115_v35, %v1287_v30 }
  0xa0   : > { %v1308_v36 = vadd.f32 %v1306_v31, %v1295_v32  ;;  %v3121_v50 = vadd.f32 %v3119_v37, %v3116_v39  ;;  %v5705_v31 = vld [vmem:[%s8466_s3 + $0x7] ss:$0 sm:$0xff] }
  0xa2   : > { %v6211_v38 = vadd.f32 %v1310_v34, %v1308_v36  ;;  %v6237_v60 = vadd.f32 %v3123_v49, %v3121_v50 }
  0xa4   : > { %v1345_v51 = vsub.f32 %v6211_v38, %v5674_v40  ;;  %v1353_v52 = vsub.f32 %v6211_v38, %v5678_v41  ;;  %v1355_v57 = vsub.f32 %v6211_v38, %v5679_v43  ;;  %v1357_v59 = vsub.f32 %v6211_v38, %v5680_v48 }
  0xa5   : > { %v1303_v44 = vpop.permute.xlu1 %1302  ;;  %v1292_v45 = vpop.permute.xlu0 %1291  ;;  %v1359_v62 = vsub.f32 %v6211_v38, %v5681_v53  ;;  %v3166_v21 = vsub.f32 %v6237_v60, %v5702_v8  ;;  %v3168_v30 = vsub.f32 %v6237_v60, %v5703_v22 }
  0xa6   : > { %v1307_v46 = vmul.f32 %v1305_v26, %v1303_v44  ;;  %v1296_v47 = vmul.f32 %v1294_v27, %v1292_v45  ;;  %v3120_v54 = vmul.f32 %v3118_v33, %v1303_v44  ;;  %v3117_v56 = vmul.f32 %v3115_v35, %v1292_v45  ;;  %v6307_v44 = vld [vmem:[%s8467_s9] sm:$0xff] }
  0xa7   : > { %v1361_v61 = vmax.f32 %v1345_v51, 0.0  ;;  %v6241_v1 = vmax.f32 %v1353_v52, 0.0  ;;  %v6243_v3 = vmax.f32 %v1355_v57, 0.0  ;;  %v6252_v10 = vmax.f32 %v1357_v59, 0.0 }
  0xa8   : > { %v1309_v55 = vadd.f32 %v1307_v46, %v1296_v47  ;;  %v3122_v63 = vadd.f32 %v3120_v54, %v3117_v56  ;;  %v6258_v14 = vmax.f32 %v1359_v62, 0.0  ;;  %v6285_v29 = vmax.f32 %v3166_v21, 0.0 }
  0xa9   : > { %v1347_v35 = vsub.f32 %v6211_v38, %v5675_v24  ;;  %v6296_v37 = vmax.f32 %v3168_v30, 0.0  ;;  %v3172_v45 = vsub.f32 %v6237_v60, %v5705_v31  ;;  %v1119_v52 = vperm.slane %v6307_v44, 2 }
  0xaa   : > { %v6234_v58 = vadd.f32 %v1310_v34, %v1309_v55  ;;  %v6260_v15 = vadd.f32 %v3123_v49, %v3122_v63  ;;  %v1205_v34 = vpop.permute.xlu2 %1204  ;;  %v1198_v59 = vperm.slane %v6307_v44, 3 }
  0xab   : > { %v6317_v50 = vmax.f32 %v3172_v45, 0.0  ;;  %v1120_v63 = vmul.f32 %v1119_v52, %v6219_v42 }
  0xac   : > { %v1346_v0 = vsub.f32 %v6234_v58, %v5674_v40  ;;  %v1354_v4 = vsub.f32 %v6234_v58, %v5678_v41  ;;  %v1356_v5 = vsub.f32 %v6234_v58, %v5679_v43  ;;  %v1358_v6 = vsub.f32 %v6234_v58, %v5680_v48 }
  0xad   : > { %v1360_v7 = vsub.f32 %v6234_v58, %v5681_v53  ;;  %v3167_v27 = vsub.f32 %v6260_v15, %v5702_v8  ;;  %v3169_v33 = vsub.f32 %v6260_v15, %v5703_v22  ;;  %v1348_v36 = vsub.f32 %v6234_v58, %v5675_v24  ;;  %v1196_v62 = vpop.permute.xlu1 %1195  ;;  %v5676_v22 = vld [vmem:[%s8465_s8 + $0x2] ss:$0 sm:$0xff] }
  0xae   : > { %v1362_v9 = vmax.f32 %v1346_v0, 0.0  ;;  %v6254_v12 = vmax.f32 %v1354_v4, 0.0  ;;  %v6256_v13 = vmax.f32 %v1356_v5, 0.0  ;;  %v6262_v17 = vmax.f32 %v1358_v6, 0.0  ;;  %v1192_v56 = vpop.permute.xlu0 %1191 }
  0xaf   : > { %v6268_v20 = vmax.f32 %v1360_v7, 0.0  ;;  %v6291_v32 = vmax.f32 %v3167_v27, 0.0  ;;  %v6300_v40 = vmax.f32 %v3169_v33, 0.0  ;;  %v3170_v41 = vsub.f32 %v6237_v60, %v5704_v28 }
  0xb0   : > { %v1393_v16 = vpack.c.bf16 %v1362_v9, %v1361_v61  ;;  %v1397_v18 = vpack.c.bf16 %v6254_v12, %v6241_v1  ;;  %v1398_v19 = vpack.c.bf16 %v6256_v13, %v6243_v3  ;;  %v1399_v23 = vpack.c.bf16 %v6262_v17, %v6252_v10 }
  0xb1   : > { %v1400_v26 = vpack.c.bf16 %v6268_v20, %v6258_v14  ;;  %v3210_v39 = vpack.c.bf16 %v6291_v32, %v6285_v29  ;;  %v3171_v43 = vsub.f32 %v6260_v15, %v5704_v28  ;;  %v3173_v46 = vsub.f32 %v6260_v15, %v5705_v31  ;;  %v5476_v20 = vld [vmem:[%s8391_s12 + $0x38] sm:$0xff] }
  0xb2   : > { %1457 = vmatmul.bf16.vlgmr.msra.gmra.mxu1 %v1393_v16  ;;  %v3211_v47 = vpack.c.bf16 %v6300_v40, %v6296_v37  ;;  %v6313_v48 = vmax.f32 %v3170_v41, 0.0  ;;  %v1363_v53 = vmax.f32 %v1347_v35, 0.0  ;;  %v1364_v54 = vmax.f32 %v1348_v36, 0.0  ;;  %v1218_v7 = vpop.permute.xlu2 %1217 }
  0xb3   : > { %v6315_v49 = vmax.f32 %v3171_v43, 0.0  ;;  %v6319_v51 = vmax.f32 %v3173_v46, 0.0  ;;  %v1211_v61 = vperm.slane %v6307_v44, 4  ;;  %v1199_v4 = vmul.f32 %v1198_v59, %v1192_v56  ;;  %1933 = vmatpush.bf16.msrb.mxu1 %v5476_v20 }
  0xb4   : > { %v1394_v0 = vpack.c.bf16 %v1364_v54, %v1363_v53  ;;  %v1224_v5 = vperm.slane %v6307_v44, 5  ;;  %v1121_v28 = vmul.f32 %v1119_v52, %v1117_v11  ;;  %v1349_v42 = vsub.f32 %v6211_v38, %v5676_v22  ;;  %v5677_v11 = vld [vmem:[%s8465_s8 + $0x3] ss:$0 sm:$0xff]  ;;  %s5897_s8 = scalar_lea.hbm %s8502_s27, 32 }
  0xb5   : > { %v3212_v55 = vpack.c.bf16 %v6315_v49, %v6313_v48  ;;  %v3213_v57 = vpack.c.bf16 %v6319_v51, %v6317_v50  ;;  %v1212_v8 = vmul.f32 %v1211_v61, %v1205_v34  ;;  %v1350_v31 = vsub.f32 %v6234_v58, %v5676_v22 }
  0xb6   : > { %v1225_v21 = vmul.f32 %v1224_v5, %v1218_v7  ;;  %v1209_v27 = vpop.permute.xlu1 %1208  ;;  %v1200_v36 = vmul.f32 %v1198_v59, %v1196_v62  ;;  %v1365_v46 = vmax.f32 %v1349_v42, 0.0  ;;  %v1351_v52 = vsub.f32 %v6211_v38, %v5677_v11  ;;  %v5471_v42 = vld [vmem:[%s8391_s12 + $0x10] sm:$0xff] }
  0xb7   : > { %v1213_v41 = vmul.f32 %v1211_v61, %v1209_v27  ;;  %v1366_v53 = vmax.f32 %v1350_v31, 0.0  ;;  %v1352_v59 = vsub.f32 %v6234_v58, %v5677_v11  ;;  %v5945_v38 = vmov 128.0   ;;  %v5474_v27 = vld [vmem:[%s8391_s12 + $0x28] sm:$0xff] }
  0xb8   : > { %v1222_v35 = vpop.permute.xlu0 %1221  ;;  %v1367_v62 = vmax.f32 %v1351_v52, 0.0  ;;  %5714 = vrcp.f32 %v5945_v38  ;;  %v5470_v31 = vld [vmem:[%s8391_s12 + $0x8] sm:$0xff] }
  0xb9   : > { %v1226_v45 = vmul.f32 %v1224_v5, %v1222_v35  ;;  %v1395_v56 = vpack.c.bf16 %v1366_v53, %v1365_v46  ;;  %v5469_v35 = vld [vmem:[%s8391_s12] sm:$0xff] }
  0xbe   : > { %v5715_v58 = vpop.eup %5714 }
  0xbf   : > { %vm1238_vm0 = vweird.f32 %v5715_v58 }
  0xc2   : > { %1462 = vmatmul.bf16.gmra.mxu1 %v1394_v0  ;;  %v1368_v0 = vmax.f32 %v1352_v59, 0.0 }
  0xc4   : > { %v1185_v6 = vpop.f32.mrf.mxu0  ;;  %v1396_v61 = vpack.c.bf16 %v1368_v0, %v1367_v62 }
  0xc5   : > { %v1186_v9 = vadd.f32 %v1185_v6, %v1120_v63 }
  0xc7   : > { %v1201_v16 = vadd.f32 %v1199_v4, %v1186_v9  ;;  %v1234_v4 = vmul.f32 128.0, %v5715_v58 }
  0xc9   : > { %v1214_v24 = vadd.f32 %v1212_v8, %v1201_v16  ;;  %v1235_v1 = vsub.f32 1.0, %v1234_v4 }
  0xcb   : > { %v1227_v30 = vadd.f32 %v1225_v21, %v1214_v24  ;;  %v1236_v12 = vmul.f32 %v5715_v58, %v1235_v1  ;;  %v5475_v21 = vld [vmem:[%s8391_s12 + $0x30] sm:$0xff] }
  0xcc   : > { %v1187_v33 = vpop.f32.mrf.mxu0  ;;  %1934 = vmatpush.bf16.msrb.mxu1 %v5475_v21 }
  0xcd   : > { %v1188_v34 = vadd.f32 %v1187_v33, %v1121_v28  ;;  %1229 = vadd.xlane.f32.xlu1 %v1227_v30  ;;  %v1237_v13 = vadd.f32 %v5715_v58, %v1236_v12  ;;  %v5473_v28 = vld [vmem:[%s8391_s12 + $0x20] sm:$0xff] }
  0xcf   : > { %v1202_v43 = vadd.f32 %v1200_v36, %v1188_v34  ;;  %v6357_v10 = vsel %vm1238_vm0, %v5715_v58, %v1237_v13  ;;  %v1276_v58 = vperm.slane %v6307_v44, 0  ;;  %v1279_v13 = vperm.slane %v6307_v44, 1 }
  0xd0   : > { %1935 = vmatpush.bf16.msrb.mxu1 %v5474_v27 }
  0xd1   : > { %v1215_v54 = vadd.f32 %v1213_v41, %v1202_v43 }
  0xd2   : > { %1467 = vmatmul.bf16.gmra.mxu1 %v1395_v56 }
  0xd3   : > { %v1228_v63 = vadd.f32 %v1226_v45, %v1215_v54 }
  0xd4   : > { %1936 = vmatpush.bf16.msrb.mxu1 %v5473_v28 }
  0xd5   : > { %1231 = vadd.xlane.f32.xlu2 %v1228_v63 }
  0xe2   : > { %1472 = vmatmul.bf16.gmra.mxu1 %v1396_v61 }
  0xf2   : > { %1477 = vmatmul.bf16.gmra.mxu1 %v1397_v18 }
 0x102   : > { %1482 = vmatmul.bf16.gmra.mxu1 %v1398_v19 }
 0x112   : > { %1487 = vmatmul.bf16.gmra.mxu1 %v1399_v23 }
 0x122   : > { %1492 = vmatmul.bf16.gmra.mxu1 %v1400_v26 }
 0x12f   : > { %v6352_v5 = vpop.f32.mrf.mxu1 }
 0x130   : > { %1498 = vadd.xlane.f32.xlu1 %v6352_v5 }
 0x137   : > { %v6355_v3 = vpop.f32.mrf.mxu1 }
 0x13f   : > { %v6360_v18 = vpop.f32.mrf.mxu1 }
 0x140   : > { %v1230_v17 = vpop.xlane.xlu1 %1229 }
 0x141   : > { %v1240_v14 = vmul.f32 %v6357_v10, %v1230_v17 }
 0x143   : > { %v1242_v19 = vsub.f32 %v1227_v30, %v1240_v14  ;;  %v5472_v30 = vld [vmem:[%s8391_s12 + $0x18] sm:$0xff] }
 0x144   : > { %1937 = vmatpush.bf16.msrb.mxu1 %v5472_v30 }
 0x145   : > { %v1244_v23 = vmul.f32 %v1242_v19, %v1242_v19 }
 0x147   : > { %1246 = vadd.xlane.f32.xlu0 %v1244_v23  ;;  %v6366_v7 = vpop.f32.mrf.mxu1 }
 0x148   : > { %v1232_v26 = vpop.xlane.xlu2 %1231  ;;  %1938 = vmatpush.bf16.msrb.mxu1 %v5471_v42 }
 0x149   : > { %v1241_v6 = vmul.f32 %v6357_v10, %v1232_v26 }
 0x14b   : > { %v1243_v8 = vsub.f32 %v1228_v63, %v1241_v6 }
 0x14c   : > { %1939 = vmatpush.bf16.msrb.mxu1 %v5470_v31 }
 0x14d   : > { %v1245_v9 = vmul.f32 %v1243_v8, %v1243_v8 }
 0x14f   : > { %1248 = vadd.xlane.f32.xlu2 %v1245_v9  ;;  %1502 = vadd.xlane.f32.xlu0 %v6360_v18  ;;  %v6369_v16 = vpop.f32.mrf.mxu1 }
 0x150   : > { %1940 = vmatpush.bf16.msrb.mxu1 %v5469_v35 }
 0x157   : > { %1500 = vadd.xlane.f32.xlu2 %v6355_v3  ;;  %v6375_v22 = vpop.f32.mrf.mxu1 }
 0x158   : > { %1508 = vadd.xlane.f32.xlu0 %v6375_v22 }
 0x15f   : > { %v6378_v24 = vpop.f32.mrf.mxu1 }
 0x160   : > { %1510 = vadd.xlane.f32.xlu0 %v6378_v24 }
 0x167   : > { %v6416_v44 = vpop.f32.mrf.mxu1 }
 0x1ba   : > { %v1247_v33 = vpop.xlane.xlu0 %1246 }
 0x1bb   : > { %v1250_v36 = vmul.f32 %v1247_v33, %v6357_v10 }
 0x1bd   : > { %v1252_v34 = vadd.f32 1e-05, %v1250_v36  ;;  %v1499_v36 = vpop.xlane.xlu1 %1498 }
 0x1bf   : > { %5716 = vrsqrt.f32 %v1252_v34  ;;  %vm1260_vm2 = vweird.f32 %v1252_v34 }
 0x1c2   : > { %v1249_v41 = vpop.xlane.xlu2 %1248 }
 0x1c3   : > { %v1251_v43 = vmul.f32 %v1249_v41, %v6357_v10 }
 0x1c5   : > { %v5717_v45 = vpop.eup %5716  ;;  %v1253_v46 = vadd.f32 1e-05, %v1251_v43 }
 0x1c6   : > { %v1255_v53 = vmul.f32 %v5717_v45, %v1252_v34  ;;  %vm1261_vm1 = vweird.f32 %v5717_v45  ;;  %v1530_v34 = vmul.f32 %v1499_v36, %v6357_v10 }
 0x1c7   : > { %5718 = vrsqrt.f32 %v1253_v46  ;;  %vm1262_vm3 = vmor %vm1260_vm2, %vm1261_vm1  ;;  %vm1270_vm5 = vweird.f32 %v1253_v46 }
 0x1c8   : > { %v1256_v54 = vmul.f32 %v5717_v45, %v1255_v53  ;;  %v6437_v43 = vsub.f32 %v6352_v5, %v1530_v34  ;;  %v5479_v34 = vld [vmem:[%s8392_s13 + $0x10] sm:$0xff] }
 0x1ca   : > { %v1257_v56 = vmul.f32 0.5, %v1256_v54  ;;  %v1562_v53 = vmul.f32 %v6437_v43, %v6437_v43 }
 0x1cc   : > { %v1258_v63 = vsub.f32 1.5, %v1257_v56  ;;  %v1503_v56 = vpop.xlane.xlu0 %1502 }
 0x1cd   : > { %v5719_v11 = vpop.eup %5718 }
 0x1ce   : > { %v1259_v52 = vmul.f32 %v5717_v45, %v1258_v63  ;;  %v1265_v59 = vmul.f32 %v5719_v11, %v1253_v46  ;;  %vm1271_vm4 = vweird.f32 %v5719_v11  ;;  %v1532_v63 = vmul.f32 %v1503_v56, %v6357_v10  ;;  %v5478_v56 = vld [vmem:[%s8392_s13 + $0x8] sm:$0xff] }
 0x1cf   : > { %vm1272_vm6 = vmor %vm1270_vm5, %vm1271_vm4 }
 0x1d0   : > { %v1263_v62 = vsel %vm1262_vm3, %v5717_v45, %v1259_v52  ;;  %v1266_v0 = vmul.f32 %v5719_v11, %v1265_v59  ;;  %v1501_v45 = vpop.xlane.xlu2 %1500  ;;  %v6451_v5 = vsub.f32 %v6360_v18, %v1532_v63  ;;  %v5483_v59 = vld [vmem:[%s8392_s13 + $0x30] sm:$0xff] }
 0x1d1   : > { %v1274_v38 = vmul.f32 %v1263_v62, %v1242_v19  ;;  %v1531_v46 = vmul.f32 %v1501_v45, %v6357_v10 }
 0x1d2   : > { %v1267_v61 = vmul.f32 0.5, %v1266_v0  ;;  %v1564_v52 = vmul.f32 %v6451_v5, %v6451_v5  ;;  %v5482_v0 = vld [vmem:[%s8392_s13 + $0x28] sm:$0xff] }
 0x1d3   : > { %v1277_v12 = vmul.f32 %v1276_v58, %v1274_v38  ;;  %v6444_v54 = vsub.f32 %v6355_v3, %v1531_v46  ;;  %v5484_v3 = vld [vmem:[%s8392_s13 + $0x38] sm:$0xff] }
 0x1d4   : > { %v1268_v4 = vsub.f32 1.5, %v1267_v61  ;;  %2067 = vmatpush.bf16.msra.mxu3 %v5484_v3  ;;  %v1509_v45 = vpop.xlane.xlu0 %1508 }
 0x1d5   : > { %v6403_v23 = vadd.f32 %v1279_v13, %v1277_v12  ;;  %v1535_v3 = vmul.f32 %v1509_v45, %v6357_v10 }
 0x1d6   : > { %v1269_v1 = vmul.f32 %v5719_v11, %v1268_v4 }
 0x1d7   : > { %v1282_v6 = vmax.f32 %v6403_v23, 0.0 }
 0x1d8   : > { %v1273_v17 = vsel %vm1272_vm6, %v5719_v11, %v1269_v1  ;;  %v1563_v11 = vmul.f32 %v6444_v54, %v6444_v54  ;;  %2068 = vmatpush.bf16.msra.mxu3 %v5483_v59 }
 0x1d9   : > { %v1275_v14 = vmul.f32 %v1273_v17, %v1243_v8  ;;  %v6418_v8 = vpop.f32.mrf.mxu1  ;;  %v5480_v17 = vld [vmem:[%s8392_s13 + $0x18] sm:$0xff] }
 0x1db   : > { %v1278_v20 = vmul.f32 %v1276_v58, %v1275_v14  ;;  %v5481_v58 = vld [vmem:[%s8392_s13 + $0x20] sm:$0xff] }
 0x1dc   : > { %2069 = vmatpush.bf16.msra.mxu3 %v5482_v0 }
 0x1dd   : > { %v6405_v26 = vadd.f32 %v1279_v13, %v1278_v20 }
 0x1df   : > { %v1283_v19 = vmax.f32 %v6405_v26, 0.0 }
 0x1e0   : > { %2070 = vmatpush.bf16.msra.mxu3 %v5481_v58  ;;  %v5492_v58 = vld [vmem:[%s8393_s14 + $0x38] sm:$0xff] }
 0x1e1   : > { %v6413_v9 = vpack.c.bf16 %v1283_v19, %v1282_v6  ;;  %v6420_v21 = vpop.f32.mrf.mxu1  ;;  %2181 = vmatpush.bf16.msrb.mxu0 %v5492_v58 }
 0x1e3   : > { %1941 = vmatmul.bf16.vlgmr.msrb.gmra.mxu1 %v6413_v9 }
 0x1e4   : > { %2071 = vmatpush.bf16.msra.mxu3 %v5480_v17 }
 0x1e8   : > { %2072 = vmatpush.bf16.msra.mxu3 %v5479_v34 }
 0x1e9   : > { %v6422_v27 = vpop.f32.mrf.mxu1 }
 0x1ec   : > { %2073 = vmatpush.bf16.msra.mxu3 %v5478_v56 }
 0x1f1   : > { %v6424_v28 = vpop.f32.mrf.mxu1 }
 0x1f9   : > { %v6426_v30 = vpop.f32.mrf.mxu1 }
 0x201   : > { %v6428_v42 = vpop.f32.mrf.mxu1 }
 0x209   : > { %v6430_v31 = vpop.f32.mrf.mxu1 }
 0x211   : > { %v6432_v33 = vpop.f32.mrf.mxu1 }
 0x260   : > { %v1942_v35 = vpop.f32.mrf.mxu1 }
 0x261   : > { %1947 = vadd.xlane.f32.xlu1 %v1942_v35 }
 0x268   : > { %v1944_v41 = vpop.f32.mrf.mxu1 }
 0x269   : > { %1504 = vadd.xlane.f32.xlu1 %v6366_v7  ;;  %1949 = vadd.xlane.f32.xlu2 %v1944_v41 }
 0x271   : > { %1506 = vadd.xlane.f32.xlu2 %v6369_v16  ;;  %1578 = vadd.xlane.f32.xlu1 %v1562_v53 }
 0x279   : > { %1580 = vadd.xlane.f32.xlu2 %v1563_v11  ;;  %1512 = vadd.xlane.f32.xlu1 %v6416_v44 }
 0x281   : > { %1582 = vadd.xlane.f32.xlu1 %v1564_v52  ;;  %v5477_v52 = vld [vmem:[%s8392_s13] sm:$0xff] }
 0x282   : > { %2074 = vmatpush.bf16.msra.mxu3 %v5477_v52 }
 0x289   : > { %1516 = vadd.xlane.f32.xlu1 %v6420_v21 }
 0x291   : > { %1518 = vadd.xlane.f32.xlu1 %v6422_v27 }
 0x2d4   : > { %v1948_v18 = vpop.xlane.xlu1 %1947 }
 0x2d5   : > { %v1951_v62 = vmul.f32 %v1948_v18, %v6357_v10 }
 0x2d7   : > { %v6467_v61 = vsub.f32 %v1942_v35, %v1951_v62 }
 0x2d9   : > { %v1955_v38 = vmul.f32 %v6467_v61, %v6467_v61 }
 0x2db   : > { %1957 = vadd.xlane.f32.xlu2 %v1955_v38  ;;  %v6509_v38 = vsub.f32 %v6375_v22, %v1535_v3 }
 0x2dc   : > { %v1950_v4 = vpop.xlane.xlu2 %1949  ;;  %v1505_v1 = vpop.xlane.xlu1 %1504 }
 0x2dd   : > { %v1952_v12 = vmul.f32 %v1950_v4, %v6357_v10  ;;  %v1533_v13 = vmul.f32 %v1505_v1, %v6357_v10  ;;  %v1511_v4 = vpop.xlane.xlu0 %1510 }
 0x2df   : > { %v6479_v14 = vsub.f32 %v1944_v41, %v1952_v12  ;;  %v6482_v20 = vsub.f32 %v6366_v7, %v1533_v13 }
 0x2e1   : > { %v1956_v35 = vmul.f32 %v6479_v14, %v6479_v14  ;;  %v1565_v36 = vmul.f32 %v6482_v20, %v6482_v20 }
 0x2e3   : > { %1959 = vadd.xlane.f32.xlu0 %v1956_v35  ;;  %1584 = vadd.xlane.f32.xlu2 %v1565_v36  ;;  %v1536_v35 = vmul.f32 %v1511_v4, %v6357_v10  ;;  %v1567_v36 = vmul.f32 %v6509_v38, %v6509_v38 }
 0x2e4   : > { %v1507_v46 = vpop.xlane.xlu2 %1506  ;;  %v1579_v41 = vpop.xlane.xlu1 %1578 }
 0x2e5   : > { %v1534_v7 = vmul.f32 %v1507_v46, %v6357_v10  ;;  %v1610_v53 = vmul.f32 %v1579_v41, %v6357_v10 }
 0x2e7   : > { %v1626_v63 = vadd.f32 1e-05, %v1610_v53  ;;  %v6497_v11 = vsub.f32 %v6369_v16, %v1534_v7 }
 0x2e9   : > { %5720 = vrsqrt.f32 %v1626_v63  ;;  %v1566_v59 = vmul.f32 %v6497_v11, %v6497_v11  ;;  %vm1648_vm8 = vweird.f32 %v1626_v63 }
 0x2eb   : > { %1514 = vadd.xlane.f32.xlu0 %v6418_v8  ;;  %1586 = vadd.xlane.f32.xlu2 %v1566_v59 }
 0x2ec   : > { %v1581_v18 = vpop.xlane.xlu2 %1580  ;;  %v1513_v62 = vpop.xlane.xlu1 %1512 }
 0x2ed   : > { %v1611_v16 = vmul.f32 %v1581_v18, %v6357_v10  ;;  %v1537_v0 = vmul.f32 %v1513_v62, %v6357_v10 }
 0x2ef   : > { %v5721_v1 = vpop.eup %5720  ;;  %v1627_v12 = vadd.f32 1e-05, %v1611_v16  ;;  %v6515_v13 = vsub.f32 %v6416_v44, %v1537_v0  ;;  %v6524_v44 = vsub.f32 %v6378_v24, %v1536_v35  ;;  %v6530_v24 = vperm.slane %v6203_v25, 1 }
 0x2f0   : > { %v1643_v17 = vmul.f32 %v5721_v1, %v1626_v63  ;;  %vm1649_vm7 = vweird.f32 %v5721_v1 }
 0x2f1   : > { %5722 = vrsqrt.f32 %v1627_v12  ;;  %v1569_v22 = vmul.f32 %v6515_v13, %v6515_v13  ;;  %vm1650_vm9 = vmor %vm1648_vm8, %vm1649_vm7  ;;  %v1568_v52 = vmul.f32 %v6524_v44, %v6524_v44  ;;  %vm1658_vm11 = vweird.f32 %v1627_v12 }
 0x2f2   : > { %v1644_v34 = vmul.f32 %v5721_v1, %v1643_v17 }
 0x2f3   : > { %1588 = vadd.xlane.f32.xlu0 %v1567_v36  ;;  %1520 = vadd.xlane.f32.xlu2 %v6424_v28 }
 0x2f4   : > { %v1645_v45 = vmul.f32 0.5, %v1644_v34  ;;  %1592 = vadd.xlane.f32.xlu1 %v1569_v22  ;;  %v1583_v46 = vpop.xlane.xlu1 %1582 }
 0x2f6   : > { %v1646_v41 = vsub.f32 1.5, %v1645_v45 }
 0x2f7   : > { %v5723_v7 = vpop.eup %5722 }
 0x2f8   : > { %v1647_v53 = vmul.f32 %v5721_v1, %v1646_v41  ;;  %v1653_v56 = vmul.f32 %v5723_v7, %v1627_v12  ;;  %vm1659_vm10 = vweird.f32 %v5723_v7 }
 0x2f9   : > { %vm1660_vm12 = vmor %vm1658_vm11, %vm1659_vm10 }
 0x2fa   : > { %v1654_v3 = vmul.f32 %v5723_v7, %v1653_v56  ;;  %v1651_v59 = vsel %vm1650_vm9, %v5721_v1, %v1647_v53  ;;  %v6538_v1 = vperm.slane %v6203_v25, 2 }
 0x2fb   : > { %1590 = vadd.xlane.f32.xlu0 %v1568_v52  ;;  %1522 = vadd.xlane.f32.xlu2 %v6426_v30  ;;  %v1802_v0 = vmul.f32 %v1651_v59, %v6437_v43  ;;  %v5491_v52 = vld [vmem:[%s8393_s14 + $0x30] sm:$0xff]  ;;  %v1612_v59 = vmul.f32 %v1583_v46, %v6357_v10  ;;  %v5485_v46 = vld [vmem:[%s8393_s14] sm:$0xff] }
 0x2fc   : > { %v1655_v18 = vmul.f32 0.5, %v1654_v3  ;;  %v1517_v62 = vpop.xlane.xlu1 %1516  ;;  %2182 = vmatpush.bf16.msrb.mxu0 %v5491_v52  ;;  %v5489_v3 = vld [vmem:[%s8393_s14 + $0x20] sm:$0xff] }
 0x2fd   : > { %v1539_v16 = vmul.f32 %v1517_v62, %v6357_v10  ;;  %v1819_v35 = vmul.f32 %v6530_v24, %v1802_v0  ;;  %v1628_v62 = vadd.f32 1e-05, %v1612_v59  ;;  %v5486_v0 = vld [vmem:[%s8393_s14 + $0x8] sm:$0xff] }
 0x2fe   : > { %v1656_v63 = vsub.f32 1.5, %v1655_v18  ;;  %v5488_v18 = vld [vmem:[%s8393_s14 + $0x18] sm:$0xff] }
 0x2ff   : > { %v6535_v58 = vsub.f32 %v6420_v21, %v1539_v16  ;;  %v1836_v34 = vadd.f32 %v6538_v1, %v1819_v35  ;;  %v5487_v16 = vld [vmem:[%s8393_s14 + $0x10] sm:$0xff]  ;;  %5724 = vrsqrt.f32 %v1628_v62  ;;  %vm1668_vm14 = vweird.f32 %v1628_v62 }
 0x300   : > { %v1657_v4 = vmul.f32 %v5723_v7, %v1656_v63  ;;  %v5508_v63 = vld [vmem:[%s8395_s16 + $0x38] sm:$0xff]  ;;  %v5507_v35 = vld [vmem:[%s8395_s16 + $0x30] sm:$0xff] }
 0x301   : > { %v1571_v17 = vmul.f32 %v6535_v58, %v6535_v58  ;;  %v1852_v53 = vmax.f32 %v1836_v34, 0.0 }
 0x302   : > { %v1661_v36 = vsel %vm1660_vm12, %v5723_v7, %v1657_v4 }
 0x303   : > { %1524 = vadd.xlane.f32.xlu0 %v6428_v42  ;;  %1596 = vadd.xlane.f32.xlu2 %v1571_v17  ;;  %v1803_v43 = vmul.f32 %v1661_v36, %v6444_v54 }
 0x304   : > { %v1519_v22 = vpop.xlane.xlu1 %1518 }
 0x305   : > { %v1540_v21 = vmul.f32 %v1519_v22, %v6357_v10  ;;  %v1820_v12 = vmul.f32 %v6530_v24, %v1803_v43  ;;  %v5725_v4 = vpop.eup %5724 }
 0x306   : > { %v1663_v17 = vmul.f32 %v5725_v4, %v1628_v62  ;;  %vm1669_vm13 = vweird.f32 %v5725_v4  ;;  %v5502_v62 = vld [vmem:[%s8395_s16 + $0x8] sm:$0xff] }
 0x307   : > { %v6549_v45 = vsub.f32 %v6422_v27, %v1540_v21  ;;  %v1837_v41 = vadd.f32 %v6538_v1, %v1820_v12  ;;  %v5490_v27 = vld [vmem:[%s8393_s14 + $0x28] sm:$0xff]  ;;  %vm6604_vm15 = vmor %vm1668_vm14, %vm1669_vm13 }
 0x308   : > { %2183 = vmatpush.bf16.msrb.mxu0 %v5490_v27  ;;  %v1664_v43 = vmul.f32 %v5725_v4, %v1663_v17  ;;  %v5506_v21 = vld [vmem:[%s8395_s16 + $0x28] sm:$0xff]  ;;  %v5504_v27 = vld [vmem:[%s8395_s16 + $0x18] sm:$0xff] }
 0x309   : > { %v1572_v7 = vmul.f32 %v6549_v45, %v6549_v45  ;;  %v1853_v56 = vmax.f32 %v1837_v41, 0.0  ;;  %v5505_v41 = vld [vmem:[%s8395_s16 + $0x20] sm:$0xff] }
 0x30a   : > { %v1665_v34 = vmul.f32 0.5, %v1664_v43 }
 0x30b   : > { %1526 = vadd.xlane.f32.xlu0 %v6430_v31  ;;  %1598 = vadd.xlane.f32.xlu2 %v1572_v7  ;;  %v2011_v54 = vpack.c.bf16 %v1853_v56, %v1852_v53 }
 0x30c   : > { %2184 = vmatpush.bf16.msrb.mxu0 %v5489_v3  ;;  %v1666_v56 = vsub.f32 1.5, %v1665_v34 }
 0x30d   : > { %2075 = vmatmul.bf16.vlgmr.msra.gmra.mxu3 %v2011_v54 }
 0x310   : > { %2185 = vmatpush.bf16.msrb.mxu0 %v5488_v18 }
 0x314   : > { %2186 = vmatpush.bf16.msrb.mxu0 %v5487_v16 }
 0x318   : > { %2187 = vmatpush.bf16.msrb.mxu0 %v5486_v0  ;;  %v1667_v0 = vmul.f32 %v5725_v4, %v1666_v56 }
 0x31a   : > { %v1671_v34 = vsel %vm6604_vm15, %v5725_v4, %v1667_v0 }
 0x31c   : > { %2188 = vmatpush.bf16.msrb.mxu0 %v5485_v46 }
 0x320   : > { %2924 = vmatpush.bf16.msra.mxu0 %v5508_v63  ;;  %v5503_v63 = vld [vmem:[%s8395_s16 + $0x10] sm:$0xff] }
 0x324   : > { %2925 = vmatpush.bf16.msra.mxu0 %v5507_v35 }
 0x328   : > { %2926 = vmatpush.bf16.msra.mxu0 %v5506_v21 }
 0x32c   : > { %2927 = vmatpush.bf16.msra.mxu0 %v5505_v41 }
 0x330   : > { %2928 = vmatpush.bf16.msra.mxu0 %v5504_v27 }
 0x334   : > { %2929 = vmatpush.bf16.msra.mxu0 %v5503_v63 }
 0x338   : > { %2930 = vmatpush.bf16.msra.mxu0 %v5502_v62 }
 0x34e   : > { %v1958_v36 = vpop.xlane.xlu2 %1957 }
 0x34f   : > { %v1961_v22 = vmul.f32 %v1958_v36, %v6357_v10 }
 0x351   : > { %v1963_v12 = vadd.f32 1e-05, %v1961_v22 }
 0x353   : > { %5726 = vrsqrt.f32 %v1963_v12  ;;  %vm1971_vm1 = vweird.f32 %v1963_v12 }
 0x356   : > { %v1960_v7 = vpop.xlane.xlu0 %1959  ;;  %v1585_v53 = vpop.xlane.xlu2 %1584 }
 0x357   : > { %v1962_v54 = vmul.f32 %v1960_v7, %v6357_v10  ;;  %v1613_v52 = vmul.f32 %v1585_v53, %v6357_v10 }
 0x359   : > { %v5727_v3 = vpop.eup %5726  ;;  %v6595_v59 = vadd.f32 1e-05, %v1962_v54  ;;  %v6597_v18 = vadd.f32 1e-05, %v1613_v52 }
 0x35a   : > { %v1966_v16 = vmul.f32 %v5727_v3, %v1963_v12  ;;  %vm1972_vm0 = vweird.f32 %v5727_v3 }
 0x35b   : > { %5728 = vrsqrt.f32 %v6595_v59  ;;  %vm6622_vm2 = vmor %vm1971_vm1, %vm1972_vm0  ;;  %vm1981_vm3 = vweird.f32 %v6595_v59  ;;  %vm1678_vm6 = vweird.f32 %v6597_v18 }
 0x35c   : > { %v1967_v46 = vmul.f32 %v5727_v3, %v1966_v16  ;;  %5730 = vrsqrt.f32 %v6597_v18  ;;  %v1804_v16 = vmul.f32 %v1671_v34, %v6451_v5  ;;  %v5501_v5 = vld [vmem:[%s8395_s16] sm:$0xff] }
 0x35d   : > { %2931 = vmatpush.bf16.msra.mxu0 %v5501_v5 }
 0x35e   : > { %v1968_v35 = vmul.f32 0.5, %v1967_v46  ;;  %v1515_v36 = vpop.xlane.xlu0 %1514  ;;  %v1587_v43 = vpop.xlane.xlu2 %1586 }
 0x35f   : > { %v1538_v22 = vmul.f32 %v1515_v36, %v6357_v10  ;;  %v1614_v21 = vmul.f32 %v1587_v43, %v6357_v10  ;;  %v1821_v43 = vmul.f32 %v6530_v24, %v1804_v16 }
 0x360   : > { %v1969_v41 = vsub.f32 1.5, %v1968_v35 }
 0x361   : > { %v5729_v7 = vpop.eup %5728  ;;  %v6615_v53 = vadd.f32 1e-05, %v1614_v21  ;;  %v6618_v56 = vsub.f32 %v6418_v8, %v1538_v22  ;;  %v1987_v22 = vperm.slane %v6203_v25, 3  ;;  %v1990_v21 = vperm.slane %v6203_v25, 4 }
 0x362   : > { %v5731_v54 = vpop.eup %5730  ;;  %v1970_v52 = vmul.f32 %v5727_v3, %v1969_v41  ;;  %v1976_v27 = vmul.f32 %v5729_v7, %v6595_v59  ;;  %vm1982_vm4 = vweird.f32 %v5729_v7 }
 0x363   : > { %v1673_v0 = vmul.f32 %v5731_v54, %v6597_v18  ;;  %5732 = vrsqrt.f32 %v6615_v53  ;;  %v1570_v12 = vmul.f32 %v6618_v56, %v6618_v56  ;;  %vm1679_vm5 = vweird.f32 %v5731_v54  ;;  %vm1983_vm7 = vmor %vm1981_vm3, %vm1982_vm4 }
 0x364   : > { %v1974_v8 = vsel %vm6622_vm2, %v5727_v3, %v1970_v52  ;;  %v1977_v46 = vmul.f32 %v5729_v7, %v1976_v27  ;;  %vm1680_vm8 = vmor %vm1678_vm6, %vm1679_vm5  ;;  %vm1688_vm10 = vweird.f32 %v6615_v53 }
 0x365   : > { %v1674_v63 = vmul.f32 %v5731_v54, %v1673_v0  ;;  %1594 = vadd.xlane.f32.xlu1 %v1570_v12  ;;  %v1985_v52 = vmul.f32 %v1974_v8, %v6467_v61 }
 0x366   : > { %v1978_v17 = vmul.f32 0.5, %v1977_v46  ;;  %v1589_v35 = vpop.xlane.xlu0 %1588  ;;  %v1521_v36 = vpop.xlane.xlu2 %1520 }
 0x367   : > { %v1675_v3 = vmul.f32 0.5, %v1674_v63  ;;  %v1615_v34 = vmul.f32 %v1589_v35, %v6357_v10  ;;  %v1541_v41 = vmul.f32 %v1521_v36, %v6357_v10  ;;  %v1593_v62 = vpop.xlane.xlu1 %1592  ;;  %v1988_v63 = vmul.f32 %v1987_v22, %v1985_v52 }
 0x368   : > { %v1979_v27 = vsub.f32 1.5, %v1978_v17  ;;  %v1617_v4 = vmul.f32 %v1593_v62, %v6357_v10  ;;  %v1838_v62 = vadd.f32 %v6538_v1, %v1821_v43 }
 0x369   : > { %v5733_v16 = vpop.eup %5732  ;;  %v1676_v0 = vsub.f32 1.5, %v1675_v3  ;;  %v6643_v46 = vadd.f32 1e-05, %v1615_v34  ;;  %v6646_v25 = vsub.f32 %v6424_v28, %v1541_v41 }
 0x36a   : > { %v1980_v12 = vmul.f32 %v5729_v7, %v1979_v27  ;;  %v1683_v5 = vmul.f32 %v5733_v16, %v6615_v53  ;;  %v6650_v61 = vadd.f32 1e-05, %v1617_v4  ;;  %v1991_v4 = vadd.f32 %v1990_v21, %v1988_v63 }
 0x36b   : > { %v1677_v59 = vmul.f32 %v5731_v54, %v1676_v0  ;;  %5734 = vrsqrt.f32 %v6643_v46  ;;  %v1573_v8 = vmul.f32 %v6646_v25, %v6646_v25  ;;  %vm1689_vm9 = vweird.f32 %v5733_v16 }
 0x36c   : > { %v1984_v17 = vsel %vm1983_vm7, %v5729_v7, %v1980_v12  ;;  %v1684_v35 = vmul.f32 %v5733_v16, %v1683_v5  ;;  %5736 = vrsqrt.f32 %v6650_v61  ;;  %v1993_v63 = vmax.f32 %v1991_v4, 0.0  ;;  %vm1690_vm11 = vmor %vm1688_vm10, %vm1689_vm9 }
 0x36d   : > { %1600 = vadd.xlane.f32.xlu0 %v1573_v8  ;;  %v1681_v28 = vsel %vm1680_vm8, %v5731_v54, %v1677_v59  ;;  %v1986_v18 = vmul.f32 %v1984_v17, %v6479_v14  ;;  %1528 = vadd.xlane.f32.xlu1 %v6432_v33  ;;  %vm1698_vm13 = vweird.f32 %v6643_v46  ;;  %vm1718_vm2 = vweird.f32 %v6650_v61 }
 0x36e   : > { %v1685_v36 = vmul.f32 0.5, %v1684_v35  ;;  %v1591_v3 = vpop.xlane.xlu0 %1590  ;;  %v1523_v34 = vpop.xlane.xlu2 %1522  ;;  %v1805_v41 = vmul.f32 %v1681_v28, %v6482_v20  ;;  %v1854_v35 = vmax.f32 %v1838_v62, 0.0 }
 0x36f   : > { %v1616_v52 = vmul.f32 %v1591_v3, %v6357_v10  ;;  %v1542_v7 = vmul.f32 %v1523_v34, %v6357_v10  ;;  %v1989_v27 = vmul.f32 %v1987_v22, %v1986_v18 }
 0x370   : > { %v1686_v0 = vsub.f32 1.5, %v1685_v36  ;;  %v1822_v54 = vmul.f32 %v6530_v24, %v1805_v41 }
 0x371   : > { %v5735_v12 = vpop.eup %5734  ;;  %v1632_v14 = vadd.f32 1e-05, %v1616_v52  ;;  %v6664_v5 = vsub.f32 %v6426_v30, %v1542_v7  ;;  %v1992_v59 = vadd.f32 %v1990_v21, %v1989_v27 }
 0x372   : > { %v6666_v8 = vpop.eup %5736  ;;  %v1687_v20 = vmul.f32 %v5733_v16, %v1686_v0  ;;  %v1693_v43 = vmul.f32 %v5735_v12, %v6643_v46  ;;  %v1839_v17 = vadd.f32 %v6538_v1, %v1822_v54  ;;  %vm1699_vm12 = vweird.f32 %v5735_v12 }
 0x373   : > { %v1713_v22 = vmul.f32 %v6666_v8, %v6650_v61  ;;  %5738 = vrsqrt.f32 %v1632_v14  ;;  %v1574_v30 = vmul.f32 %v6664_v5, %v6664_v5  ;;  %v1994_v18 = vmax.f32 %v1992_v59, 0.0  ;;  %vm1700_vm14 = vmor %vm1698_vm13, %vm1699_vm12 }
 0x374   : > { %v1694_v28 = vmul.f32 %v5735_v12, %v1693_v43  ;;  %v1855_v21 = vmax.f32 %v1839_v17, 0.0  ;;  %v1691_v3 = vsel %vm1690_vm11, %v5733_v16, %v1687_v20  ;;  %vm1719_vm0 = vweird.f32 %v6666_v8 }
 0x375   : > { %v1714_v36 = vmul.f32 %v6666_v8, %v1713_v22  ;;  %1602 = vadd.xlane.f32.xlu1 %v1574_v30  ;;  %v2132_v53 = vpack.c.bf16 %v1994_v18, %v1993_v63  ;;  %v1806_v7 = vmul.f32 %v1691_v3, %v6497_v11  ;;  %vm1708_vm1 = vweird.f32 %v1632_v14  ;;  %vm1720_vm4 = vmor %vm1718_vm2, %vm1719_vm0 }
 0x376   : > { %v1695_v34 = vmul.f32 0.5, %v1694_v28  ;;  %v1525_v41 = vpop.xlane.xlu0 %1524  ;;  %v2012_v62 = vpack.c.bf16 %v1855_v21, %v1854_v35 }
 0x377   : > { %v1543_v52 = vmul.f32 %v1525_v41, %v6357_v10  ;;  %2189 = vmatmul.bf16.vlgmr.msrb.gmra.mxu0 %v2132_v53  ;;  %v1715_v0 = vmul.f32 0.5, %v1714_v36  ;;  %v1823_v43 = vmul.f32 %v6530_v24, %v1806_v7 }
 0x378   : > { %v1696_v27 = vsub.f32 1.5, %v1695_v34  ;;  %2080 = vmatmul.bf16.gmra.mxu3 %v2012_v62 }
 0x379   : > { %v5739_v4 = vpop.eup %5738  ;;  %v6679_v54 = vsub.f32 %v6428_v42, %v1543_v52  ;;  %v1716_v35 = vsub.f32 1.5, %v1715_v0  ;;  %v1840_v46 = vadd.f32 %v6538_v1, %v1823_v43 }
 0x37a   : > { %v1697_v59 = vmul.f32 %v5735_v12, %v1696_v27  ;;  %v1703_v16 = vmul.f32 %v5739_v4, %v1632_v14  ;;  %vm1709_vm15 = vweird.f32 %v5739_v4 }
 0x37b   : > { %v1575_v20 = vmul.f32 %v6679_v54, %v6679_v54  ;;  %v1717_v18 = vmul.f32 %v6666_v8, %v1716_v35  ;;  %vm1710_vm3 = vmor %vm1708_vm1, %vm1709_vm15  ;;  %v1856_v34 = vmax.f32 %v1840_v46, 0.0 }
 0x37c   : > { %v1704_v11 = vmul.f32 %v5739_v4, %v1703_v16  ;;  %v1701_v17 = vsel %vm1700_vm14, %v5735_v12, %v1697_v59 }
 0x37d   : > { %1604 = vadd.xlane.f32.xlu2 %v1575_v20  ;;  %v1807_v22 = vmul.f32 %v1701_v17, %v6509_v38  ;;  %v1721_v52 = vsel %vm1720_vm4, %v6666_v8, %v1717_v18  ;;  %v1597_v8 = vpop.xlane.xlu2 %1596 }
 0x37e   : > { %v1705_v63 = vmul.f32 0.5, %v1704_v11  ;;  %v1527_v28 = vpop.xlane.xlu0 %1526  ;;  %v1809_v14 = vmul.f32 %v1721_v52, %v6515_v13 }
 0x37f   : > { %v1544_v42 = vmul.f32 %v1527_v28, %v6357_v10  ;;  %v1824_v30 = vmul.f32 %v6530_v24, %v1807_v22 }
 0x380   : > { %v1706_v21 = vsub.f32 1.5, %v1705_v63  ;;  %v1826_v7 = vmul.f32 %v6530_v24, %v1809_v14 }
 0x381   : > { %v6692_v12 = vsub.f32 %v6430_v31, %v1544_v42  ;;  %v1841_v36 = vadd.f32 %v6538_v1, %v1824_v30 }
 0x382   : > { %v1707_v38 = vmul.f32 %v5739_v4, %v1706_v21  ;;  %v1843_v0 = vadd.f32 %v6538_v1, %v1826_v7 }
 0x383   : > { %v1576_v3 = vmul.f32 %v6692_v12, %v6692_v12  ;;  %v1857_v41 = vmax.f32 %v1841_v36, 0.0 }
 0x384   : > { %v1711_v62 = vsel %vm1710_vm3, %v5739_v4, %v1707_v38  ;;  %v1859_v59 = vmax.f32 %v1843_v0, 0.0 }
 0x385   : > { %1606 = vadd.xlane.f32.xlu0 %v1576_v3  ;;  %v2013_v53 = vpack.c.bf16 %v1857_v41, %v1856_v34  ;;  %v1808_v31 = vmul.f32 %v1711_v62, %v6524_v44  ;;  %v1619_v44 = vmul.f32 %v1597_v8, %v6357_v10 }
 0x387   : > { %2932 = vmatmul.bf16.vlgmr.msra.gmra.mxu0 %v6413_v9  ;;  %v1825_v61 = vmul.f32 %v6530_v24, %v1808_v31  ;;  %v1635_v20 = vadd.f32 1e-05, %v1619_v44  ;;  %v1599_v9 = vpop.xlane.xlu2 %1598 }
 0x388   : > { %2085 = vmatmul.bf16.gmra.mxu3 %v2013_v53  ;;  %v1620_v13 = vmul.f32 %v1599_v9, %v6357_v10 }
 0x389   : > { %v1842_v27 = vadd.f32 %v6538_v1, %v1825_v61  ;;  %5740 = vrsqrt.f32 %v1635_v20  ;;  %vm1738_vm6 = vweird.f32 %v1635_v20 }
 0x38a   : > { %v6708_v17 = vadd.f32 1e-05, %v1620_v13 }
 0x38b   : > { %v1858_v4 = vmax.f32 %v1842_v27, 0.0 }
 0x38c   : > { %5742 = vrsqrt.f32 %v6708_v17  ;;  %vm1748_vm14 = vweird.f32 %v6708_v17 }
 0x38d   : > { %v2014_v16 = vpack.c.bf16 %v1859_v59, %v1858_v4 }
 0x38f   : > { %v5741_v43 = vpop.eup %5740 }
 0x390   : > { %v1733_v11 = vmul.f32 %v5741_v43, %v1635_v20  ;;  %vm1739_vm5 = vweird.f32 %v5741_v43  ;;  %v2076_v27 = vpop.f32.mrf.mxu3 }
 0x391   : > { %vm1740_vm7 = vmor %vm1738_vm6, %vm1739_vm5 }
 0x392   : > { %v1734_v35 = vmul.f32 %v5741_v43, %v1733_v11  ;;  %v6712_v46 = vpop.eup %5742 }
 0x393   : > { %v1743_v34 = vmul.f32 %v6712_v46, %v6708_v17  ;;  %vm1749_vm12 = vweird.f32 %v6712_v46 }
 0x394   : > { %v1735_v28 = vmul.f32 0.5, %v1734_v35  ;;  %vm1750_vm0 = vmor %vm1748_vm14, %vm1749_vm12 }
 0x395   : > { %v1744_v14 = vmul.f32 %v6712_v46, %v1743_v34 }
 0x396   : > { %v1736_v30 = vsub.f32 1.5, %v1735_v28 }
 0x397   : > { %v1745_v8 = vmul.f32 0.5, %v1744_v14 }
 0x398   : > { %2090 = vmatmul.bf16.gmra.mxu3 %v2014_v16  ;;  %v1737_v3 = vmul.f32 %v5741_v43, %v1736_v30 }
 0x399   : > { %v1746_v35 = vsub.f32 1.5, %v1745_v8 }
 0x39a   : > { %v1741_v7 = vsel %vm1740_vm7, %v5741_v43, %v1737_v3 }
 0x3d8   : > { %v1595_v22 = vpop.xlane.xlu1 %1594 }
 0x3d9   : > { %v1618_v63 = vmul.f32 %v1595_v22, %v6357_v10 }
 0x3db   : > { %v1634_v42 = vadd.f32 1e-05, %v1618_v63 }
 0x3dd   : > { %5744 = vrsqrt.f32 %v1634_v42  ;;  %vm1728_vm9 = vweird.f32 %v1634_v42 }
 0x3e0   : > { %v1601_v21 = vpop.xlane.xlu0 %1600  ;;  %v1529_v36 = vpop.xlane.xlu1 %1528 }
 0x3e1   : > { %v1621_v18 = vmul.f32 %v1601_v21, %v6357_v10  ;;  %v1545_v38 = vmul.f32 %v1529_v36, %v6357_v10  ;;  %v1747_v36 = vmul.f32 %v6712_v46, %v1746_v35 }
 0x3e3   : > { %v1637_v41 = vadd.f32 1e-05, %v1621_v18  ;;  %v5745_v62 = vpop.eup %5744  ;;  %v6719_v53 = vsub.f32 %v6432_v33, %v1545_v38  ;;  %v1811_v33 = vmul.f32 %v1741_v7, %v6535_v58  ;;  %v2078_v38 = vpop.f32.mrf.mxu3 }
 0x3e4   : > { %v1723_v52 = vmul.f32 %v5745_v62, %v1634_v42  ;;  %vm1729_vm8 = vweird.f32 %v5745_v62 }
 0x3e5   : > { %5746 = vrsqrt.f32 %v1637_v41  ;;  %v1577_v31 = vmul.f32 %v6719_v53, %v6719_v53  ;;  %vm1730_vm10 = vmor %vm1728_vm9, %vm1729_vm8  ;;  %v1828_v43 = vmul.f32 %v6530_v24, %v1811_v33  ;;  %vm1758_vm13 = vweird.f32 %v1637_v41 }
 0x3e6   : > { %v1724_v61 = vmul.f32 %v5745_v62, %v1723_v52 }
 0x3e7   : > { %1608 = vadd.xlane.f32.xlu1 %v1577_v31  ;;  %v1845_v42 = vadd.f32 %v6538_v1, %v1828_v43 }
 0x3e8   : > { %v1725_v0 = vmul.f32 0.5, %v1724_v61  ;;  %v1603_v4 = vpop.xlane.xlu1 %1602 }
 0x3e9   : > { %v1622_v59 = vmul.f32 %v1603_v4, %v6357_v10 }
 0x3ea   : > { %v1726_v44 = vsub.f32 1.5, %v1725_v0 }
 0x3eb   : > { %v5747_v16 = vpop.eup %5746  ;;  %v6726_v9 = vadd.f32 1e-05, %v1622_v59  ;;  %v1751_v59 = vsel %vm1750_vm0, %v6712_v46, %v1747_v36 }
 0x3ec   : > { %v1753_v20 = vmul.f32 %v5747_v16, %v1637_v41  ;;  %v1727_v13 = vmul.f32 %v5745_v62, %v1726_v44  ;;  %vm1759_vm11 = vweird.f32 %v5747_v16  ;;  %v1861_v41 = vmax.f32 %v1845_v42, 0.0  ;;  %v5683_v44 = vld [vmem:[%s8472_s4 + $0x1] ss:$0 sm:$0xff] }
 0x3ed   : > { %5748 = vrsqrt.f32 %v6726_v9  ;;  %vm1760_vm15 = vmor %vm1758_vm13, %vm1759_vm11  ;;  %vm1768_vm4 = vweird.f32 %v6726_v9 }
 0x3ee   : > { %v1754_v11 = vmul.f32 %v5747_v16, %v1753_v20  ;;  %v1731_v22 = vsel %vm1730_vm10, %v5745_v62, %v1727_v13 }
 0x3ef   : > { %v1810_v58 = vmul.f32 %v1731_v22, %v6618_v56  ;;  %v5682_v56 = vld [vmem:[%s8472_s4] ss:$0 sm:$0xff] }
 0x3f0   : > { %v1755_v63 = vmul.f32 0.5, %v1754_v11  ;;  %v1605_v28 = vpop.xlane.xlu2 %1604 }
 0x3f1   : > { %v1623_v30 = vmul.f32 %v1605_v28, %v6357_v10  ;;  %v1827_v18 = vmul.f32 %v6530_v24, %v1810_v58 }
 0x3f2   : > { %v1756_v21 = vsub.f32 1.5, %v1755_v63 }
 0x3f3   : > { %v1639_v3 = vadd.f32 1e-05, %v1623_v30  ;;  %v6736_v34 = vpop.eup %5748  ;;  %v1844_v52 = vadd.f32 %v6538_v1, %v1827_v18 }
 0x3f4   : > { %v1757_v62 = vmul.f32 %v5747_v16, %v1756_v21  ;;  %v1763_v31 = vmul.f32 %v6736_v34, %v6726_v9  ;;  %v6745_v14 = vpop.f32.mrf.mxu0  ;;  %vm1769_vm2 = vweird.f32 %v6736_v34 }
 0x3f5   : > { %5750 = vrsqrt.f32 %v1639_v3  ;;  %v2195_v61 = vadd.f32 %v6745_v14, %v2076_v27  ;;  %v1860_v7 = vmax.f32 %v1844_v52, 0.0  ;;  %v1812_v27 = vmul.f32 %v1751_v59, %v6549_v45  ;;  %vm1770_vm6 = vmor %vm1768_vm4, %vm1769_vm2 }
 0x3f6   : > { %v1761_v0 = vsel %vm1760_vm15, %v5747_v16, %v1757_v62  ;;  %v1764_v4 = vmul.f32 %v6736_v34, %v1763_v31  ;;  %vm1778_vm3 = vweird.f32 %v1639_v3 }
 0x3f7   : > { %v6750_v33 = vadd.f32 %v5682_v56, %v2195_v61  ;;  %v2015_v17 = vpack.c.bf16 %v1861_v41, %v1860_v7  ;;  %v1813_v8 = vmul.f32 %v1761_v0, %v6646_v25  ;;  %v1829_v28 = vmul.f32 %v6530_v24, %v1812_v27 }
 0x3f8   : > { %v1765_v16 = vmul.f32 0.5, %v1764_v4 }
 0x3f9   : > { %2259 = vadd.xlane.f32.xlu2 %v6750_v33  ;;  %2095 = vmatmul.bf16.gmra.mxu3 %v2015_v17  ;;  %v1830_v43 = vmul.f32 %v6530_v24, %v1813_v8  ;;  %v1846_v42 = vadd.f32 %v6538_v1, %v1829_v28 }
 0x3fa   : > { %v1766_v58 = vsub.f32 1.5, %v1765_v16 }
 0x3fb   : > { %v5751_v20 = vpop.eup %5750  ;;  %v2081_v13 = vpop.f32.mrf.mxu3  ;;  %v1847_v21 = vadd.f32 %v6538_v1, %v1830_v43  ;;  %v1862_v61 = vmax.f32 %v1846_v42, 0.0  ;;  %v5685_v43 = vld [vmem:[%s8472_s4 + $0x3] ss:$0 sm:$0xff] }
 0x3fc   : > { %v1773_v11 = vmul.f32 %v5751_v20, %v1639_v3  ;;  %v2197_v46 = vadd.f32 %v6745_v14, %v2081_v13  ;;  %v6760_v35 = vpop.f32.mrf.mxu0  ;;  %vm1779_vm1 = vweird.f32 %v5751_v20  ;;  %v1767_v36 = vmul.f32 %v6736_v34, %v1766_v58  ;;  %v5684_v3 = vld [vmem:[%s8472_s4 + $0x2] ss:$0 sm:$0xff]  ;;  %v1607_v58 = vpop.xlane.xlu0 %1606 }
 0x3fd   : > { %v2196_v63 = vadd.f32 %v6760_v35, %v2078_v38  ;;  %v1863_v31 = vmax.f32 %v1847_v21, 0.0  ;;  %vm1780_vm5 = vmor %vm1778_vm3, %vm1779_vm1 }
 0x3fe   : > { %v1774_v25 = vmul.f32 %v5751_v20, %v1773_v11  ;;  %v6762_v22 = vadd.f32 %v5683_v44, %v2197_v46  ;;  %v1771_v41 = vsel %vm1770_vm6, %v6736_v34, %v1767_v36 }
 0x3ff   : > { %v6767_v45 = vadd.f32 %v5682_v56, %v2196_v63  ;;  %v2016_v0 = vpack.c.bf16 %v1863_v31, %v1862_v61  ;;  %v1814_v9 = vmul.f32 %v1771_v41, %v6664_v5 }
 0x400   : > { %v1775_v30 = vmul.f32 0.5, %v1774_v25  ;;  %2263 = vadd.xlane.f32.xlu1 %v6762_v22 }
 0x401   : > { %2261 = vadd.xlane.f32.xlu0 %v6767_v45  ;;  %v1831_v34 = vmul.f32 %v6530_v24, %v1814_v9 }
 0x402   : > { %v1776_v18 = vsub.f32 1.5, %v1775_v30  ;;  %v1624_v30 = vmul.f32 %v1607_v58, %v6357_v10 }
 0x403   : > { %v2083_v38 = vpop.f32.mrf.mxu3  ;;  %v1848_v27 = vadd.f32 %v6538_v1, %v1831_v34 }
 0x404   : > { %v1777_v62 = vmul.f32 %v5751_v20, %v1776_v18  ;;  %v2198_v52 = vadd.f32 %v6760_v35, %v2083_v38  ;;  %v1640_v21 = vadd.f32 1e-05, %v1624_v30 }
 0x405   : > { %v1864_v11 = vmax.f32 %v1848_v27, 0.0 }
 0x406   : > { %v6776_v56 = vadd.f32 %v5683_v44, %v2198_v52  ;;  %v1781_v7 = vsel %vm1780_vm5, %v5751_v20, %v1777_v62  ;;  %5752 = vrsqrt.f32 %v1640_v21  ;;  %vm1788_vm8 = vweird.f32 %v1640_v21 }
 0x407   : > { %v1815_v4 = vmul.f32 %v1781_v7, %v6679_v54 }
 0x408   : > { %2265 = vadd.xlane.f32.xlu2 %v6776_v56 }
 0x409   : > { %2100 = vmatmul.bf16.gmra.mxu3 %v2016_v0  ;;  %v1832_v8 = vmul.f32 %v6530_v24, %v1815_v4 }
 0x40b   : > { %v2086_v59 = vpop.f32.mrf.mxu3  ;;  %v1849_v54 = vadd.f32 %v6538_v1, %v1832_v8 }
 0x40c   : > { %v2199_v17 = vadd.f32 %v6745_v14, %v2086_v59  ;;  %v5753_v18 = vpop.eup %5752 }
 0x40d   : > { %v1865_v13 = vmax.f32 %v1849_v54, 0.0  ;;  %v1783_v42 = vmul.f32 %v5753_v18, %v1640_v21  ;;  %vm1789_vm7 = vweird.f32 %v5753_v18 }
 0x40e   : > { %v6787_v44 = vadd.f32 %v5684_v3, %v2199_v17  ;;  %vm1790_vm9 = vmor %vm1788_vm8, %vm1789_vm7 }
 0x40f   : > { %v2017_v46 = vpack.c.bf16 %v1865_v13, %v1864_v11  ;;  %v1784_v36 = vmul.f32 %v5753_v18, %v1783_v42 }
 0x410   : > { %2267 = vadd.xlane.f32.xlu0 %v6787_v44 }
 0x411   : > { %v1785_v52 = vmul.f32 0.5, %v1784_v36 }
 0x413   : > { %v2088_v20 = vpop.f32.mrf.mxu3  ;;  %v1786_v61 = vsub.f32 1.5, %v1785_v52 }
 0x414   : > { %v2200_v16 = vadd.f32 %v6760_v35, %v2088_v20 }
 0x415   : > { %v1787_v7 = vmul.f32 %v5753_v18, %v1786_v61 }
 0x416   : > { %v6794_v5 = vadd.f32 %v5684_v3, %v2200_v16 }
 0x417   : > { %v1791_v3 = vsel %vm1790_vm9, %v5753_v18, %v1787_v7  ;;  %v5686_v7 = vld [vmem:[%s8472_s4 + $0x4] ss:$0 sm:$0xff] }
 0x418   : > { %2269 = vadd.xlane.f32.xlu1 %v6794_v5  ;;  %v1816_v59 = vmul.f32 %v1791_v3, %v6692_v12 }
 0x419   : > { %2105 = vmatmul.bf16.gmra.mxu3 %v2017_v46 }
 0x41a   : > { %v1833_v20 = vmul.f32 %v6530_v24, %v1816_v59 }
 0x41b   : > { %v2091_v25 = vpop.f32.mrf.mxu3 }
 0x41c   : > { %v2201_v63 = vadd.f32 %v6745_v14, %v2091_v25  ;;  %v1850_v25 = vadd.f32 %v6538_v1, %v1833_v20 }
 0x41e   : > { %v6801_v28 = vadd.f32 %v5685_v43, %v2201_v63  ;;  %v1866_v42 = vmax.f32 %v1850_v25, 0.0 }
 0x420   : > { %2271 = vadd.xlane.f32.xlu1 %v6801_v28 }
 0x423   : > { %v2093_v12 = vpop.f32.mrf.mxu3 }
 0x424   : > { %v2202_v58 = vadd.f32 %v6760_v35, %v2093_v12 }
 0x45a   : > { %v1609_v38 = vpop.xlane.xlu1 %1608 }
 0x45b   : > { %v1625_v62 = vmul.f32 %v1609_v38, %v6357_v10  ;;  %v6826_v38 = vadd.f32 %v5685_v43, %v2202_v58 }
 0x45d   : > { %v1641_v31 = vadd.f32 1e-05, %v1625_v62 }
 0x45f   : > { %5754 = vrsqrt.f32 %v1641_v31  ;;  %vm1798_vm11 = vweird.f32 %v1641_v31 }
 0x465   : > { %v5755_v41 = vpop.eup %5754 }
 0x466   : > { %v1793_v0 = vmul.f32 %v5755_v41, %v1641_v31  ;;  %vm1799_vm10 = vweird.f32 %v5755_v41 }
 0x467   : > { %vm1800_vm12 = vmor %vm1798_vm11, %vm1799_vm10 }
 0x468   : > { %v1794_v4 = vmul.f32 %v5755_v41, %v1793_v0 }
 0x46a   : > { %v1795_v9 = vmul.f32 0.5, %v1794_v4 }
 0x46c   : > { %v1796_v17 = vsub.f32 1.5, %v1795_v9  ;;  %v2260_v8 = vpop.xlane.xlu2 %2259 }
 0x46d   : > { %v2291_v34 = vmul.f32 %v2260_v8, %v6357_v10 }
 0x46e   : > { %v1797_v54 = vmul.f32 %v5755_v41, %v1796_v17 }
 0x46f   : > { %v6809_v27 = vsub.f32 %v6750_v33, %v2291_v34 }
 0x470   : > { %v1801_v16 = vsel %vm1800_vm12, %v5755_v41, %v1797_v54 }
 0x471   : > { %v2323_v13 = vmul.f32 %v6809_v27, %v6809_v27  ;;  %v1817_v11 = vmul.f32 %v1801_v16, %v6719_v53 }
 0x473   : > { %2339 = vadd.xlane.f32.xlu2 %v2323_v13  ;;  %v1834_v46 = vmul.f32 %v6530_v24, %v1817_v11  ;;  %v2264_v21 = vpop.xlane.xlu1 %2263 }
 0x474   : > { %v2262_v63 = vpop.xlane.xlu0 %2261  ;;  %v2293_v53 = vmul.f32 %v2264_v21, %v6357_v10  ;;  %v5688_v21 = vld [vmem:[%s8472_s4 + $0x6] ss:$0 sm:$0xff] }
 0x475   : > { %v2292_v33 = vmul.f32 %v2262_v63, %v6357_v10  ;;  %v1851_v30 = vadd.f32 %v6538_v1, %v1834_v46 }
 0x476   : > { %v6838_v43 = vsub.f32 %v6762_v22, %v2293_v53 }
 0x477   : > { %v6821_v18 = vsub.f32 %v6767_v45, %v2292_v33  ;;  %v1867_v36 = vmax.f32 %v1851_v30, 0.0 }
 0x478   : > { %v2325_v4 = vmul.f32 %v6838_v43, %v6838_v43 }
 0x479   : > { %v2324_v24 = vmul.f32 %v6821_v18, %v6821_v18  ;;  %v2018_v62 = vpack.c.bf16 %v1867_v36, %v1866_v42 }
 0x47b   : > { %v2266_v52 = vpop.xlane.xlu2 %2265  ;;  %2341 = vadd.xlane.f32.xlu0 %v2324_v24  ;;  %2273 = vadd.xlane.f32.xlu2 %v6826_v38 }
 0x47c   : > { %v2294_v31 = vmul.f32 %v2266_v52, %v6357_v10  ;;  %2110 = vmatmul.bf16.gmra.mxu3 %v2018_v62  ;;  %v2096_v1 = vpop.f32.mrf.mxu3  ;;  %v5500_v52 = vld [vmem:[%s8394_s15 + $0x38] sm:$0xff] }
 0x47d   : > { %v2203_v45 = vadd.f32 %v6745_v14, %v2096_v1  ;;  %2701 = vmatpush.bf16.msra.mxu2 %v5500_v52  ;;  %v5498_v1 = vld [vmem:[%s8394_s15 + $0x28] sm:$0xff] }
 0x47e   : > { %v6832_v61 = vsub.f32 %v6776_v56, %v2294_v31  ;;  %v5499_v31 = vld [vmem:[%s8394_s15 + $0x30] sm:$0xff] }
 0x47f   : > { %v6842_v0 = vadd.f32 %v5686_v7, %v2203_v45  ;;  %v5497_v45 = vld [vmem:[%s8394_s15 + $0x20] sm:$0xff] }
 0x480   : > { %v2326_v41 = vmul.f32 %v6832_v61, %v6832_v61 }
 0x481   : > { %2702 = vmatpush.bf16.msra.mxu2 %v5499_v31 }
 0x482   : > { %2345 = vadd.xlane.f32.xlu1 %v2326_v41  ;;  %v5495_v41 = vld [vmem:[%s8394_s15 + $0x10] sm:$0xff] }
 0x483   : > { %v2268_v3 = vpop.xlane.xlu0 %2267  ;;  %2275 = vadd.xlane.f32.xlu2 %v6842_v0  ;;  %2343 = vadd.xlane.f32.xlu0 %v2325_v4 }
 0x484   : > { %v2295_v56 = vmul.f32 %v2268_v3, %v6357_v10  ;;  %v2098_v9 = vpop.f32.mrf.mxu3 }
 0x485   : > { %v2204_v59 = vadd.f32 %v6760_v35, %v2098_v9  ;;  %2703 = vmatpush.bf16.msra.mxu2 %v5498_v1 }
 0x486   : > { %v6850_v22 = vsub.f32 %v6787_v44, %v2295_v56  ;;  %v5687_v44 = vld [vmem:[%s8472_s4 + $0x5] ss:$0 sm:$0xff]  ;;  %v5494_v56 = vld [vmem:[%s8394_s15 + $0x8] sm:$0xff] }
 0x487   : > { %v6854_v8 = vadd.f32 %v5686_v7, %v2204_v59  ;;  %v5496_v7 = vld [vmem:[%s8394_s15 + $0x18] sm:$0xff]  ;;  %v5493_v59 = vld [vmem:[%s8394_s15] sm:$0xff] }
 0x488   : > { %v2327_v17 = vmul.f32 %v6850_v22, %v6850_v22 }
 0x489   : > { %2704 = vmatpush.bf16.msra.mxu2 %v5497_v45 }
 0x48a   : > { %2347 = vadd.xlane.f32.xlu1 %v2327_v17 }
 0x48b   : > { %v2270_v34 = vpop.xlane.xlu1 %2269  ;;  %2277 = vadd.xlane.f32.xlu0 %v6854_v8 }
 0x48c   : > { %v2296_v54 = vmul.f32 %v2270_v34, %v6357_v10  ;;  %v2101_v20 = vpop.f32.mrf.mxu3 }
 0x48d   : > { %v2205_v16 = vadd.f32 %v6745_v14, %v2101_v20  ;;  %2705 = vmatpush.bf16.msra.mxu2 %v5496_v7 }
 0x48e   : > { %v6860_v13 = vsub.f32 %v6794_v5, %v2296_v54 }
 0x48f   : > { %v6867_v12 = vadd.f32 %v5687_v44, %v2205_v16 }
 0x490   : > { %v2328_v11 = vmul.f32 %v6860_v13, %v6860_v13 }
 0x491   : > { %2706 = vmatpush.bf16.msra.mxu2 %v5495_v41 }
 0x492   : > { %2349 = vadd.xlane.f32.xlu2 %v2328_v11 }
 0x493   : > { %v2272_v46 = vpop.xlane.xlu1 %2271  ;;  %2279 = vadd.xlane.f32.xlu0 %v6867_v12 }
 0x494   : > { %v2297_v25 = vmul.f32 %v2272_v46, %v6357_v10  ;;  %v2103_v63 = vpop.f32.mrf.mxu3 }
 0x495   : > { %v2206_v58 = vadd.f32 %v6760_v35, %v2103_v63  ;;  %2707 = vmatpush.bf16.msra.mxu2 %v5494_v56 }
 0x496   : > { %v6873_v5 = vsub.f32 %v6801_v28, %v2297_v25 }
 0x497   : > { %v6875_v33 = vadd.f32 %v5687_v44, %v2206_v58 }
 0x498   : > { %v2329_v30 = vmul.f32 %v6873_v5, %v6873_v5 }
 0x499   : > { %2281 = vadd.xlane.f32.xlu1 %v6875_v33  ;;  %2708 = vmatpush.bf16.msra.mxu2 %v5493_v59 }
 0x49a   : > { %2351 = vadd.xlane.f32.xlu2 %v2329_v30 }
 0x49c   : > { %v2106_v42 = vpop.f32.mrf.mxu3 }
 0x49d   : > { %v2207_v36 = vadd.f32 %v6745_v14, %v2106_v42 }
 0x49f   : > { %v6884_v53 = vadd.f32 %v5688_v21, %v2207_v36 }
 0x4a1   : > { %2283 = vadd.xlane.f32.xlu1 %v6884_v53 }
 0x4a4   : > { %v2108_v28 = vpop.f32.mrf.mxu3 }
 0x4a5   : > { %v2208_v24 = vadd.f32 %v6760_v35, %v2108_v28 }
 0x4a7   : > { %v6888_v62 = vadd.f32 %v5688_v21, %v2208_v24 }
 0x4a9   : > { %2285 = vadd.xlane.f32.xlu2 %v6888_v62 }
 0x4e6   : > { %v2340_v4 = vpop.xlane.xlu2 %2339 }
 0x4e7   : > { %v2371_v3 = vmul.f32 %v2340_v4, %v6357_v10 }
 0x4e9   : > { %v2387_v9 = vadd.f32 1e-05, %v2371_v3 }
 0x4eb   : > { %5756 = vrsqrt.f32 %v2387_v9  ;;  %vm2409_vm14 = vweird.f32 %v2387_v9 }
 0x4ee   : > { %v2342_v17 = vpop.xlane.xlu0 %2341  ;;  %v2274_v34 = vpop.xlane.xlu2 %2273 }
 0x4ef   : > { %v2372_v54 = vmul.f32 %v2342_v17, %v6357_v10  ;;  %v2298_v20 = vmul.f32 %v2274_v34, %v6357_v10 }
 0x4f1   : > { %v5757_v16 = vpop.eup %5756  ;;  %v2388_v44 = vadd.f32 1e-05, %v2372_v54  ;;  %v6919_v11 = vsub.f32 %v6826_v38, %v2298_v20  ;;  %v5872_v20 = vld [vmem:[%s8467_s9] sm:$0xff] }
 0x4f2   : > { %v2404_v46 = vmul.f32 %v5757_v16, %v2387_v9  ;;  %vm2410_vm13 = vweird.f32 %v5757_v16 }
 0x4f3   : > { %5758 = vrsqrt.f32 %v2388_v44  ;;  %v2330_v25 = vmul.f32 %v6919_v11, %v6919_v11  ;;  %vm6937_vm15 = vmor %vm2409_vm14, %vm2410_vm13  ;;  %vm2419_vm1 = vweird.f32 %v2388_v44 }
 0x4f4   : > { %v2405_v63 = vmul.f32 %v5757_v16, %v2404_v46  ;;  %v6949_v46 = vperm.slane %v5872_v20, 6 }
 0x4f5   : > { %v2346_v58 = vpop.xlane.xlu1 %2345  ;;  %2353 = vadd.xlane.f32.xlu0 %v2330_v25 }
 0x4f6   : > { %v2374_v30 = vmul.f32 %v2346_v58, %v6357_v10  ;;  %v2406_v21 = vmul.f32 0.5, %v2405_v63  ;;  %v2276_v42 = vpop.xlane.xlu2 %2275  ;;  %v2344_v36 = vpop.xlane.xlu0 %2343 }
 0x4f7   : > { %v2299_v24 = vmul.f32 %v2276_v42, %v6357_v10  ;;  %v2373_v38 = vmul.f32 %v2344_v36, %v6357_v10 }
 0x4f8   : > { %v6924_v28 = vadd.f32 1e-05, %v2374_v30  ;;  %v2407_v52 = vsub.f32 1.5, %v2406_v21 }
 0x4f9   : > { %v5759_v31 = vpop.eup %5758  ;;  %v6930_v1 = vsub.f32 %v6842_v0, %v2299_v24  ;;  %v6932_v45 = vadd.f32 1e-05, %v2373_v38 }
 0x4fa   : > { %5760 = vrsqrt.f32 %v6924_v28  ;;  %v2408_v7 = vmul.f32 %v5757_v16, %v2407_v52  ;;  %v2414_v41 = vmul.f32 %v5759_v31, %v2388_v44  ;;  %vm2420_vm0 = vweird.f32 %v5759_v31 }
 0x4fb   : > { %5762 = vrsqrt.f32 %v6932_v45  ;;  %v2331_v4 = vmul.f32 %v6930_v1, %v6930_v1  ;;  %vm2421_vm2 = vmor %vm2419_vm1, %vm2420_vm0  ;;  %vm2429_vm5 = vweird.f32 %v6932_v45  ;;  %vm2439_vm6 = vweird.f32 %v6924_v28 }
 0x4fc   : > { %v2415_v56 = vmul.f32 %v5759_v31, %v2414_v41  ;;  %v2412_v0 = vsel %vm6937_vm15, %v5757_v16, %v2408_v7  ;;  %v5689_v16 = vld [vmem:[%s8472_s4 + $0x7] ss:$0 sm:$0xff] }
 0x4fd   : > { %v2348_v59 = vpop.xlane.xlu1 %2347  ;;  %2355 = vadd.xlane.f32.xlu0 %v2331_v4  ;;  %v2563_v36 = vmul.f32 %v2412_v0, %v6809_v27  ;;  %v6967_v4 = vperm.slane %v5872_v20, 7 }
 0x4fe   : > { %v2375_v17 = vmul.f32 %v2348_v59, %v6357_v10  ;;  %v2416_v34 = vmul.f32 0.5, %v2415_v56  ;;  %v2278_v54 = vpop.xlane.xlu0 %2277 }
 0x4ff   : > { %v2111_v63 = vpop.f32.mrf.mxu3  ;;  %v2300_v58 = vmul.f32 %v2278_v54, %v6357_v10 }
 0x500   : > { %v6944_v9 = vpop.eup %5760  ;;  %v6951_v25 = vadd.f32 1e-05, %v2375_v17  ;;  %v2417_v30 = vsub.f32 1.5, %v2416_v34  ;;  %v2209_v42 = vadd.f32 %v6745_v14, %v2111_v63  ;;  %v2580_v17 = vmul.f32 %v6949_v46, %v2563_v36 }
 0x501   : > { %v2434_v21 = vmul.f32 %v6944_v9, %v6924_v28  ;;  %v5763_v24 = vpop.eup %5762  ;;  %v6963_v38 = vsub.f32 %v6854_v8, %v2300_v58  ;;  %vm2440_vm3 = vweird.f32 %v6944_v9 }
 0x502   : > { %5764 = vrsqrt.f32 %v6951_v25  ;;  %v2418_v52 = vmul.f32 %v5759_v31, %v2417_v30  ;;  %v2424_v41 = vmul.f32 %v5763_v24, %v6932_v45  ;;  %v6970_v3 = vadd.f32 %v5689_v16, %v2209_v42  ;;  %vm7000_vm8 = vmor %vm2439_vm6, %vm2440_vm3 }
 0x503   : > { %v2435_v7 = vmul.f32 %v6944_v9, %v2434_v21  ;;  %v2332_v14 = vmul.f32 %v6963_v38, %v6963_v38  ;;  %vm2430_vm4 = vweird.f32 %v5763_v24  ;;  %vm2449_vm13 = vweird.f32 %v6951_v25 }
 0x504   : > { %v2425_v56 = vmul.f32 %v5763_v24, %v2424_v41  ;;  %v2422_v8 = vsel %vm2421_vm2, %v5759_v31, %v2418_v52  ;;  %2287 = vadd.xlane.f32.xlu2 %v6970_v3  ;;  %v2597_v52 = vadd.f32 %v6967_v4, %v2580_v17  ;;  %vm2431_vm7 = vmor %vm2429_vm5, %vm2430_vm4 }
 0x505   : > { %v2436_v27 = vmul.f32 0.5, %v2435_v7  ;;  %v2350_v59 = vpop.xlane.xlu2 %2349  ;;  %2357 = vadd.xlane.f32.xlu1 %v2332_v14  ;;  %v2564_v0 = vmul.f32 %v2422_v8, %v6821_v18 }
 0x506   : > { %v2376_v44 = vmul.f32 %v2350_v59, %v6357_v10  ;;  %v2426_v54 = vmul.f32 0.5, %v2425_v56  ;;  %v2280_v20 = vpop.xlane.xlu0 %2279  ;;  %v2613_v17 = vmax.f32 %v2597_v52, 0.0 }
 0x507   : > { %v2437_v34 = vsub.f32 1.5, %v2436_v27  ;;  %v2113_v30 = vpop.f32.mrf.mxu3  ;;  %v2301_v31 = vmul.f32 %v2280_v20, %v6357_v10  ;;  %v2581_v21 = vmul.f32 %v6949_v46, %v2564_v0 }
 0x508   : > { %v6978_v63 = vpop.eup %5764  ;;  %v2392_v58 = vadd.f32 1e-05, %v2376_v44  ;;  %v2427_v36 = vsub.f32 1.5, %v2426_v54  ;;  %v2210_v7 = vadd.f32 %v6760_v35, %v2113_v30 }
 0x509   : > { %v2438_v42 = vmul.f32 %v6944_v9, %v2437_v34  ;;  %v2444_v18 = vmul.f32 %v6978_v63, %v6951_v25  ;;  %v6989_v41 = vsub.f32 %v6867_v12, %v2301_v31  ;;  %v2598_v27 = vadd.f32 %v6967_v4, %v2581_v21 }
 0x50a   : > { %5766 = vrsqrt.f32 %v2392_v58  ;;  %v2428_v14 = vmul.f32 %v5763_v24, %v2427_v36  ;;  %v6994_v56 = vadd.f32 %v5689_v16, %v2210_v7  ;;  %vm2450_vm10 = vweird.f32 %v6978_v63 }
 0x50b   : > { %v2333_v59 = vmul.f32 %v6989_v41, %v6989_v41  ;;  %v2614_v45 = vmax.f32 %v2598_v27, 0.0  ;;  %v2442_v28 = vsel %vm7000_vm8, %v6944_v9, %v2438_v42  ;;  %v2445_v16 = vmul.f32 %v6978_v63, %v2444_v18  ;;  %vm2451_vm14 = vmor %vm2449_vm13, %vm2450_vm10 }
 0x50c   : > { %v2432_v12 = vsel %vm2431_vm7, %v5763_v24, %v2428_v14  ;;  %v2282_v8 = vpop.xlane.xlu1 %2281  ;;  %2289 = vadd.xlane.f32.xlu0 %v6994_v56  ;;  %v2566_v30 = vmul.f32 %v2442_v28, %v6832_v61  ;;  %vm2459_vm11 = vweird.f32 %v2392_v58 }
 0x50d   : > { %v2302_v44 = vmul.f32 %v2282_v8, %v6357_v10  ;;  %2359 = vadd.xlane.f32.xlu1 %v2333_v59  ;;  %v2645_v0 = vpack.c.bf16 %v2614_v45, %v2613_v17  ;;  %v2565_v34 = vmul.f32 %v2432_v12, %v6838_v43  ;;  %v2446_v31 = vmul.f32 0.5, %v2445_v16  ;;  %v2352_v52 = vpop.xlane.xlu2 %2351 }
 0x50e   : > { %v2583_v43 = vmul.f32 %v6949_v46, %v2566_v30 }
 0x50f   : > { %v7012_v24 = vsub.f32 %v6875_v33, %v2302_v44  ;;  %2709 = vmatmul.bf16.vlgmr.msra.gmra.mxu2 %v2645_v0  ;;  %v2582_v42 = vmul.f32 %v6949_v46, %v2565_v34  ;;  %v2447_v7 = vsub.f32 1.5, %v2446_v31 }
 0x510   : > { %v5767_v54 = vpop.eup %5766  ;;  %v2600_v35 = vadd.f32 %v6967_v4, %v2583_v43 }
 0x511   : > { %v2454_v20 = vmul.f32 %v5767_v54, %v2392_v58  ;;  %v2334_v9 = vmul.f32 %v7012_v24, %v7012_v24  ;;  %v2599_v27 = vadd.f32 %v6967_v4, %v2582_v42  ;;  %vm2460_vm9 = vweird.f32 %v5767_v54  ;;  %v7047_v42 = vld [vmem:[%s8477_s29] ss:$0 sm:$0xff]  ;;  %s788_s29 = sand.u32 1, %s5931_s2  }
 0x512   : > { %v2448_v12 = vmul.f32 %v6978_v63, %v2447_v7  ;;  %vm2461_vm12 = vmor %vm2459_vm11, %vm2460_vm9  ;;  %v2616_v28 = vmax.f32 %v2600_v35, 0.0  ;;  %s4956_s25 = sshll.u32 %s788_s29, 4  ;;  %s4851_s7 = scalar_lea.sflag [#allocation3], %s788_s29 }
 0x513   : > { %v2455_v21 = vmul.f32 %v5767_v54, %v2454_v20  ;;  %2361 = vadd.xlane.f32.xlu2 %v2334_v9  ;;  %v2615_v17 = vmax.f32 %v2599_v27, 0.0 }
 0x514   : > { %v2284_v18 = vpop.xlane.xlu1 %2283  ;;  %v2452_v16 = vsel %vm2451_vm14, %v6978_v63, %v2448_v12 }
 0x515   : > { %v2456_v36 = vmul.f32 0.5, %v2455_v21  ;;  %v2303_v33 = vmul.f32 %v2284_v18, %v6357_v10  ;;  %v2646_v0 = vpack.c.bf16 %v2616_v28, %v2615_v17  ;;  %v2567_v20 = vmul.f32 %v2452_v16, %v6850_v22 }
 0x516   : > { %v2377_v21 = vmul.f32 %v2352_v52, %v6357_v10 }
 0x517   : > { %v2457_v14 = vsub.f32 1.5, %v2456_v36  ;;  %v7022_v61 = vsub.f32 %v6884_v53, %v2303_v33  ;;  %v2584_v63 = vmul.f32 %v6949_v46, %v2567_v20  ;;  %v7050_v36 = vld [vmem:[%s6150_s1] sm:$0xff] }
 0x518   : > { %v2393_v22 = vadd.f32 1e-05, %v2377_v21  ;;  %v851_v18 = vsub.f32 %v7050_v36, %v7047_v42  ;;  %v7061_v33 = vld [vmem:[%s8478_s5 + $0x1] ss:$0 sm:$0xff]  ;;  %vm979_vm15 = vcmp.eq.f32.partialorder %v7050_v36, %v7047_v42 }
 0x519   : > { %v2458_v59 = vmul.f32 %v5767_v54, %v2457_v14  ;;  %v2335_v8 = vmul.f32 %v7022_v61, %v7022_v61  ;;  %v2601_v31 = vadd.f32 %v6967_v4, %v2584_v63  ;;  %v7064_v14 = vld [vmem:[%s6150_s1 + $0x8] sm:$0xff]  ;;  %v995_v28 = vsel %vm979_vm15, 1, %v5942_v2  ;;  %s5947_s1 = smov 126  }
 0x51a   : > { %5768 = vrsqrt.f32 %v2393_v22  ;;  %v7054_v43 = vmul.f32 %v851_v18, %v851_v18  ;;  %v854_v27 = vsub.f32 %v7064_v14, %v7061_v33  ;;  %vm2469_vm1 = vweird.f32 %v2393_v22 }
 0x51b   : > { %v2462_v45 = vsel %vm2461_vm12, %v5767_v54, %v2458_v59  ;;  %2363 = vadd.xlane.f32.xlu0 %v2335_v8  ;;  %vm982_vm3 = vcmp.eq.f32.partialorder %v7064_v14, %v7061_v33 }
 0x51c   : > { %v2286_v53 = vpop.xlane.xlu2 %2285  ;;  %v2568_v34 = vmul.f32 %v2462_v45, %v6860_v13  ;;  %v7068_v35 = vmul.f32 %v854_v27, %v854_v27 }
 0x51d   : > { %v2304_v44 = vmul.f32 %v2286_v53, %v6357_v10 }
 0x51e   : > { %v2585_v54 = vmul.f32 %v6949_v46, %v2568_v34 }
 0x51f   : > { %v7034_v58 = vsub.f32 %v6888_v62, %v2304_v44  ;;  %2714 = vmatmul.bf16.gmra.mxu2 %v2646_v0  ;;  %v2617_v62 = vmax.f32 %v2601_v31, 0.0 }
 0x520   : > { %v2602_v30 = vadd.f32 %v6967_v4, %v2585_v54  ;;  %v5769_v7 = vpop.eup %5768 }
 0x521   : > { %v2336_v25 = vmul.f32 %v7034_v58, %v7034_v58  ;;  %v2464_v52 = vmul.f32 %v5769_v7, %v2393_v22  ;;  %vm2470_vm0 = vweird.f32 %v5769_v7 }
 0x522   : > { %v2618_v13 = vmax.f32 %v2602_v30, 0.0  ;;  %vm2471_vm2 = vmor %vm2469_vm1, %vm2470_vm0  ;;  %v998_v30 = vsel %vm982_vm3, 1, %v5942_v2 }
 0x523   : > { %2365 = vadd.xlane.f32.xlu1 %v2336_v25  ;;  %v2465_v59 = vmul.f32 %v5769_v7, %v2464_v52 }
 0x524   : > { %v2647_v9 = vpack.c.bf16 %v2618_v13, %v2617_v62 }
 0x525   : > { %v2466_v17 = vmul.f32 0.5, %v2465_v59 }
 0x527   : > { %v2467_v53 = vsub.f32 1.5, %v2466_v17 }
 0x529   : > { %v2468_v0 = vmul.f32 %v5769_v7, %v2467_v53 }
 0x52b   : > { %v2472_v54 = vsel %vm2471_vm2, %v5769_v7, %v2468_v0 }
 0x52c   : > { %v2569_v22 = vmul.f32 %v2472_v54, %v6873_v5 }
 0x52e   : > { %v2586_v17 = vmul.f32 %v6949_v46, %v2569_v22 }
 0x52f   : > { %2719 = vmatmul.bf16.gmra.mxu2 %v2647_v9 }
 0x53c   : > { %899 = vrot.lane.b32.xlu1 %v7054_v43, %s5946_s30 }
 0x544   : > { %905 = vrot.lane.b32.xlu1 %v7068_v35, %s5946_s30 }
 0x54c   : > { %1011 = vrot.lane.b32.xlu1 %v995_v28, %s5947_s1 }
 0x554   : > { %1017 = vrot.lane.b32.xlu1 %v998_v30, %s5947_s1 }
 0x568   : > { %v2354_v12 = vpop.xlane.xlu0 %2353 }
 0x569   : > { %v2378_v8 = vmul.f32 %v2354_v12, %v6357_v10 }
 0x56b   : > { %v2394_v45 = vadd.f32 1e-05, %v2378_v8  ;;  %v7091_v8 = vld [vmem:[%s8478_s5 + $0x2] ss:$0 sm:$0xff] }
 0x56c   : > { %vm983_vm7 = vcmp.eq.f32.partialorder %v7050_v36, %v7091_v8 }
 0x56d   : > { %5770 = vrsqrt.f32 %v2394_v45  ;;  %vm2479_vm5 = vweird.f32 %v2394_v45 }
 0x570   : > { %v2356_v16 = vpop.xlane.xlu0 %2355 }
 0x571   : > { %v2379_v44 = vmul.f32 %v2356_v16, %v6357_v10 }
 0x573   : > { %v5771_v34 = vpop.eup %5770  ;;  %v2395_v20 = vadd.f32 1e-05, %v2379_v44 }
 0x574   : > { %v2474_v25 = vmul.f32 %v5771_v34, %v2394_v45  ;;  %vm2480_vm4 = vweird.f32 %v5771_v34  ;;  %v999_v45 = vsel %vm983_vm7, 1, %v5942_v2 }
 0x575   : > { %5772 = vrsqrt.f32 %v2395_v20  ;;  %vm2481_vm6 = vmor %vm2479_vm5, %vm2480_vm4  ;;  %1019 = vrot.lane.b32.xlu1 %v999_v45, %s5947_s1  ;;  %vm2489_vm9 = vweird.f32 %v2395_v20  ;;  %vm981_vm5 = vcmp.eq.f32.partialorder %v7050_v36, %v7061_v33 }
 0x576   : > { %v2475_v63 = vmul.f32 %v5771_v34, %v2474_v25 }
 0x577   : > { %v2288_v13 = vpop.xlane.xlu2 %2287 }
 0x578   : > { %v2476_v31 = vmul.f32 0.5, %v2475_v63  ;;  %v2358_v62 = vpop.xlane.xlu1 %2357  ;;  %v2305_v9 = vmul.f32 %v2288_v13, %v6357_v10  ;;  %v2603_v63 = vadd.f32 %v6967_v4, %v2586_v17 }
 0x579   : > { %v2380_v21 = vmul.f32 %v2358_v62, %v6357_v10 }
 0x57a   : > { %v2477_v18 = vsub.f32 1.5, %v2476_v31  ;;  %v7086_v52 = vsub.f32 %v6970_v3, %v2305_v9 }
 0x57b   : > { %v5773_v7 = vpop.eup %5772  ;;  %v2396_v27 = vadd.f32 1e-05, %v2380_v21 }
 0x57c   : > { %v2478_v59 = vmul.f32 %v5771_v34, %v2477_v18  ;;  %v2484_v12 = vmul.f32 %v5773_v7, %v2395_v20  ;;  %v2337_v5 = vmul.f32 %v7086_v52, %v7086_v52  ;;  %vm2490_vm8 = vweird.f32 %v5773_v7 }
 0x57d   : > { %5774 = vrsqrt.f32 %v2396_v27  ;;  %vm7116_vm10 = vmor %vm2489_vm9, %vm2490_vm8  ;;  %vm2499_vm12 = vweird.f32 %v2396_v27  ;;  %vm980_vm9 = vcmp.eq.f32.partialorder %v7064_v14, %v7047_v42 }
 0x57e   : > { %v2482_v53 = vsel %vm2481_vm6, %v5771_v34, %v2478_v59  ;;  %v2485_v28 = vmul.f32 %v5773_v7, %v2484_v12  ;;  %2367 = vadd.xlane.f32.xlu2 %v2337_v5  ;;  %v2619_v5 = vmax.f32 %v2603_v63, 0.0 }
 0x57f   : > { %v2570_v3 = vmul.f32 %v2482_v53, %v6919_v11  ;;  %v2290_v44 = vpop.xlane.xlu0 %2289  ;;  %v7108_v11 = vld [vmem:[%s8478_s5 + $0x4] ss:$0 sm:$0xff] }
 0x580   : > { %v2486_v16 = vmul.f32 0.5, %v2485_v28  ;;  %v2360_v0 = vpop.xlane.xlu1 %2359  ;;  %v2306_v25 = vmul.f32 %v2290_v44, %v6357_v10  ;;  %v860_v18 = vsub.f32 %v7064_v14, %v7108_v11  ;;  %vm988_vm15 = vcmp.eq.f32.partialorder %v7064_v14, %v7108_v11 }
 0x581   : > { %v2381_v54 = vmul.f32 %v2360_v0, %v6357_v10  ;;  %v2587_v34 = vmul.f32 %v6949_v46, %v2570_v3 }
 0x582   : > { %v2487_v30 = vsub.f32 1.5, %v2486_v16  ;;  %v7111_v13 = vsub.f32 %v6994_v56, %v2306_v25  ;;  %v7124_v20 = vmul.f32 %v860_v18, %v860_v18 }
 0x583   : > { %v5775_v31 = vpop.eup %5774  ;;  %v2397_v62 = vadd.f32 1e-05, %v2381_v54  ;;  %v2604_v9 = vadd.f32 %v6967_v4, %v2587_v34 }
 0x584   : > { %v2488_v21 = vmul.f32 %v5773_v7, %v2487_v30  ;;  %v2494_v22 = vmul.f32 %v5775_v31, %v2396_v27  ;;  %v2338_v12 = vmul.f32 %v7111_v13, %v7111_v13  ;;  %917 = vrot.lane.b32.xlu1 %v7124_v20, %s5946_s30  ;;  %vm2500_vm11 = vweird.f32 %v5775_v31 }
 0x585   : > { %5776 = vrsqrt.f32 %v2397_v62  ;;  %v2620_v56 = vmax.f32 %v2604_v9, 0.0  ;;  %vm2501_vm13 = vmor %vm2499_vm12, %vm2500_vm11  ;;  %vm2509_vm0 = vweird.f32 %v2397_v62 }
 0x586   : > { %v2492_v17 = vsel %vm7116_vm10, %v5773_v7, %v2488_v21  ;;  %v2495_v53 = vmul.f32 %v5775_v31, %v2494_v22  ;;  %v2362_v28 = vpop.xlane.xlu2 %2361  ;;  %2369 = vadd.xlane.f32.xlu0 %v2338_v12  ;;  %v7133_v7 = vld [vmem:[%s8478_s5 + $0x5] ss:$0 sm:$0xff] }
 0x587   : > { %v2382_v3 = vmul.f32 %v2362_v28, %v6357_v10  ;;  %v2648_v45 = vpack.c.bf16 %v2620_v56, %v2619_v5  ;;  %v2571_v0 = vmul.f32 %v2492_v17, %v6930_v1  ;;  %v861_v30 = vsub.f32 %v7050_v36, %v7133_v7 }
 0x588   : > { %v2496_v16 = vmul.f32 0.5, %v2495_v53  ;;  %v852_v5 = vsub.f32 %v7064_v14, %v7047_v42 }
 0x589   : > { %v2398_v44 = vadd.f32 1e-05, %v2382_v3  ;;  %2724 = vmatmul.bf16.gmra.mxu2 %v2648_v45  ;;  %v2588_v9 = vmul.f32 %v6949_v46, %v2571_v0  ;;  %v7138_v18 = vmul.f32 %v861_v30, %v861_v30  ;;  %v853_v45 = vsub.f32 %v7050_v36, %v7061_v33  ;;  %v5695_v33 = vld [vmem:[%s8478_s5 + $0x3] ss:$0 sm:$0xff] }
 0x58a   : > { %v2497_v25 = vsub.f32 1.5, %v2496_v16  ;;  %v7151_v16 = vmul.f32 %v852_v5, %v852_v5 }
 0x58b   : > { %v5777_v54 = vpop.eup %5776  ;;  %5778 = vrsqrt.f32 %v2398_v44  ;;  %vm2519_vm3 = vweird.f32 %v2398_v44 }
 0x58c   : > { %v2498_v34 = vmul.f32 %v5775_v31, %v2497_v25  ;;  %v2504_v63 = vmul.f32 %v5777_v54, %v2397_v62  ;;  %919 = vrot.lane.b32.xlu1 %v7138_v18, %s5946_s30  ;;  %vm2510_vm14 = vweird.f32 %v5777_v54  ;;  %v856_v62 = vsub.f32 %v7064_v14, %v7091_v8 }
 0x58d   : > { %vm7155_vm1 = vmor %vm2509_vm0, %vm2510_vm14  ;;  %vm984_vm14 = vcmp.eq.f32.partialorder %v7064_v14, %v7091_v8 }
 0x58e   : > { %v2502_v21 = vsel %vm2501_vm13, %v5775_v31, %v2498_v34  ;;  %v2505_v1 = vmul.f32 %v5777_v54, %v2504_v63  ;;  %v2364_v22 = vpop.xlane.xlu0 %2363  ;;  %v2605_v31 = vadd.f32 %v6967_v4, %v2588_v9  ;;  %v1004_v9 = vsel %vm988_vm15, 1, %v5942_v2 }
 0x58f   : > { %v2383_v59 = vmul.f32 %v2364_v22, %v6357_v10  ;;  %v2572_v12 = vmul.f32 %v2502_v21, %v6963_v38  ;;  %vm989_vm13 = vcmp.eq.f32.partialorder %v7050_v36, %v7133_v7  ;;  %vm986_vm15 = vcmp.eq.f32.partialorder %v7064_v14, %v5695_v33 }
 0x590   : > { %v2506_v27 = vmul.f32 0.5, %v2505_v1  ;;  %v2621_v63 = vmax.f32 %v2605_v31, 0.0 }
 0x591   : > { %v5779_v56 = vpop.eup %5778  ;;  %v2399_v17 = vadd.f32 1e-05, %v2383_v59  ;;  %v2589_v53 = vmul.f32 %v6949_v46, %v2572_v12  ;;  %v7163_v12 = vmul.f32 %v853_v45, %v853_v45  ;;  %v855_v45 = vsub.f32 %v7050_v36, %v7091_v8 }
 0x592   : > { %v2507_v28 = vsub.f32 1.5, %v2506_v27  ;;  %v2514_v3 = vmul.f32 %v5779_v56, %v2398_v44  ;;  %vm2520_vm2 = vweird.f32 %v5779_v56  ;;  %v1002_v8 = vsel %vm986_vm15, 1, %v5942_v2 }
 0x593   : > { %5780 = vrsqrt.f32 %v2399_v17  ;;  %v2606_v38 = vadd.f32 %v6967_v4, %v2589_v53  ;;  %vm2521_vm4 = vmor %vm2519_vm3, %vm2520_vm2  ;;  %vm2529_vm7 = vweird.f32 %v2399_v17  ;;  %vm987_vm2 = vcmp.eq.f32.partialorder %v7050_v36, %v7108_v11 }
 0x594   : > { %v2508_v0 = vmul.f32 %v5777_v54, %v2507_v28  ;;  %v2515_v25 = vmul.f32 %v5779_v56, %v2514_v3  ;;  %1029 = vrot.lane.b32.xlu1 %v1004_v9, %s5947_s1  ;;  %vm990_vm3 = vcmp.eq.f32.partialorder %v7064_v14, %v7133_v7 }
 0x595   : > { %v2622_v30 = vmax.f32 %v2606_v38, 0.0  ;;  %v7175_v38 = vmul.f32 %v856_v62, %v856_v62  ;;  %v997_v62 = vsel %vm981_vm5, 1, %v5942_v2 }
 0x596   : > { %v2512_v21 = vsel %vm7155_vm1, %v5777_v54, %v2508_v0  ;;  %v2516_v1 = vmul.f32 0.5, %v2515_v25  ;;  %v2366_v22 = vpop.xlane.xlu1 %2365  ;;  %901 = vrot.lane.b32.xlu2 %v7151_v16, %s5946_s30  ;;  %vm985_vm1 = vcmp.eq.f32.partialorder %v7050_v36, %v5695_v33 }
 0x597   : > { %v2384_v59 = vmul.f32 %v2366_v22, %v6357_v10  ;;  %v2649_v5 = vpack.c.bf16 %v2622_v30, %v2621_v63  ;;  %v2573_v54 = vmul.f32 %v2512_v21, %v6989_v41  ;;  %v7179_v30 = vmul.f32 %v855_v45, %v855_v45 }
 0x598   : > { %v2517_v27 = vsub.f32 1.5, %v2516_v1  ;;  %v858_v45 = vsub.f32 %v7064_v14, %v5695_v33 }
 0x599   : > { %v5781_v53 = vpop.eup %5780  ;;  %v2400_v31 = vadd.f32 1e-05, %v2384_v59  ;;  %2729 = vmatmul.bf16.gmra.mxu2 %v2649_v5  ;;  %v2590_v63 = vmul.f32 %v6949_v46, %v2573_v54 }
 0x59a   : > { %v2518_v28 = vmul.f32 %v5779_v56, %v2517_v27  ;;  %v2524_v3 = vmul.f32 %v5781_v53, %v2399_v17  ;;  %903 = vrot.lane.b32.xlu0 %v7163_v12, %s5946_s30  ;;  %vm2530_vm6 = vweird.f32 %v5781_v53 }
 0x59b   : > { %5782 = vrsqrt.f32 %v2400_v31  ;;  %v2607_v1 = vadd.f32 %v6967_v4, %v2590_v63  ;;  %vm2531_vm8 = vmor %vm2529_vm7, %vm2530_vm6  ;;  %vm2539_vm11 = vweird.f32 %v2400_v31 }
 0x59c   : > { %v2522_v0 = vsel %vm2521_vm4, %v5779_v56, %v2518_v28  ;;  %v2525_v25 = vmul.f32 %v5781_v53, %v2524_v3 }
 0x59d   : > { %v2574_v34 = vmul.f32 %v2522_v0, %v7012_v24  ;;  %v2623_v27 = vmax.f32 %v2607_v1, 0.0  ;;  %v996_v0 = vsel %vm980_vm9, 1, %v5942_v2  ;;  %v859_v1 = vsub.f32 %v7050_v36, %v7108_v11 }
 0x59e   : > { %v2526_v41 = vmul.f32 0.5, %v2525_v25  ;;  %909 = vrot.lane.b32.xlu2 %v7175_v38, %s5946_s30 }
 0x59f   : > { %v2591_v44 = vmul.f32 %v6949_v46, %v2574_v34  ;;  %v7202_v34 = vmul.f32 %v858_v45, %v858_v45  ;;  %v862_v45 = vsub.f32 %v7064_v14, %v7133_v7 }
 0x5a0   : > { %v2527_v9 = vsub.f32 1.5, %v2526_v41  ;;  %v1005_v41 = vsel %vm989_vm13, 1, %v5942_v2 }
 0x5a1   : > { %v5783_v21 = vpop.eup %5782  ;;  %v2608_v22 = vadd.f32 %v6967_v4, %v2591_v44  ;;  %1031 = vrot.lane.b32.xlu1 %v1005_v41, %s5947_s1 }
 0x5a2   : > { %v2528_v24 = vmul.f32 %v5781_v53, %v2527_v9  ;;  %v2534_v56 = vmul.f32 %v5783_v21, %v2400_v31  ;;  %907 = vrot.lane.b32.xlu0 %v7179_v30, %s5946_s30  ;;  %vm2540_vm10 = vweird.f32 %v5783_v21 }
 0x5a3   : > { %v2624_v59 = vmax.f32 %v2608_v22, 0.0  ;;  %vm2541_vm12 = vmor %vm2539_vm11, %vm2540_vm10 }
 0x5a4   : > { %v2535_v5 = vmul.f32 %v5783_v21, %v2534_v56  ;;  %v2532_v54 = vsel %vm2531_vm8, %v5781_v53, %v2528_v24  ;;  %v857_v53 = vsub.f32 %v7050_v36, %v5695_v33  ;;  %v7221_v24 = vmul.f32 %v859_v1, %v859_v1  ;;  %v5697_v56 = vld [vmem:[%s8478_s5 + $0x7] ss:$0 sm:$0xff]  ;;  %v5696_v33 = vld [vmem:[%s8478_s5 + $0x6] ss:$0 sm:$0xff] }
 0x5a5   : > { %v2650_v3 = vpack.c.bf16 %v2624_v59, %v2623_v27  ;;  %v2575_v25 = vmul.f32 %v2532_v54, %v7022_v61  ;;  %v1000_v54 = vsel %vm984_vm14, 1, %v5942_v2  ;;  %vm993_vm0 = vcmp.eq.f32.partialorder %v7050_v36, %v5697_v56 }
 0x5a6   : > { %v2536_v28 = vmul.f32 0.5, %v2535_v5  ;;  %1015 = vrot.lane.b32.xlu2 %v997_v62, %s5947_s1  ;;  %v7210_v61 = vmul.f32 %v857_v53, %v857_v53  ;;  %v866_v5 = vsub.f32 %v7064_v14, %v5697_v56  ;;  %v863_v11 = vsub.f32 %v7050_v36, %v5696_v33 }
 0x5a7   : > { %v2592_v9 = vmul.f32 %v6949_v46, %v2575_v25  ;;  %v864_v25 = vsub.f32 %v7064_v14, %v5696_v33  ;;  %vm992_vm4 = vcmp.eq.f32.partialorder %v7064_v14, %v5696_v33  ;;  %vm991_vm5 = vcmp.eq.f32.partialorder %v7050_v36, %v5696_v33 }
 0x5a8   : > { %v2537_v17 = vsub.f32 1.5, %v2536_v28  ;;  %v7231_v27 = vmul.f32 %v866_v5, %v866_v5  ;;  %v1009_v28 = vsel %vm993_vm0, 1, %v5942_v2  ;;  %v7263_v53 = vmul.f32 %v863_v11, %v863_v11 }
 0x5a9   : > { %2734 = vmatmul.bf16.gmra.mxu2 %v2650_v3  ;;  %v1001_v3 = vsel %vm985_vm1, 1, %v5942_v2  ;;  %v1007_v1 = vsel %vm991_vm5, 1, %v5942_v2  ;;  %vm994_vm6 = vcmp.eq.f32.partialorder %v7064_v14, %v5697_v56 }
 0x5aa   : > { %v2538_v42 = vmul.f32 %v5783_v21, %v2537_v17  ;;  %1013 = vrot.lane.b32.xlu0 %v996_v0, %s5947_s1  ;;  %929 = vrot.lane.b32.xlu1 %v7231_v27, %s5946_s30  ;;  %v1003_v17 = vsel %vm987_vm2, 1, %v5942_v2  ;;  %v7254_v0 = vmul.f32 %v862_v45, %v862_v45 }
 0x5ac   : > { %v2542_v63 = vsel %vm2541_vm12, %v5783_v21, %v2538_v42  ;;  %v2609_v21 = vadd.f32 %v6967_v4, %v2592_v9  ;;  %v7261_v42 = vmul.f32 %v864_v25, %v864_v25 }
 0x5ad   : > { %v2576_v44 = vmul.f32 %v2542_v63, %v7034_v58  ;;  %v865_v63 = vsub.f32 %v7050_v36, %v5697_v56 }
 0x5ae   : > { %913 = vrot.lane.b32.xlu2 %v7202_v34, %s5946_s30  ;;  %v2625_v59 = vmax.f32 %v2609_v21, 0.0  ;;  %v7279_v9 = vpop.permute.xlu1 %899  ;;  %v1010_v21 = vsel %vm994_vm6, 1, %v5942_v2 }
 0x5af   : > { %v2593_v31 = vmul.f32 %v6949_v46, %v2576_v44  ;;  %v7270_v41 = vmul.f32 %v865_v63, %v865_v63  ;;  %v1006_v44 = vsel %vm990_vm3, 1, %v5942_v2 }
 0x5b1   : > { %v2610_v22 = vadd.f32 %v6967_v4, %v2593_v31  ;;  %v1008_v31 = vsel %vm992_vm4, 1, %v5942_v2 }
 0x5b2   : > { %911 = vrot.lane.b32.xlu0 %v7210_v61, %s5946_s30  ;;  %1039 = vrot.lane.b32.xlu1 %v1009_v28, %s5947_s1 }
 0x5b3   : > { %v2626_v58 = vmax.f32 %v2610_v22, 0.0 }
 0x5b5   : > { %v2651_v62 = vpack.c.bf16 %v2626_v58, %v2625_v59 }
 0x5b6   : > { %915 = vrot.lane.b32.xlu2 %v7221_v24, %s5946_s30  ;;  %v906_v7 = vpop.permute.xlu1 %905 }
 0x5b9   : > { %2739 = vmatmul.bf16.gmra.mxu2 %v2651_v62 }
 0x5ba   : > { %1021 = vrot.lane.b32.xlu0 %v1000_v54, %s5947_s1 }
 0x5be   : > { %1025 = vrot.lane.b32.xlu2 %v1002_v8, %s5947_s1  ;;  %v7289_v22 = vpop.permute.xlu1 %1011 }
 0x5bf   : > { %vm1043_vm4 = vcmp.ne.s32.totalorder %v7289_v22, 0 }
 0x5c2   : > { %1023 = vrot.lane.b32.xlu0 %v1001_v3, %s5947_s1 }
 0x5c6   : > { %1027 = vrot.lane.b32.xlu2 %v1003_v17, %s5947_s1  ;;  %v1018_v36 = vpop.permute.xlu1 %1017 }
 0x5c7   : > { %vm1046_vm11 = vcmp.ne.s32.totalorder %v1018_v36, 0 }
 0x5ca   : > { %921 = vrot.lane.b32.xlu0 %v7254_v0, %s5946_s30 }
 0x5ce   : > { %925 = vrot.lane.b32.xlu2 %v7261_v42, %s5946_s30 }
 0x5d2   : > { %923 = vrot.lane.b32.xlu0 %v7263_v53, %s5946_s30 }
 0x5d6   : > { %927 = vrot.lane.b32.xlu2 %v7270_v41, %s5946_s30  ;;  %s8489_s30 = sld [smem:[#allocation19_spill]] }
 0x5da   : > { %1033 = vrot.lane.b32.xlu0 %v1006_v44, %s5947_s1  ;;  %v950_v44 = vadd.f32 %v906_v7, %v7068_v35 }
 0x5dc   : > { %vm966_vm10 = vcmp.le.f32.partialorder %v950_v44, 49.0 }
 0x5dd   : > { %vm1062_vm13 = vmand %vm966_vm10, %vm1046_vm11 }
 0x5de   : > { %1037 = vrot.lane.b32.xlu2 %v1008_v31, %s5947_s1 }
 0x5e2   : > { %1035 = vrot.lane.b32.xlu0 %v1007_v1, %s5947_s1 }
 0x5e7   : > { %v7295_v33 = vpop.permute.xlu1 %1019 }
 0x5ea   : > { %1041 = vrot.lane.b32.xlu0 %v1010_v21, %s5947_s1  ;;  %s8490_s1 = smov %s8489_s30 }
 0x5f1   : > { %v2368_v58 = vpop.xlane.xlu2 %2367 }
 0x5f2   : > { %v2385_v59 = vmul.f32 %v2368_v58, %v6357_v10 }
 0x5f4   : > { %v2401_v5 = vadd.f32 1e-05, %v2385_v59 }
 0x5f6   : > { %5784 = vrsqrt.f32 %v2401_v5  ;;  %vm2549_vm8 = vweird.f32 %v2401_v5 }
 0x5f9   : > { %v902_v62 = vpop.permute.xlu2 %901  ;;  %v2370_v54 = vpop.xlane.xlu0 %2369 }
 0x5fa   : > { %v2386_v8 = vmul.f32 %v2370_v54, %v6357_v10 }
 0x5fc   : > { %v5785_v28 = vpop.eup %5784  ;;  %v2402_v3 = vadd.f32 1e-05, %v2386_v8 }
 0x5fd   : > { %v2544_v14 = vmul.f32 %v5785_v28, %v2401_v5  ;;  %vm2550_vm7 = vweird.f32 %v5785_v28 }
 0x5fe   : > { %5786 = vrsqrt.f32 %v2402_v3  ;;  %vm2551_vm9 = vmor %vm2549_vm8, %vm2550_vm7  ;;  %vm2559_vm14 = vweird.f32 %v2402_v3 }
 0x5ff   : > { %v2545_v56 = vmul.f32 %v5785_v28, %v2544_v14 }
 0x601   : > { %v2546_v2 = vmul.f32 0.5, %v2545_v56  ;;  %v7293_v45 = vpop.permute.xlu2 %909  ;;  %v918_v56 = vpop.permute.xlu1 %917 }
 0x603   : > { %v2547_v17 = vsub.f32 1.5, %v2546_v2 }
 0x604   : > { %v5787_v25 = vpop.eup %5786 }
 0x605   : > { %v2548_v11 = vmul.f32 %v5785_v28, %v2547_v17  ;;  %v2554_v63 = vmul.f32 %v5787_v25, %v2402_v3  ;;  %vm2560_vm12 = vweird.f32 %v5787_v25 }
 0x606   : > { %vm2561_vm0 = vmor %vm2559_vm14, %vm2560_vm12 }
 0x607   : > { %v2552_v31 = vsel %vm2551_vm9, %v5785_v28, %v2548_v11  ;;  %v2555_v1 = vmul.f32 %v5787_v25, %v2554_v63  ;;  %v5948_v28 = vmov 0.0  }
 0x608   : > { %v2577_v59 = vmul.f32 %v2552_v31, %v7086_v52  ;;  %v1078_v2 = vsel %vm1062_vm13, 1.0, %v5948_v28  ;;  %vm1047_vm13 = vcmp.ne.s32.totalorder %v7295_v33, 0 }
 0x609   : > { %v2556_v21 = vmul.f32 0.5, %v2555_v1  ;;  %v1016_v58 = vpop.permute.xlu2 %1015 }
 0x60a   : > { %vm1045_vm15 = vcmp.ne.s32.totalorder %v1016_v58, 0  ;;  %v2594_v35 = vmul.f32 %v6949_v46, %v2577_v59  ;;  %v948_v58 = vadd.f32 %v902_v62, %v7151_v16 }
 0x60b   : > { %v2557_v54 = vsub.f32 1.5, %v2556_v21  ;;  %v7309_v21 = vpop.permute.xlu1 %919 }
 0x60c   : > { %v904_v8 = vpop.permute.xlu0 %903  ;;  %vm964_vm6 = vcmp.le.f32.partialorder %v948_v58, 49.0 }
 0x60d   : > { %v2558_v14 = vmul.f32 %v5787_v25, %v2557_v54  ;;  %v949_v5 = vadd.f32 %v904_v8, %v7163_v12  ;;  %v2611_v12 = vadd.f32 %v6967_v4, %v2594_v35 }
 0x60f   : > { %v2562_v7 = vsel %vm2561_vm0, %v5787_v25, %v2558_v14  ;;  %vm965_vm1 = vcmp.le.f32.partialorder %v949_v5, 49.0  ;;  %v947_v25 = vadd.f32 %v7279_v9, %v7054_v43  ;;  %v2627_v31 = vmax.f32 %v2611_v12, 0.0  ;;  %v7329_v12 = vpop.f32.mrf.mxu2 }
 0x610   : > { %vm1061_vm2 = vmand %vm965_vm1, %vm1045_vm15  ;;  %v2578_v52 = vmul.f32 %v2562_v7, %v7111_v13  ;;  %v956_v9 = vadd.f32 %v918_v56, %v7124_v20  ;;  %v952_v5 = vadd.f32 %v7293_v45, %v7175_v38 }
 0x611   : > { %v1077_v36 = vsel %vm1061_vm2, 1.0, %v5948_v28  ;;  %v914_v17 = vpop.permute.xlu2 %913  ;;  %vm963_vm3 = vcmp.le.f32.partialorder %v947_v25, 49.0 }
 0x612   : > { %v5638_v11 = vpack.i.bf16 %v1078_v2, %v1077_v36  ;;  %v2595_v3 = vmul.f32 %v6949_v46, %v2578_v52  ;;  %vm1059_vm5 = vmand %vm963_vm3, %vm1043_vm4  ;;  %vm972_vm9 = vcmp.le.f32.partialorder %v956_v9, 49.0  ;;  %vm968_vm2 = vcmp.le.f32.partialorder %v952_v5, 49.0 }
 0x613   : > { %v1030_v14 = vpop.permute.xlu1 %1029 }
 0x614   : > { %v908_v63 = vpop.permute.xlu0 %907  ;;  %5639 = vperm.xlu1 %5637, %v5638_v11   ;;  %v2612_v44 = vadd.f32 %v6967_v4, %v2595_v3  ;;  %v1075_v4 = vsel %vm1059_vm5, 1.0, %v5948_v28  ;;  %vm1052_vm10 = vcmp.ne.s32.totalorder %v1030_v14, 0 }
 0x615   : > { %v951_v62 = vadd.f32 %v908_v63, %v7179_v30  ;;  %vm1068_vm11 = vmand %vm972_vm9, %vm1052_vm10  ;;  %v954_v30 = vadd.f32 %v914_v17, %v7202_v34 }
 0x616   : > { %v2628_v1 = vmax.f32 %v2612_v44, 0.0  ;;  %v1084_v56 = vsel %vm1068_vm11, 1.0, %v5948_v28 }
 0x617   : > { %vm967_vm14 = vcmp.le.f32.partialorder %v951_v62, 49.0  ;;  %vm970_vm5 = vcmp.le.f32.partialorder %v954_v30, 49.0 }
 0x618   : > { %v2652_v13 = vpack.c.bf16 %v2628_v1, %v2627_v31  ;;  %vm1063_vm1 = vmand %vm967_vm14, %vm1047_vm13 }
 0x619   : > { %v916_v46 = vpop.permute.xlu2 %915  ;;  %v1079_v38 = vsel %vm1063_vm1, 1.0, %v5948_v28 }
 0x61a   : > { %2744 = vmatmul.bf16.gmra.mxu2 %v2652_v13  ;;  %v955_v16 = vadd.f32 %v916_v46, %v7221_v24  ;;  %v2712_v46 = vpop.f32.mrf.mxu2 }
 0x61b   : > { %v1032_v63 = vpop.permute.xlu1 %1031 }
 0x61c   : > { %v1014_v59 = vpop.permute.xlu0 %1013  ;;  %vm971_vm12 = vcmp.le.f32.partialorder %v955_v16, 49.0 }
 0x61d   : > { %vm1044_vm7 = vcmp.ne.s32.totalorder %v1014_v59, 0 }
 0x61e   : > { %vm1060_vm8 = vmand %vm964_vm6, %vm1044_vm7 }
 0x61f   : > { %v1076_v43 = vsel %vm1060_vm8, 1.0, %v5948_v28 }
 0x620   : > { %v5632_v54 = vpack.i.bf16 %v1076_v43, %v1075_v4 }
 0x621   : > { %v1026_v8 = vpop.permute.xlu2 %1025 }
 0x622   : > { %5633 = vperm.xlu2 %5631, %v5632_v54   ;;  %vm1050_vm6 = vcmp.ne.s32.totalorder %v1026_v8, 0  ;;  %v2715_v14 = vpop.f32.mrf.mxu2 }
 0x623   : > { %vm1066_vm7 = vmand %vm970_vm5, %vm1050_vm6  ;;  %v930_v13 = vpop.permute.xlu1 %929 }
 0x624   : > { %v912_v22 = vpop.permute.xlu0 %911  ;;  %v1082_v34 = vsel %vm1066_vm7, 1.0, %v5948_v28 }
 0x625   : > { %v953_v2 = vadd.f32 %v912_v22, %v7210_v61  ;;  %v957_v61 = vadd.f32 %v7309_v21, %v7138_v18  ;;  %v962_v22 = vadd.f32 %v930_v13, %v7231_v27 }
 0x627   : > { %vm969_vm8 = vcmp.le.f32.partialorder %v953_v2, 49.0  ;;  %vm973_vm11 = vcmp.le.f32.partialorder %v957_v61, 49.0 }
 0x629   : > { %v1028_v20 = vpop.permute.xlu2 %1027 }
 0x62a   : > { %vm1051_vm15 = vcmp.ne.s32.totalorder %v1028_v20, 0  ;;  %v2717_v20 = vpop.f32.mrf.mxu2 }
 0x62b   : > { %vm1067_vm0 = vmand %vm971_vm12, %vm1051_vm15  ;;  %vm1053_vm12 = vcmp.ne.s32.totalorder %v1032_v63, 0 }
 0x62c   : > { %v1083_v24 = vsel %vm1067_vm0, 1.0, %v5948_v28  ;;  %v1022_v35 = vpop.permute.xlu0 %1021  ;;  %vm1069_vm13 = vmand %vm973_vm11, %vm1053_vm12 }
 0x62d   : > { %v5654_v7 = vpack.i.bf16 %v1084_v56, %v1083_v24  ;;  %vm1048_vm3 = vcmp.ne.s32.totalorder %v1022_v35, 0  ;;  %v1085_v4 = vsel %vm1069_vm13, 1.0, %v5948_v28 }
 0x62e   : > { %vm1064_vm4 = vmand %vm968_vm2, %vm1048_vm3 }
 0x62f   : > { %v1080_v45 = vsel %vm1064_vm4, 1.0, %v5948_v28  ;;  %5655 = vperm.xlu1 %5637, %v5654_v7  }
 0x630   : > { %v5644_v33 = vpack.i.bf16 %v1080_v45, %v1079_v38 }
 0x631   : > { %v926_v11 = vpop.permute.xlu2 %925 }
 0x632   : > { %5645 = vperm.xlu0 %5643, %v5644_v33   ;;  %v960_v58 = vadd.f32 %v926_v11, %v7261_v42  ;;  %v1040_v42 = vpop.permute.xlu1 %1039  ;;  %v2720_v56 = vpop.f32.mrf.mxu2 }
 0x634   : > { %v1024_v52 = vpop.permute.xlu0 %1023  ;;  %vm976_vm1 = vcmp.le.f32.partialorder %v960_v58, 49.0 }
 0x635   : > { %vm1049_vm9 = vcmp.ne.s32.totalorder %v1024_v52, 0 }
 0x636   : > { %vm1065_vm10 = vmand %vm969_vm8, %vm1049_vm9  ;;  %vm1057_vm8 = vcmp.ne.s32.totalorder %v1040_v42, 0 }
 0x637   : > { %v1081_v36 = vsel %vm1065_vm10, 1.0, %v5948_v28  ;;  %vm978_vm10 = vcmp.le.f32.partialorder %v962_v22, 49.0 }
 0x638   : > { %v5649_v17 = vpack.i.bf16 %v1082_v34, %v1081_v36 }
 0x639   : > { %v928_v44 = vpop.permute.xlu2 %927 }
 0x63a   : > { %5650 = vperm.xlu2 %5631, %v5649_v17   ;;  %v961_v21 = vadd.f32 %v928_v44, %v7270_v41  ;;  %v2722_v24 = vpop.f32.mrf.mxu2 }
 0x63c   : > { %v922_v3 = vpop.permute.xlu0 %921  ;;  %vm977_vm7 = vcmp.le.f32.partialorder %v961_v21, 49.0 }
 0x63d   : > { %v958_v31 = vadd.f32 %v922_v3, %v7254_v0  ;;  %vm1073_vm9 = vmand %vm977_vm7, %vm1057_vm8 }
 0x63e   : > { %v1089_v41 = vsel %vm1073_vm9, 1.0, %v5948_v28 }
 0x63f   : > { %vm974_vm14 = vcmp.le.f32.partialorder %v958_v31, 49.0 }
 0x641   : > { %v1038_v59 = vpop.permute.xlu2 %1037 }
 0x642   : > { %vm1056_vm2 = vcmp.ne.s32.totalorder %v1038_v59, 0  ;;  %v2725_v35 = vpop.f32.mrf.mxu2 }
 0x643   : > { %vm1072_vm3 = vmand %vm976_vm1, %vm1056_vm2 }
 0x644   : > { %v924_v25 = vpop.permute.xlu0 %923  ;;  %v1088_v54 = vsel %vm1072_vm3, 1.0, %v5948_v28 }
 0x645   : > { %v959_v18 = vadd.f32 %v924_v25, %v7263_v53 }
 0x647   : > { %vm975_vm4 = vcmp.le.f32.partialorder %v959_v18, 49.0 }
 0x64a   : > { %v2727_v30 = vpop.f32.mrf.mxu2 }
 0x64c   : > { %v1034_v1 = vpop.permute.xlu0 %1033 }
 0x64d   : > { %vm1054_vm15 = vcmp.ne.s32.totalorder %v1034_v1, 0 }
 0x64e   : > { %vm1070_vm0 = vmand %vm974_vm14, %vm1054_vm15 }
 0x64f   : > { %v1086_v43 = vsel %vm1070_vm0, 1.0, %v5948_v28 }
 0x650   : > { %v5659_v9 = vpack.i.bf16 %v1086_v43, %v1085_v4 }
 0x652   : > { %5660 = vperm.xlu2 %5631, %v5659_v9   ;;  %v2730_v7 = vpop.f32.mrf.mxu2 }
 0x654   : > { %v1036_v0 = vpop.permute.xlu0 %1035 }
 0x655   : > { %vm1055_vm5 = vcmp.ne.s32.totalorder %v1036_v0, 0 }
 0x656   : > { %vm1071_vm6 = vmand %vm975_vm4, %vm1055_vm5 }
 0x657   : > { %v1087_v8 = vsel %vm1071_vm6, 1.0, %v5948_v28 }
 0x658   : > { %v5664_v16 = vpack.i.bf16 %v1088_v54, %v1087_v8 }
 0x65a   : > { %5665 = vperm.xlu1 %5637, %v5664_v16   ;;  %v2732_v27 = vpop.f32.mrf.mxu2 }
 0x65c   : > { %v1042_v53 = vpop.permute.xlu0 %1041 }
 0x65d   : > { %vm1058_vm11 = vcmp.ne.s32.totalorder %v1042_v53, 0 }
 0x65e   : > { %vm1074_vm12 = vmand %vm978_vm10, %vm1058_vm11 }
 0x65f   : > { %v1090_v62 = vsel %vm1074_vm12, 1.0, %v5948_v28 }
 0x660   : > { %v5669_v5 = vpack.i.bf16 %v1090_v62, %v1089_v41 }
 0x662   : > { %5670 = vperm.xlu0 %5643, %v5669_v5   ;;  %v2735_v38 = vpop.f32.mrf.mxu2 }
 0x66a   : > { %v2737_v45 = vpop.f32.mrf.mxu2 }
 0x672   : > { %v2740_v33 = vpop.f32.mrf.mxu2 }
 0x67a   : > { %v2742_v25 = vpop.f32.mrf.mxu2 }
 0x67c   : > { %v7344_v2 = vpop.permute.xlu2 %5633 }
 0x67d   : > { %v5636_v11 = vunpack.i.h.bf16 %v7344_v2  ;;  %v5635_v3 = vunpack.i.l.bf16 %v7344_v2 }
 0x67f   : > { %v2847_v13 = vmul.f32 %v5636_v11, %v2712_v46  ;;  %v2846_v58 = vmul.f32 %v5635_v3, %v7329_v12 }
 0x686   : > { %v7346_v52 = vpop.permute.xlu1 %5639 }
 0x687   : > { %v5642_v28 = vunpack.i.h.bf16 %v7346_v52  ;;  %v5641_v36 = vunpack.i.l.bf16 %v7346_v52 }
 0x689   : > { %v2849_v31 = vmul.f32 %v5642_v28, %v2717_v20  ;;  %v2848_v1 = vmul.f32 %v5641_v36, %v2715_v14 }
 0x68b   : > { %v2869_v18 = vadd.f32 %v2849_v31, %v2847_v13  ;;  %v2862_v0 = vadd.f32 %v2848_v1, %v2846_v58 }
 0x694   : > { %v7352_v17 = vpop.permute.xlu2 %5650 }
 0x695   : > { %v8429_v43 = vunpack.i.h.bf16 %v7352_v17  ;;  %v5652_v9 = vunpack.i.l.bf16 %v7352_v17 }
 0x697   : > { %v2853_v54 = vmul.f32 %v8429_v43, %v2727_v30  ;;  %v2852_v12 = vmul.f32 %v5652_v9, %v2725_v35 }
 0x69d   : > { %v2745_v8 = vpop.f32.mrf.mxu2 }
 0x6a1   : > { %v7358_v61 = vpop.permute.xlu1 %5655 }
 0x6a2   : > { %v8428_v16 = vunpack.i.h.bf16 %v7358_v61  ;;  %v5657_v22 = vunpack.i.l.bf16 %v7358_v61 }
 0x6a4   : > { %v7348_v34 = vpop.permute.xlu0 %5645  ;;  %v2855_v35 = vmul.f32 %v8428_v16, %v2732_v27  ;;  %v2854_v30 = vmul.f32 %v5657_v22, %v2730_v7 }
 0x6a5   : > { %v5648_v63 = vunpack.i.h.bf16 %v7348_v34  ;;  %v5647_v44 = vunpack.i.l.bf16 %v7348_v34 }
 0x6a7   : > { %v2851_v59 = vmul.f32 %v5648_v63, %v2722_v24  ;;  %v2850_v4 = vmul.f32 %v5647_v44, %v2720_v56  ;;  %v2933_v24 = vpop.f32.mrf.mxu0 }
 0x6a9   : > { %v2863_v42 = vadd.f32 %v2862_v0, %v2850_v4  ;;  %v2870_v46 = vadd.f32 %v2869_v18, %v2851_v59 }
 0x6ab   : > { %v2864_v62 = vadd.f32 %v2863_v42, %v2852_v12  ;;  %v2871_v5 = vadd.f32 %v2870_v46, %v2853_v54 }
 0x6ac   : > { %v7375_v21 = vpop.permute.xlu2 %5660 }
 0x6ad   : > { %v8426_v53 = vunpack.i.h.bf16 %v7375_v21  ;;  %v5662_v41 = vunpack.i.l.bf16 %v7375_v21  ;;  %v2865_v13 = vadd.f32 %v2864_v62, %v2854_v30  ;;  %v2872_v58 = vadd.f32 %v2871_v5, %v2855_v35  ;;  %v5516_v30 = vld [vmem:[%s8396_s17 + $0x38] sm:$0xff] }
 0x6ae   : > { %3051 = vmatpush.bf16.msrb.mxu0 %v5516_v30 }
 0x6af   : > { %v2857_v31 = vmul.f32 %v8426_v53, %v2737_v45  ;;  %v2856_v1 = vmul.f32 %v5662_v41, %v2735_v38  ;;  %v2747_v45 = vpop.f32.mrf.mxu2 }
 0x6b1   : > { %v2866_v27 = vadd.f32 %v2865_v13, %v2856_v1  ;;  %v2873_v0 = vadd.f32 %v2872_v58, %v2857_v31  ;;  %v5515_v31 = vld [vmem:[%s8396_s17 + $0x30] sm:$0xff] }
 0x6b2   : > { %3052 = vmatpush.bf16.msrb.mxu0 %v5515_v31 }
 0x6cc   : > { %v7381_v14 = vpop.permute.xlu1 %5665 }
 0x6cd   : > { %v8425_v20 = vunpack.i.h.bf16 %v7381_v14  ;;  %v5667_v56 = vunpack.i.l.bf16 %v7381_v14 }
 0x6cf   : > { %v2859_v59 = vmul.f32 %v8425_v20, %v2742_v25  ;;  %v2858_v4 = vmul.f32 %v5667_v56, %v2740_v33  ;;  %v2935_v33 = vpop.f32.mrf.mxu0  ;;  %v5558_v20 = vld [vmem:[%s8402_s23 + $0x8] sm:$0xff] }
 0x6d1   : > { %v2874_v54 = vadd.f32 %v2873_v0, %v2859_v59  ;;  %v2867_v25 = vadd.f32 %v2866_v27, %v2858_v4 }
 0x6d4   : > { %v7401_v18 = vpop.permute.xlu0 %5670 }
 0x6d5   : > { %v8422_v7 = vunpack.i.h.bf16 %v7401_v18  ;;  %v8427_v42 = vunpack.i.l.bf16 %v7401_v18 }
 0x6d7   : > { %v2861_v38 = vmul.f32 %v8422_v7, %v2747_v45  ;;  %v2860_v46 = vmul.f32 %v8427_v42, %v2745_v8  ;;  %v5514_v8 = vld [vmem:[%s8396_s17 + $0x28] sm:$0xff]  ;;  %v5513_v45 = vld [vmem:[%s8396_s17 + $0x20] sm:$0xff] }
 0x6d8   : > { %3053 = vmatpush.bf16.msrb.mxu0 %v5514_v8 }
 0x6d9   : > { %v2875_v12 = vadd.f32 %v2874_v54, %v2861_v38  ;;  %v2868_v62 = vadd.f32 %v2867_v25, %v2860_v46  ;;  %v5512_v38 = vld [vmem:[%s8396_s17 + $0x18] sm:$0xff]  ;;  %v5511_v46 = vld [vmem:[%s8396_s17 + $0x10] sm:$0xff]  ;;  %v5510_v54 = vld [vmem:[%s8396_s17 + $0x8] sm:$0xff] }
 0x6da   : > { %v5509_v25 = vld [vmem:[%s8396_s17] sm:$0xff] }
 0x6db   : > { %v2936_v5 = vadd.f32 %v2935_v33, %v2875_v12  ;;  %v2934_v35 = vadd.f32 %v2933_v24, %v2868_v62  ;;  %v5524_v12 = vld [vmem:[%s8397_s18 + $0x38] sm:$0xff]  ;;  %v5523_v62 = vld [vmem:[%s8397_s18 + $0x30] sm:$0xff]  ;;  %v5522_v33 = vld [vmem:[%s8397_s18 + $0x28] sm:$0xff] }
 0x6dc   : > { %3054 = vmatpush.bf16.msrb.mxu0 %v5513_v45  ;;  %v5517_v45 = vld [vmem:[%s8397_s18] sm:$0xff] }
 0x6dd   : > { %2940 = vadd.xlane.f32.xlu1 %v2936_v5  ;;  %2938 = vadd.xlane.f32.xlu2 %v2934_v35 }
 0x6e0   : > { %3055 = vmatpush.bf16.msrb.mxu0 %v5512_v38 }
 0x6e4   : > { %3056 = vmatpush.bf16.msrb.mxu0 %v5511_v46 }
 0x6e8   : > { %3057 = vmatpush.bf16.msrb.mxu0 %v5510_v54 }
 0x6ec   : > { %3058 = vmatpush.bf16.msrb.mxu0 %v5509_v25 }
 0x6f0   : > { %3262 = vmatpush.bf16.msra.mxu0 %v5524_v12 }
 0x6f4   : > { %3263 = vmatpush.bf16.msra.mxu0 %v5523_v62 }
 0x6f8   : > { %3264 = vmatpush.bf16.msra.mxu0 %v5522_v33 }
 0x750   : > { %v2941_v1 = vpop.xlane.xlu1 %2940  ;;  %v2939_v13 = vpop.xlane.xlu2 %2938 }
 0x751   : > { %v2943_v24 = vmul.f32 %v2941_v1, %v6357_v10  ;;  %v2942_v58 = vmul.f32 %v2939_v13, %v6357_v10  ;;  %v5520_v1 = vld [vmem:[%s8397_s18 + $0x18] sm:$0xff] }
 0x753   : > { %v7420_v59 = vsub.f32 %v2936_v5, %v2943_v24  ;;  %v2944_v4 = vsub.f32 %v2934_v35, %v2942_v58  ;;  %v5521_v5 = vld [vmem:[%s8397_s18 + $0x20] sm:$0xff]  ;;  %v5519_v58 = vld [vmem:[%s8397_s18 + $0x10] sm:$0xff] }
 0x754   : > { %3265 = vmatpush.bf16.msra.mxu0 %v5521_v5  ;;  %v7468_v5 = vld [vmem:[%s8467_s9 + $0x8] sm:$0xff] }
 0x755   : > { %v2947_v27 = vmul.f32 %v7420_v59, %v7420_v59  ;;  %v2946_v0 = vmul.f32 %v2944_v4, %v2944_v4 }
 0x757   : > { %2950 = vadd.xlane.f32.xlu2 %v2947_v27  ;;  %2948 = vadd.xlane.f32.xlu0 %v2946_v0  ;;  %v5518_v27 = vld [vmem:[%s8397_s18 + $0x8] sm:$0xff] }
 0x758   : > { %3266 = vmatpush.bf16.msra.mxu0 %v5520_v1 }
 0x75c   : > { %3267 = vmatpush.bf16.msra.mxu0 %v5519_v58 }
 0x760   : > { %3268 = vmatpush.bf16.msra.mxu0 %v5518_v27 }
 0x764   : > { %3269 = vmatpush.bf16.msra.mxu0 %v5517_v45 }
 0x7ca   : > { %v2949_v35 = vpop.xlane.xlu0 %2948  ;;  %v2951_v30 = vpop.xlane.xlu2 %2950 }
 0x7cb   : > { %v2952_v31 = vmul.f32 %v2949_v35, %v6357_v10  ;;  %v2953_v8 = vmul.f32 %v2951_v30, %v6357_v10 }
 0x7cd   : > { %v2954_v13 = vadd.f32 1e-05, %v2952_v31  ;;  %v2955_v24 = vadd.f32 1e-05, %v2953_v8  ;;  %v2978_v8 = vperm.slane %v7468_v5, 0 }
 0x7cf   : > { %5788 = vrsqrt.f32 %v2954_v13  ;;  %vm2962_vm15 = vweird.f32 %v2954_v13  ;;  %vm2972_vm1 = vweird.f32 %v2955_v24 }
 0x7d0   : > { %5790 = vrsqrt.f32 %v2955_v24 }
 0x7d5   : > { %v5789_v0 = vpop.eup %5788 }
 0x7d6   : > { %v5791_v38 = vpop.eup %5790  ;;  %v2957_v46 = vmul.f32 %v5789_v0, %v2954_v13  ;;  %vm2963_vm13 = vweird.f32 %v5789_v0 }
 0x7d7   : > { %v2967_v54 = vmul.f32 %v5791_v38, %v2955_v24  ;;  %vm2973_vm14 = vweird.f32 %v5791_v38  ;;  %vm2964_vm0 = vmor %vm2962_vm15, %vm2963_vm13  ;;  %v5698_v24 = vld [vmem:[%s8466_s3] ss:$0 sm:$0xff] }
 0x7d8   : > { %v2958_v25 = vmul.f32 %v5789_v0, %v2957_v46  ;;  %vm2974_vm2 = vmor %vm2972_vm1, %vm2973_vm14  ;;  %v2981_v46 = vperm.slane %v7468_v5, 1 }
 0x7d9   : > { %v2968_v12 = vmul.f32 %v5791_v38, %v2967_v54 }
 0x7da   : > { %v2959_v62 = vmul.f32 0.5, %v2958_v25 }
 0x7db   : > { %v2969_v33 = vmul.f32 0.5, %v2968_v12 }
 0x7dc   : > { %v2960_v35 = vsub.f32 1.5, %v2959_v62 }
 0x7dd   : > { %v2970_v30 = vsub.f32 1.5, %v2969_v33 }
 0x7de   : > { %v2961_v31 = vmul.f32 %v5789_v0, %v2960_v35 }
 0x7df   : > { %v2971_v1 = vmul.f32 %v5791_v38, %v2970_v30 }
 0x7e0   : > { %v2965_v58 = vsel %vm2964_vm0, %v5789_v0, %v2961_v31  ;;  %v3158_v0 = vsub.f32 %v6237_v60, %v5698_v24 }
 0x7e1   : > { %v2976_v27 = vmul.f32 %v2965_v58, %v2944_v4  ;;  %v2975_v45 = vsel %vm2974_vm2, %v5791_v38, %v2971_v1  ;;  %v3159_v4 = vsub.f32 %v6260_v15, %v5698_v24 }
 0x7e2   : > { %v2977_v54 = vmul.f32 %v2975_v45, %v7420_v59  ;;  %v3174_v38 = vmax.f32 %v3158_v0, 0.0  ;;  %v5699_v59 = vld [vmem:[%s8466_s3 + $0x1] ss:$0 sm:$0xff]  ;;  %v5700_v45 = vld [vmem:[%s8466_s3 + $0x2] ss:$0 sm:$0xff] }
 0x7e3   : > { %v2979_v25 = vmul.f32 %v2978_v8, %v2976_v27  ;;  %v3175_v30 = vmax.f32 %v3159_v4, 0.0 }
 0x7e4   : > { %v2980_v12 = vmul.f32 %v2978_v8, %v2977_v54  ;;  %v3160_v8 = vsub.f32 %v6237_v60, %v5699_v59  ;;  %v3163_v54 = vsub.f32 %v6260_v15, %v5700_v45 }
 0x7e5   : > { %v2982_v62 = vadd.f32 %v2981_v46, %v2979_v25  ;;  %v3206_v31 = vpack.c.bf16 %v3175_v30, %v3174_v38 }
 0x7e6   : > { %v2983_v33 = vadd.f32 %v2981_v46, %v2980_v12  ;;  %v3176_v1 = vmax.f32 %v3160_v8, 0.0  ;;  %v3162_v46 = vsub.f32 %v6237_v60, %v5700_v45  ;;  %v3179_v12 = vmax.f32 %v3163_v54, 0.0  ;;  %v5531_v8 = vld [vmem:[%s8398_s19 + $0x30] sm:$0xff]  ;;  %v5526_v54 = vld [vmem:[%s8398_s19 + $0x8] sm:$0xff] }
 0x7e7   : > { %v2984_v7 = vmax.f32 %v2982_v62, 0.0 }
 0x7e8   : > { %v2985_v35 = vmax.f32 %v2983_v33, 0.0  ;;  %v3178_v25 = vmax.f32 %v3162_v46, 0.0  ;;  %v5701_v33 = vld [vmem:[%s8466_s3 + $0x3] ss:$0 sm:$0xff] }
 0x7ea   : > { %v3002_v13 = vpack.c.bf16 %v2985_v35, %v2984_v7  ;;  %v3161_v7 = vsub.f32 %v6260_v15, %v5699_v59  ;;  %v3208_v62 = vpack.c.bf16 %v3179_v12, %v3178_v25  ;;  %v3164_v35 = vsub.f32 %v6237_v60, %v5701_v33  ;;  %v5532_v59 = vld [vmem:[%s8398_s19 + $0x38] sm:$0xff]  ;;  %v5525_v12 = vld [vmem:[%s8398_s19] sm:$0xff] }
 0x7eb   : > { %3746 = vmatpush.bf16.msra.mxu1 %v5532_v59 }
 0x7ec   : > { %3059 = vmatmul.bf16.vlgmr.msrb.gmra.mxu0 %v3002_v13  ;;  %v3177_v58 = vmax.f32 %v3161_v7, 0.0  ;;  %v3165_v13 = vsub.f32 %v6260_v15, %v5701_v33  ;;  %v3180_v24 = vmax.f32 %v3164_v35, 0.0  ;;  %v5530_v7 = vld [vmem:[%s8398_s19 + $0x28] sm:$0xff] }
 0x7ee   : > { %v3207_v27 = vpack.c.bf16 %v3177_v58, %v3176_v1  ;;  %v3181_v0 = vmax.f32 %v3165_v13, 0.0  ;;  %v5529_v1 = vld [vmem:[%s8398_s19 + $0x20] sm:$0xff]  ;;  %v5528_v58 = vld [vmem:[%s8398_s19 + $0x18] sm:$0xff] }
 0x7ef   : > { %3747 = vmatpush.bf16.msra.mxu1 %v5531_v8 }
 0x7f0   : > { %v3209_v4 = vpack.c.bf16 %v3181_v0, %v3180_v24 }
 0x7f3   : > { %3748 = vmatpush.bf16.msra.mxu1 %v5530_v7 }
 0x7f7   : > { %3749 = vmatpush.bf16.msra.mxu1 %v5529_v1  ;;  %v3108_v1 = vperm.slane %v7468_v5, 3 }
 0x7fb   : > { %3750 = vmatpush.bf16.msra.mxu1 %v5528_v58 }
 0x7fc   : > { %3270 = vmatmul.bf16.vlgmr.msra.gmra.mxu0 %v3206_v31 }
 0x80c   : > { %3275 = vmatmul.bf16.gmra.mxu0 %v3207_v27  ;;  %v5527_v27 = vld [vmem:[%s8398_s19 + $0x10] sm:$0xff] }
 0x80d   : > { %3751 = vmatpush.bf16.msra.mxu1 %v5527_v27 }
 0x811   : > { %3752 = vmatpush.bf16.msra.mxu1 %v5526_v54 }
 0x815   : > { %3753 = vmatpush.bf16.msra.mxu1 %v5525_v12 }
 0x81c   : > { %3280 = vmatmul.bf16.gmra.mxu0 %v3208_v62 }
 0x82c   : > { %3285 = vmatmul.bf16.gmra.mxu0 %v3209_v4 }
 0x83c   : > { %3290 = vmatmul.bf16.gmra.mxu0 %v3210_v39 }
 0x84c   : > { %3295 = vmatmul.bf16.gmra.mxu0 %v3211_v47 }
 0x85c   : > { %3300 = vmatmul.bf16.gmra.mxu0 %v3212_v55 }
 0x869   : > { %v3060_v38 = vpop.f32.mrf.mxu0 }
 0x86a   : > { %3065 = vadd.xlane.f32.xlu1 %v3060_v38 }
 0x86c   : > { %3305 = vmatmul.bf16.gmra.mxu0 %v3213_v57 }
 0x871   : > { %v3062_v60 = vpop.f32.mrf.mxu0 }
 0x872   : > { %3067 = vadd.xlane.f32.xlu0 %v3062_v60 }
 0x879   : > { %v7505_v15 = vpop.f32.mrf.mxu0 }
 0x87a   : > { %3311 = vadd.xlane.f32.xlu0 %v7505_v15 }
 0x881   : > { %v7508_v29 = vpop.f32.mrf.mxu0 }
 0x889   : > { %v7510_v32 = vpop.f32.mrf.mxu0 }
 0x891   : > { %v7513_v48 = vpop.f32.mrf.mxu0 }
 0x899   : > { %v7517_v57 = vpop.f32.mrf.mxu0 }
 0x8a1   : > { %v7520_v30 = vpop.f32.mrf.mxu0 }
 0x8a9   : > { %v7523_v31 = vpop.f32.mrf.mxu0 }
 0x8dd   : > { %v3066_v37 = vpop.xlane.xlu1 %3065 }
 0x8de   : > { %v3069_v39 = vmul.f32 %v3066_v37, %v6357_v10 }
 0x8e0   : > { %v3071_v40 = vsub.f32 %v3060_v38, %v3069_v39 }
 0x8e2   : > { %v3073_v47 = vmul.f32 %v3071_v40, %v3071_v40 }
 0x8e4   : > { %3075 = vadd.xlane.f32.xlu2 %v3073_v47 }
 0x8e5   : > { %v3068_v49 = vpop.xlane.xlu0 %3067 }
 0x8e6   : > { %v3070_v50 = vmul.f32 %v3068_v49, %v6357_v10 }
 0x8e8   : > { %v3072_v51 = vsub.f32 %v3062_v60, %v3070_v50  ;;  %v3105_v50 = vperm.slane %v7468_v5, 2 }
 0x8ea   : > { %v3074_v55 = vmul.f32 %v3072_v51, %v3072_v51 }
 0x8ec   : > { %3077 = vadd.xlane.f32.xlu1 %v3074_v55  ;;  %3313 = vadd.xlane.f32.xlu2 %v7508_v29 }
 0x8ed   : > { %v3312_v23 = vpop.xlane.xlu0 %3311 }
 0x8f4   : > { %3315 = vadd.xlane.f32.xlu2 %v7510_v32 }
 0x8fc   : > { %3321 = vadd.xlane.f32.xlu2 %v7520_v30 }
 0x904   : > { %3323 = vadd.xlane.f32.xlu2 %v7523_v31 }
 0x957   : > { %v3076_v45 = vpop.xlane.xlu2 %3075 }
 0x958   : > { %v3079_v46 = vmul.f32 %v3076_v45, %v6357_v10 }
 0x95a   : > { %v3081_v25 = vadd.f32 1e-05, %v3079_v46 }
 0x95c   : > { %5792 = vrsqrt.f32 %v3081_v25  ;;  %vm3089_vm4 = vweird.f32 %v3081_v25 }
 0x95f   : > { %v3078_v62 = vpop.xlane.xlu1 %3077 }
 0x960   : > { %v3080_v33 = vmul.f32 %v3078_v62, %v6357_v10 }
 0x962   : > { %v5793_v35 = vpop.eup %5792  ;;  %v3082_v13 = vadd.f32 1e-05, %v3080_v33 }
 0x963   : > { %v3084_v24 = vmul.f32 %v5793_v35, %v3081_v25  ;;  %vm3090_vm3 = vweird.f32 %v5793_v35 }
 0x964   : > { %5794 = vrsqrt.f32 %v3082_v13  ;;  %vm3091_vm5 = vmor %vm3089_vm4, %vm3090_vm3  ;;  %vm3099_vm7 = vweird.f32 %v3082_v13 }
 0x965   : > { %v3085_v0 = vmul.f32 %v5793_v35, %v3084_v24 }
 0x967   : > { %v3086_v4 = vmul.f32 0.5, %v3085_v0  ;;  %v7580_v0 = vpop.f32.mrf.mxu0 }
 0x969   : > { %v3087_v38 = vsub.f32 1.5, %v3086_v4 }
 0x96a   : > { %v5795_v60 = vpop.eup %5794 }
 0x96b   : > { %v3088_v37 = vmul.f32 %v5793_v35, %v3087_v38  ;;  %v3094_v39 = vmul.f32 %v5795_v60, %v3082_v13  ;;  %vm3100_vm6 = vweird.f32 %v5795_v60 }
 0x96c   : > { %vm3101_vm8 = vmor %vm3099_vm7, %vm3100_vm6 }
 0x96d   : > { %v3092_v47 = vsel %vm3091_vm5, %v5793_v35, %v3088_v37  ;;  %v3095_v49 = vmul.f32 %v5795_v60, %v3094_v39 }
 0x96e   : > { %v3103_v55 = vmul.f32 %v3092_v47, %v3071_v40 }
 0x96f   : > { %v3096_v59 = vmul.f32 0.5, %v3095_v49  ;;  %v7592_v39 = vpop.f32.mrf.mxu0 }
 0x970   : > { %v3106_v7 = vmul.f32 %v3105_v50, %v3103_v55 }
 0x971   : > { %v3097_v8 = vsub.f32 1.5, %v3096_v59 }
 0x972   : > { %v3109_v46 = vadd.f32 %v3108_v1, %v3106_v7 }
 0x973   : > { %v3098_v58 = vmul.f32 %v5795_v60, %v3097_v8  ;;  %v5538_v8 = vld [vmem:[%s8399_s20 + $0x28] sm:$0xff] }
 0x974   : > { %v7556_v12 = vadd.f32 %v3109_v46, %v1282_v6  ;;  %v3343_v6 = vmul.f32 %v3312_v23, %v6357_v10 }
 0x975   : > { %v3102_v27 = vsel %vm3101_vm8, %v5795_v60, %v3098_v58  ;;  %v5537_v58 = vld [vmem:[%s8399_s20 + $0x20] sm:$0xff] }
 0x976   : > { %v3104_v45 = vmul.f32 %v3102_v27, %v3072_v51  ;;  %v8424_v62 = vmax.f32 %v7556_v12, 0.0  ;;  %v7574_v35 = vsub.f32 %v7505_v15, %v3343_v6 }
 0x978   : > { %v3107_v54 = vmul.f32 %v3105_v50, %v3104_v45  ;;  %v3375_v24 = vmul.f32 %v7574_v35, %v7574_v35  ;;  %v5540_v50 = vld [vmem:[%s8399_s20 + $0x38] sm:$0xff] }
 0x979   : > { %3880 = vmatpush.bf16.msrb.mxu3 %v5540_v50 }
 0x97a   : > { %v3110_v25 = vadd.f32 %v3108_v1, %v3107_v54 }
 0x97c   : > { %v7560_v40 = vadd.f32 %v3110_v25, %v1283_v19  ;;  %v3314_v19 = vpop.xlane.xlu2 %3313  ;;  %v5536_v25 = vld [vmem:[%s8399_s20 + $0x18] sm:$0xff] }
 0x97d   : > { %v3344_v13 = vmul.f32 %v3314_v19, %v6357_v10 }
 0x97e   : > { %v8423_v5 = vmax.f32 %v7560_v40, 0.0 }
 0x97f   : > { %v7583_v4 = vsub.f32 %v7508_v29, %v3344_v13  ;;  %v7596_v29 = vpop.f32.mrf.mxu0  ;;  %v5535_v13 = vld [vmem:[%s8399_s20 + $0x10] sm:$0xff] }
 0x980   : > { %v7568_v51 = vpack.c.bf16 %v8423_v5, %v8424_v62 }
 0x981   : > { %v3376_v15 = vmul.f32 %v7583_v4, %v7583_v4 }
 0x982   : > { %3754 = vmatmul.bf16.vlgmr.msra.gmra.mxu1 %v7568_v51 }
 0x984   : > { %v3316_v38 = vpop.xlane.xlu2 %3315 }
 0x985   : > { %v3345_v60 = vmul.f32 %v3316_v38, %v6357_v10 }
 0x987   : > { %v7590_v37 = vsub.f32 %v7510_v32, %v3345_v60  ;;  %v7599_v49 = vpop.f32.mrf.mxu0  ;;  %v5539_v32 = vld [vmem:[%s8399_s20 + $0x30] sm:$0xff] }
 0x988   : > { %3881 = vmatpush.bf16.msrb.mxu3 %v5539_v32 }
 0x989   : > { %v3377_v47 = vmul.f32 %v7590_v37, %v7590_v37 }
 0x98c   : > { %3882 = vmatpush.bf16.msrb.mxu3 %v5538_v8 }
 0x98f   : > { %v7650_v8 = vpop.f32.mrf.mxu0 }
 0x990   : > { %3883 = vmatpush.bf16.msrb.mxu3 %v5537_v58 }
 0x994   : > { %3884 = vmatpush.bf16.msrb.mxu3 %v5536_v25 }
 0x998   : > { %3885 = vmatpush.bf16.msrb.mxu3 %v5535_v13 }
 0x9ff   : > { %v3755_v33 = vpop.f32.mrf.mxu1 }
 0xa00   : > { %3760 = vadd.xlane.f32.xlu1 %v3755_v33 }
 0xa07   : > { %v3757_v26 = vpop.f32.mrf.mxu1 }
 0xa08   : > { %3762 = vadd.xlane.f32.xlu0 %v3757_v26  ;;  %3317 = vadd.xlane.f32.xlu1 %v7513_v48 }
 0xa10   : > { %3391 = vadd.xlane.f32.xlu1 %v3375_v24  ;;  %3319 = vadd.xlane.f32.xlu0 %v7517_v57  ;;  %v3322_v24 = vpop.xlane.xlu2 %3321 }
 0xa11   : > { %v3348_v32 = vmul.f32 %v3322_v24, %v6357_v10 }
 0xa18   : > { %3393 = vadd.xlane.f32.xlu0 %v3376_v15  ;;  %3325 = vadd.xlane.f32.xlu1 %v7580_v0  ;;  %v5534_v15 = vld [vmem:[%s8399_s20 + $0x8] sm:$0xff] }
 0xa19   : > { %3886 = vmatpush.bf16.msrb.mxu3 %v5534_v15  ;;  %v7673_v15 = vpop.f32.mrf.mxu0 }
 0xa20   : > { %3395 = vadd.xlane.f32.xlu1 %v3377_v47 }
 0xa28   : > { %3329 = vadd.xlane.f32.xlu1 %v7596_v29 }
 0xa30   : > { %3331 = vadd.xlane.f32.xlu1 %v7599_v49 }
 0xa73   : > { %v3761_v55 = vpop.xlane.xlu1 %3760 }
 0xa74   : > { %v3764_v59 = vmul.f32 %v3761_v55, %v6357_v10 }
 0xa76   : > { %v7612_v7 = vsub.f32 %v3755_v33, %v3764_v59  ;;  %v5533_v59 = vld [vmem:[%s8399_s20] sm:$0xff] }
 0xa77   : > { %3887 = vmatpush.bf16.msrb.mxu3 %v5533_v59 }
 0xa78   : > { %v3768_v1 = vmul.f32 %v7612_v7, %v7612_v7 }
 0xa7a   : > { %3770 = vadd.xlane.f32.xlu0 %v3768_v1 }
 0xa7b   : > { %v3763_v27 = vpop.xlane.xlu0 %3762  ;;  %v3318_v45 = vpop.xlane.xlu1 %3317 }
 0xa7c   : > { %v3765_v46 = vmul.f32 %v3763_v27, %v6357_v10  ;;  %v3346_v54 = vmul.f32 %v3318_v45, %v6357_v10 }
 0xa7e   : > { %v7624_v33 = vsub.f32 %v3757_v26, %v3765_v46  ;;  %v7627_v23 = vsub.f32 %v7513_v48, %v3346_v54  ;;  %v5548_v46 = vld [vmem:[%s8400_s21 + $0x38] sm:$0xff]  ;;  %v3324_v54 = vpop.xlane.xlu2 %3323 }
 0xa7f   : > { %3994 = vmatpush.bf16.msrb.mxu1 %v5548_v46  ;;  %v3349_v24 = vmul.f32 %v3324_v54, %v6357_v10  ;;  %v7681_v54 = vld [vmem:[%s8464_s0 + $0x8] sm:$0x3f]  ;;  %s790_s0 = scalar_lea.vmem [#allocation2], %s4956_s25 }
 0xa80   : > { %v3378_v6 = vmul.f32 %v7627_v23, %v7627_v23  ;;  %v3769_v19 = vmul.f32 %v7624_v33, %v7624_v33  ;;  %s4863_s28 = sshll.u32 %s790_s0, 4  ;;  %s4864_s28 = int_to_ptr.vmem [resolvable:$true] %s4863_s28 }
 0xa82   : > { %3397 = vadd.xlane.f32.xlu0 %v3378_v6  ;;  %3772 = vadd.xlane.f32.xlu2 %v3769_v19 }
 0xa83   : > { %v3392_v38 = vpop.xlane.xlu1 %3391  ;;  %v3320_v26 = vpop.xlane.xlu0 %3319 }
 0xa84   : > { %v3423_v48 = vmul.f32 %v3392_v38, %v6357_v10  ;;  %v3347_v60 = vmul.f32 %v3320_v26, %v6357_v10 }
 0xa86   : > { %v3439_v47 = vadd.f32 1e-05, %v3423_v48  ;;  %v7642_v50 = vsub.f32 %v7517_v57, %v3347_v60  ;;  %v7654_v57 = vsub.f32 %v7520_v30, %v3348_v32 }
 0xa88   : > { %5796 = vrsqrt.f32 %v3439_v47  ;;  %v3379_v55 = vmul.f32 %v7642_v50, %v7642_v50  ;;  %v3380_v30 = vmul.f32 %v7654_v57, %v7654_v57  ;;  %vm3461_vm10 = vweird.f32 %v3439_v47 }
 0xa8a   : > { %3399 = vadd.xlane.f32.xlu0 %v3379_v55  ;;  %3327 = vadd.xlane.f32.xlu2 %v7592_v39 }
 0xa8b   : > { %v3394_v1 = vpop.xlane.xlu0 %3393  ;;  %v3326_v58 = vpop.xlane.xlu1 %3325 }
 0xa8c   : > { %v3424_v27 = vmul.f32 %v3394_v1, %v6357_v10  ;;  %v3350_v45 = vmul.f32 %v3326_v58, %v6357_v10 }
 0xa8e   : > { %v5797_v25 = vpop.eup %5796  ;;  %v3440_v6 = vadd.f32 1e-05, %v3424_v27  ;;  %v7662_v19 = vsub.f32 %v7580_v0, %v3350_v45  ;;  %v7671_v0 = vsub.f32 %v7523_v31, %v3349_v24 }
 0xa8f   : > { %v3456_v13 = vmul.f32 %v5797_v25, %v3439_v47  ;;  %vm3462_vm9 = vweird.f32 %v5797_v25 }
 0xa90   : > { %5798 = vrsqrt.f32 %v3440_v6  ;;  %v3382_v38 = vmul.f32 %v7662_v19, %v7662_v19  ;;  %vm3463_vm11 = vmor %vm3461_vm10, %vm3462_vm9  ;;  %v3381_v58 = vmul.f32 %v7671_v0, %v7671_v0  ;;  %vm3471_vm13 = vweird.f32 %v3440_v6 }
 0xa91   : > { %v3457_v26 = vmul.f32 %v5797_v25, %v3456_v13  ;;  %v7684_v13 = vperm.slane %v7681_v54, 0 }
 0xa92   : > { %3401 = vadd.xlane.f32.xlu2 %v3380_v30  ;;  %3405 = vadd.xlane.f32.xlu1 %v3382_v38  ;;  %v7691_v38 = vpop.f32.mrf.mxu0 }
 0xa93   : > { %v3458_v48 = vmul.f32 0.5, %v3457_v26  ;;  %3333 = vadd.xlane.f32.xlu0 %v7650_v8  ;;  %v3396_v60 = vpop.xlane.xlu1 %3395 }
 0xa95   : > { %v3459_v32 = vsub.f32 1.5, %v3458_v48  ;;  %v7694_v48 = vperm.slane %v7681_v54, 1 }
 0xa96   : > { %v5799_v55 = vpop.eup %5798 }
 0xa97   : > { %v3460_v59 = vmul.f32 %v5797_v25, %v3459_v32  ;;  %v3466_v1 = vmul.f32 %v5799_v55, %v3440_v6  ;;  %vm3472_vm12 = vweird.f32 %v5799_v55 }
 0xa98   : > { %vm3473_vm14 = vmor %vm3471_vm13, %vm3472_vm12 }
 0xa99   : > { %v3464_v27 = vsel %vm3463_vm11, %v5797_v25, %v3460_v59  ;;  %v3467_v45 = vmul.f32 %v5799_v55, %v3466_v1 }
 0xa9a   : > { %3403 = vadd.xlane.f32.xlu2 %v3381_v58  ;;  %v3615_v47 = vmul.f32 %v3464_v27, %v7574_v35 }
 0xa9b   : > { %v3468_v46 = vmul.f32 0.5, %v3467_v45  ;;  %3335 = vadd.xlane.f32.xlu0 %v7673_v15  ;;  %v3330_v31 = vpop.xlane.xlu1 %3329 }
 0xa9c   : > { %v3352_v24 = vmul.f32 %v3330_v31, %v6357_v10  ;;  %v3632_v35 = vmul.f32 %v7684_v13, %v3615_v47  ;;  %v7710_v47 = vpop.f32.mrf.mxu0 }
 0xa9d   : > { %v3469_v30 = vsub.f32 1.5, %v3468_v46 }
 0xa9e   : > { %v7689_v25 = vsub.f32 %v7596_v29, %v3352_v24  ;;  %v3649_v27 = vadd.f32 %v7694_v48, %v3632_v35  ;;  %v3425_v35 = vmul.f32 %v3396_v60, %v6357_v10  ;;  %v5564_v60 = vld [vmem:[%s8402_s23 + $0x38] sm:$0xff] }
 0xa9f   : > { %v3470_v26 = vmul.f32 %v5799_v55, %v3469_v30  ;;  %v5547_v30 = vld [vmem:[%s8400_s21 + $0x30] sm:$0xff] }
 0xaa0   : > { %v3384_v32 = vmul.f32 %v7689_v25, %v7689_v25  ;;  %v3665_v31 = vmax.f32 %v3649_v27, 0.0  ;;  %3995 = vmatpush.bf16.msrb.mxu1 %v5547_v30  ;;  %v5563_v27 = vld [vmem:[%s8402_s23 + $0x30] sm:$0xff] }
 0xaa1   : > { %v3474_v59 = vsel %vm3473_vm14, %v5799_v55, %v3470_v26  ;;  %v5545_v26 = vld [vmem:[%s8400_s21 + $0x20] sm:$0xff] }
 0xaa2   : > { %v3616_v1 = vmul.f32 %v3474_v59, %v7583_v4  ;;  %3337 = vadd.xlane.f32.xlu2 %v7691_v38  ;;  %v5543_v59 = vld [vmem:[%s8400_s21 + $0x10] sm:$0xff] }
 0xaa3   : > { %3409 = vadd.xlane.f32.xlu0 %v3384_v32  ;;  %v3332_v29 = vpop.xlane.xlu1 %3331  ;;  %v5544_v32 = vld [vmem:[%s8400_s21 + $0x18] sm:$0xff] }
 0xaa4   : > { %v3353_v58 = vmul.f32 %v3332_v29, %v6357_v10  ;;  %v3633_v6 = vmul.f32 %v7684_v13, %v3616_v1  ;;  %v3441_v1 = vadd.f32 1e-05, %v3425_v35  ;;  %v5542_v29 = vld [vmem:[%s8400_s21 + $0x8] sm:$0xff] }
 0xaa6   : > { %v7705_v45 = vsub.f32 %v7599_v49, %v3353_v58  ;;  %v3650_v46 = vadd.f32 %v7694_v48, %v3633_v6  ;;  %v5546_v49 = vld [vmem:[%s8400_s21 + $0x28] sm:$0xff]  ;;  %5800 = vrsqrt.f32 %v3441_v1  ;;  %v5541_v58 = vld [vmem:[%s8400_s21] sm:$0xff]  ;;  %vm3481_vm0 = vweird.f32 %v3441_v1 }
 0xaa7   : > { %3996 = vmatpush.bf16.msrb.mxu1 %v5546_v49  ;;  %v5561_v49 = vld [vmem:[%s8402_s23 + $0x20] sm:$0xff] }
 0xaa8   : > { %v3385_v55 = vmul.f32 %v7705_v45, %v7705_v45  ;;  %v3666_v4 = vmax.f32 %v3650_v46, 0.0 }
 0xaaa   : > { %3339 = vadd.xlane.f32.xlu2 %v7710_v47  ;;  %v3824_v24 = vpack.c.bf16 %v3666_v4, %v3665_v31  ;;  %v5562_v4 = vld [vmem:[%s8402_s23 + $0x28] sm:$0xff] }
 0xaab   : > { %3411 = vadd.xlane.f32.xlu0 %v3385_v55  ;;  %3997 = vmatpush.bf16.msrb.mxu1 %v5545_v26 }
 0xaac   : > { %3888 = vmatmul.bf16.vlgmr.msrb.gmra.mxu3 %v3824_v24  ;;  %v5801_v6 = vpop.eup %5800 }
 0xaad   : > { %v3476_v46 = vmul.f32 %v5801_v6, %v3441_v1  ;;  %vm3482_vm15 = vweird.f32 %v5801_v6 }
 0xaae   : > { %vm3483_vm1 = vmor %vm3481_vm0, %vm3482_vm15 }
 0xaaf   : > { %3998 = vmatpush.bf16.msrb.mxu1 %v5544_v32  ;;  %v3477_v24 = vmul.f32 %v5801_v6, %v3476_v46 }
 0xab1   : > { %v3478_v26 = vmul.f32 0.5, %v3477_v24 }
 0xab3   : > { %3999 = vmatpush.bf16.msrb.mxu1 %v5543_v59 }
 0xab7   : > { %4000 = vmatpush.bf16.msrb.mxu1 %v5542_v29 }
 0xabb   : > { %4001 = vmatpush.bf16.msrb.mxu1 %v5541_v58  ;;  %v3479_v58 = vsub.f32 1.5, %v3478_v26 }
 0xabf   : > { %4657 = vmatpush.bf16.msra.mxu1 %v5564_v60 }
 0xac3   : > { %4658 = vmatpush.bf16.msra.mxu1 %v5563_v27 }
 0xac7   : > { %4659 = vmatpush.bf16.msra.mxu1 %v5562_v4  ;;  %v3480_v4 = vmul.f32 %v5801_v6, %v3479_v58 }
 0xac9   : > { %v3484_v58 = vsel %vm3483_vm1, %v5801_v6, %v3480_v4 }
 0xaca   : > { %v3617_v6 = vmul.f32 %v3484_v58, %v7590_v37  ;;  %v5557_v37 = vld [vmem:[%s8402_s23] sm:$0xff] }
 0xacb   : > { %4660 = vmatpush.bf16.msra.mxu1 %v5561_v49 }
 0xaed   : > { %v3771_v55 = vpop.xlane.xlu0 %3770 }
 0xaee   : > { %v3774_v31 = vmul.f32 %v3771_v55, %v6357_v10 }
 0xaf0   : > { %v3776_v30 = vadd.f32 1e-05, %v3774_v31  ;;  %v5560_v31 = vld [vmem:[%s8402_s23 + $0x18] sm:$0xff] }
 0xaf1   : > { %4661 = vmatpush.bf16.msra.mxu1 %v5560_v31 }
 0xaf2   : > { %5802 = vrsqrt.f32 %v3776_v30  ;;  %vm3784_vm3 = vweird.f32 %v3776_v30 }
 0xaf5   : > { %v3398_v32 = vpop.xlane.xlu0 %3397  ;;  %v3773_v35 = vpop.xlane.xlu2 %3772 }
 0xaf6   : > { %v3426_v59 = vmul.f32 %v3398_v32, %v6357_v10  ;;  %v3775_v29 = vmul.f32 %v3773_v35, %v6357_v10  ;;  %v5559_v35 = vld [vmem:[%s8402_s23 + $0x10] sm:$0xff] }
 0xaf7   : > { %4662 = vmatpush.bf16.msra.mxu1 %v5559_v35  ;;  %v3800_v35 = vperm.slane %v7681_v54, 2 }
 0xaf8   : > { %v7750_v60 = vpop.eup %5802  ;;  %v7752_v27 = vadd.f32 1e-05, %v3426_v59  ;;  %v7754_v46 = vadd.f32 1e-05, %v3775_v29 }
 0xaf9   : > { %v3779_v55 = vmul.f32 %v7750_v60, %v3776_v30  ;;  %vm3785_vm2 = vweird.f32 %v7750_v60  ;;  %v3634_v30 = vmul.f32 %v7684_v13, %v3617_v6 }
 0xafa   : > { %5804 = vrsqrt.f32 %v7752_v27  ;;  %vm7788_vm4 = vmor %vm3784_vm3, %vm3785_vm2  ;;  %vm3491_vm7 = vweird.f32 %v7752_v27  ;;  %vm3794_vm9 = vweird.f32 %v7754_v46 }
 0xafb   : > { %v3780_v24 = vmul.f32 %v7750_v60, %v3779_v55  ;;  %5806 = vrsqrt.f32 %v7754_v46  ;;  %4663 = vmatpush.bf16.msra.mxu1 %v5558_v20 }
 0xafd   : > { %v3781_v49 = vmul.f32 0.5, %v3780_v24  ;;  %v3400_v26 = vpop.xlane.xlu0 %3399  ;;  %v3328_v32 = vpop.xlane.xlu2 %3327 }
 0xafe   : > { %v3427_v59 = vmul.f32 %v3400_v26, %v6357_v10  ;;  %v3351_v29 = vmul.f32 %v3328_v32, %v6357_v10 }
 0xaff   : > { %v3782_v5 = vsub.f32 1.5, %v3781_v49  ;;  %4664 = vmatpush.bf16.msra.mxu1 %v5557_v37 }
 0xb00   : > { %v5805_v55 = vpop.eup %5804  ;;  %v7768_v62 = vadd.f32 1e-05, %v3427_v59  ;;  %v7771_v1 = vsub.f32 %v7592_v39, %v3351_v29 }
 0xb01   : > { %v5807_v31 = vpop.eup %5806  ;;  %v3486_v24 = vmul.f32 %v5805_v55, %v7752_v27  ;;  %v3783_v4 = vmul.f32 %v7750_v60, %v3782_v5  ;;  %vm3492_vm5 = vweird.f32 %v5805_v55 }
 0xb02   : > { %v3789_v26 = vmul.f32 %v5807_v31, %v7754_v46  ;;  %5808 = vrsqrt.f32 %v7768_v62  ;;  %v3383_v39 = vmul.f32 %v7771_v1, %v7771_v1  ;;  %vm3795_vm6 = vweird.f32 %v5807_v31  ;;  %vm3493_vm8 = vmor %vm3491_vm7, %vm3492_vm5 }
 0xb03   : > { %v3487_v49 = vmul.f32 %v5805_v55, %v3486_v24  ;;  %vm3796_vm10 = vmor %vm3794_vm9, %vm3795_vm6  ;;  %vm3501_vm12 = vweird.f32 %v7768_v62 }
 0xb04   : > { %v3790_v32 = vmul.f32 %v5807_v31, %v3789_v26  ;;  %3407 = vadd.xlane.f32.xlu1 %v3383_v39 }
 0xb05   : > { %v3488_v59 = vmul.f32 0.5, %v3487_v49  ;;  %v3402_v29 = vpop.xlane.xlu2 %3401  ;;  %v3406_v53 = vpop.xlane.xlu1 %3405  ;;  %v3787_v49 = vsel %vm7788_vm4, %v7750_v60, %v3783_v4 }
 0xb06   : > { %v3791_v58 = vmul.f32 0.5, %v3790_v32  ;;  %v3428_v24 = vmul.f32 %v3402_v29, %v6357_v10  ;;  %v3430_v20 = vmul.f32 %v3406_v53, %v6357_v10  ;;  %v3334_v26 = vpop.xlane.xlu0 %3333  ;;  %v3798_v4 = vmul.f32 %v3787_v49, %v7612_v7 }
 0xb07   : > { %v3489_v39 = vsub.f32 1.5, %v3488_v59  ;;  %v3354_v42 = vmul.f32 %v3334_v26, %v6357_v10 }
 0xb08   : > { %v7799_v16 = vpop.eup %5808  ;;  %v3792_v43 = vsub.f32 1.5, %v3791_v58  ;;  %v7801_v32 = vadd.f32 1e-05, %v3428_v24  ;;  %v7803_v29 = vadd.f32 1e-05, %v3430_v20  ;;  %v7818_v58 = vpop.f32.mrf.mxu0  ;;  %v3801_v24 = vmul.f32 %v3800_v35, %v3798_v4 }
 0xb09   : > { %v3490_v53 = vmul.f32 %v5805_v55, %v3489_v39  ;;  %v3496_v6 = vmul.f32 %v7799_v16, %v7768_v62  ;;  %v7809_v60 = vsub.f32 %v7650_v8, %v3354_v42  ;;  %v3803_v39 = vperm.slane %v7681_v54, 3 }
 0xb0a   : > { %v3793_v59 = vmul.f32 %v5807_v31, %v3792_v43  ;;  %5810 = vrsqrt.f32 %v7801_v32  ;;  %vm3502_vm11 = vweird.f32 %v7799_v16  ;;  %vm3511_vm15 = vweird.f32 %v7801_v32 }
 0xb0b   : > { %v3494_v37 = vsel %vm3493_vm8, %v5805_v55, %v3490_v53  ;;  %v3497_v5 = vmul.f32 %v7799_v16, %v3496_v6  ;;  %5812 = vrsqrt.f32 %v7803_v29  ;;  %v3386_v27 = vmul.f32 %v7809_v60, %v7809_v60  ;;  %vm7838_vm13 = vmor %vm3501_vm12, %vm3502_vm11 }
 0xb0c   : > { %v3797_v42 = vsel %vm3796_vm10, %v5807_v31, %v3793_v59  ;;  %v3618_v7 = vmul.f32 %v3494_v37, %v7627_v23  ;;  %3341 = vadd.xlane.f32.xlu1 %v7818_v58  ;;  %v3651_v55 = vadd.f32 %v7694_v48, %v3634_v30  ;;  %vm3531_vm4 = vweird.f32 %v7803_v29 }
 0xb0d   : > { %v3799_v43 = vmul.f32 %v3797_v42, %v7624_v33  ;;  %v3498_v8 = vmul.f32 0.5, %v3497_v5  ;;  %3413 = vadd.xlane.f32.xlu2 %v3386_v27  ;;  %v3404_v46 = vpop.xlane.xlu2 %3403  ;;  %v3804_v42 = vadd.f32 %v3803_v39, %v3801_v24 }
 0xb0e   : > { %v3429_v20 = vmul.f32 %v3404_v46, %v6357_v10  ;;  %v3336_v26 = vpop.xlane.xlu0 %3335  ;;  %v3635_v49 = vmul.f32 %v7684_v13, %v3618_v7  ;;  %v3667_v27 = vmax.f32 %v3651_v55, 0.0 }
 0xb0f   : > { %v3499_v31 = vsub.f32 1.5, %v3498_v8  ;;  %v3355_v33 = vmul.f32 %v3336_v26, %v6357_v10  ;;  %v3802_v53 = vmul.f32 %v3800_v35, %v3799_v43  ;;  %v3806_v55 = vmax.f32 %v3804_v42, 0.0 }
 0xb10   : > { %v5811_v23 = vpop.eup %5810  ;;  %v3445_v6 = vadd.f32 1e-05, %v3429_v20  ;;  %v3652_v59 = vadd.f32 %v7694_v48, %v3635_v49 }
 0xb11   : > { %v7830_v37 = vpop.eup %5812  ;;  %v3500_v30 = vmul.f32 %v7799_v16, %v3499_v31  ;;  %v3506_v4 = vmul.f32 %v5811_v23, %v7801_v32  ;;  %v7836_v54 = vsub.f32 %v7673_v15, %v3355_v33  ;;  %v3805_v46 = vadd.f32 %v3803_v39, %v3802_v53 }
 0xb12   : > { %v3526_v35 = vmul.f32 %v7830_v37, %v7803_v29  ;;  %5814 = vrsqrt.f32 %v3445_v6  ;;  %v3668_v15 = vmax.f32 %v3652_v59, 0.0  ;;  %vm3512_vm14 = vweird.f32 %v5811_v23 }
 0xb13   : > { %v3504_v7 = vsel %vm7838_vm13, %v7799_v16, %v3500_v30  ;;  %v3507_v62 = vmul.f32 %v5811_v23, %v3506_v4  ;;  %v3387_v43 = vmul.f32 %v7836_v54, %v7836_v54  ;;  %v3807_v24 = vmax.f32 %v3805_v46, 0.0  ;;  %vm3513_vm0 = vmor %vm3511_vm15, %vm3512_vm14 }
 0xb14   : > { %v3527_v8 = vmul.f32 %v7830_v37, %v3526_v35  ;;  %v3825_v49 = vpack.c.bf16 %v3668_v15, %v3667_v27  ;;  %v3619_v33 = vmul.f32 %v3504_v7, %v7642_v50  ;;  %vm3532_vm2 = vweird.f32 %v7830_v37 }
 0xb15   : > { %v3508_v20 = vmul.f32 0.5, %v3507_v62  ;;  %3415 = vadd.xlane.f32.xlu1 %v3387_v43  ;;  %v3338_v26 = vpop.xlane.xlu2 %3337  ;;  %v3945_v4 = vpack.c.bf16 %v3807_v24, %v3806_v55  ;;  %vm3521_vm3 = vweird.f32 %v3445_v6  ;;  %vm3533_vm6 = vmor %vm3531_vm4, %vm3532_vm2 }
 0xb16   : > { %v3356_v31 = vmul.f32 %v3338_v26, %v6357_v10  ;;  %3893 = vmatmul.bf16.gmra.mxu3 %v3825_v49  ;;  %v3528_v30 = vmul.f32 0.5, %v3527_v8  ;;  %v3636_v50 = vmul.f32 %v7684_v13, %v3619_v33 }
 0xb17   : > { %v3509_v5 = vsub.f32 1.5, %v3508_v20  ;;  %4002 = vmatmul.bf16.vlgmr.msrb.gmra.mxu1 %v3945_v4 }
 0xb18   : > { %v5815_v16 = vpop.eup %5814  ;;  %v7853_v59 = vsub.f32 %v7691_v38, %v3356_v31  ;;  %v3529_v7 = vsub.f32 1.5, %v3528_v30  ;;  %v3653_v8 = vadd.f32 %v7694_v48, %v3636_v50 }
 0xb19   : > { %v3510_v39 = vmul.f32 %v5811_v23, %v3509_v5  ;;  %v3516_v53 = vmul.f32 %v5815_v16, %v3445_v6  ;;  %vm3522_vm1 = vweird.f32 %v5815_v16 }
 0xb1a   : > { %v3388_v35 = vmul.f32 %v7853_v59, %v7853_v59  ;;  %v3530_v20 = vmul.f32 %v7830_v37, %v3529_v7  ;;  %vm3523_vm5 = vmor %vm3521_vm3, %vm3522_vm1  ;;  %v3669_v31 = vmax.f32 %v3653_v8, 0.0 }
 0xb1b   : > { %v3514_v27 = vsel %vm3513_vm0, %v5811_v23, %v3510_v39  ;;  %v3517_v42 = vmul.f32 %v5815_v16, %v3516_v53 }
 0xb1c   : > { %3417 = vadd.xlane.f32.xlu0 %v3388_v35  ;;  %v3620_v62 = vmul.f32 %v3514_v27, %v7654_v57  ;;  %v3534_v33 = vsel %vm3533_vm6, %v7830_v37, %v3530_v20  ;;  %v3410_v35 = vpop.xlane.xlu0 %3409 }
 0xb1d   : > { %v3518_v38 = vmul.f32 0.5, %v3517_v42  ;;  %v3340_v43 = vpop.xlane.xlu2 %3339  ;;  %v3622_v30 = vmul.f32 %v3534_v33, %v7662_v19 }
 0xb1e   : > { %v3357_v15 = vmul.f32 %v3340_v43, %v6357_v10  ;;  %v3637_v32 = vmul.f32 %v7684_v13, %v3620_v62 }
 0xb1f   : > { %v3519_v46 = vsub.f32 1.5, %v3518_v38  ;;  %v3639_v29 = vmul.f32 %v7684_v13, %v3622_v30 }
 0xb20   : > { %v7866_v23 = vsub.f32 %v7710_v47, %v3357_v15  ;;  %v3654_v26 = vadd.f32 %v7694_v48, %v3637_v32 }
 0xb21   : > { %v3520_v57 = vmul.f32 %v5815_v16, %v3519_v46  ;;  %v3656_v39 = vadd.f32 %v7694_v48, %v3639_v29 }
 0xb22   : > { %v3389_v49 = vmul.f32 %v7866_v23, %v7866_v23  ;;  %v3670_v55 = vmax.f32 %v3654_v26, 0.0 }
 0xb23   : > { %v3524_v24 = vsel %vm3523_vm5, %v5815_v16, %v3520_v57  ;;  %v3672_v53 = vmax.f32 %v3656_v39, 0.0 }
 0xb24   : > { %3419 = vadd.xlane.f32.xlu2 %v3389_v49  ;;  %v3826_v5 = vpack.c.bf16 %v3670_v55, %v3669_v31  ;;  %v3621_v47 = vmul.f32 %v3524_v24, %v7671_v0  ;;  %v3432_v0 = vmul.f32 %v3410_v35, %v6357_v10  ;;  %v3412_v19 = vpop.xlane.xlu0 %3411 }
 0xb25   : > { %v3433_v42 = vmul.f32 %v3412_v19, %v6357_v10 }
 0xb26   : > { %3898 = vmatmul.bf16.gmra.mxu3 %v3826_v5  ;;  %v3638_v6 = vmul.f32 %v7684_v13, %v3621_v47  ;;  %v3448_v50 = vadd.f32 1e-05, %v3432_v0 }
 0xb27   : > { %4665 = vmatmul.bf16.vlgmr.msra.gmra.mxu1 %v7568_v51  ;;  %v7882_v7 = vadd.f32 1e-05, %v3433_v42 }
 0xb28   : > { %v3655_v4 = vadd.f32 %v7694_v48, %v3638_v6  ;;  %5816 = vrsqrt.f32 %v3448_v50  ;;  %vm3551_vm8 = vweird.f32 %v3448_v50 }
 0xb29   : > { %5818 = vrsqrt.f32 %v7882_v7  ;;  %vm3561_vm15 = vweird.f32 %v7882_v7 }
 0xb2a   : > { %v3671_v16 = vmax.f32 %v3655_v4, 0.0 }
 0xb2c   : > { %v3827_v37 = vpack.c.bf16 %v3672_v53, %v3671_v16 }
 0xb2e   : > { %v5817_v27 = vpop.eup %5816 }
 0xb2f   : > { %v3546_v51 = vmul.f32 %v5817_v27, %v3448_v50  ;;  %v7886_v46 = vpop.eup %5818  ;;  %vm3552_vm7 = vweird.f32 %v5817_v27  ;;  %v3889_v39 = vpop.f32.mrf.mxu3 }
 0xb30   : > { %v3556_v55 = vmul.f32 %v7886_v46, %v7882_v7  ;;  %vm3553_vm9 = vmor %vm3551_vm8, %vm3552_vm7  ;;  %vm3562_vm13 = vweird.f32 %v7886_v46 }
 0xb31   : > { %v3547_v62 = vmul.f32 %v5817_v27, %v3546_v51  ;;  %vm7912_vm0 = vmor %vm3561_vm15, %vm3562_vm13 }
 0xb32   : > { %v3557_v29 = vmul.f32 %v7886_v46, %v3556_v55 }
 0xb33   : > { %v3548_v15 = vmul.f32 0.5, %v3547_v62 }
 0xb34   : > { %v3558_v35 = vmul.f32 0.5, %v3557_v29 }
 0xb35   : > { %v3549_v8 = vsub.f32 1.5, %v3548_v15 }
 0xb36   : > { %3903 = vmatmul.bf16.gmra.mxu3 %v3827_v37  ;;  %v3559_v62 = vsub.f32 1.5, %v3558_v35 }
 0xb37   : > { %v3550_v31 = vmul.f32 %v5817_v27, %v3549_v8 }
 0xb39   : > { %v3554_v6 = vsel %vm3553_vm9, %v5817_v27, %v3550_v31 }
 0xb3a   : > { %v3624_v37 = vmul.f32 %v3554_v6, %v7689_v25 }
 0xb3c   : > { %v3641_v51 = vmul.f32 %v7684_v13, %v3624_v37  ;;  %v5706_v37 = vld [vmem:[%s8489_s30] ss:$0 sm:$0xff] }
 0xb77   : > { %v3408_v38 = vpop.xlane.xlu1 %3407 }
 0xb78   : > { %v3431_v43 = vmul.f32 %v3408_v38, %v6357_v10 }
 0xb7a   : > { %v3447_v32 = vadd.f32 1e-05, %v3431_v43 }
 0xb7c   : > { %5820 = vrsqrt.f32 %v3447_v32  ;;  %vm3541_vm11 = vweird.f32 %v3447_v32 }
 0xb7f   : > { %v3342_v26 = vpop.xlane.xlu1 %3341 }
 0xb80   : > { %v3414_v20 = vpop.xlane.xlu2 %3413  ;;  %v3358_v49 = vmul.f32 %v3342_v26, %v6357_v10 }
 0xb81   : > { %v3434_v57 = vmul.f32 %v3414_v20, %v6357_v10 }
 0xb82   : > { %v5821_v24 = vpop.eup %5820  ;;  %v7893_v5 = vsub.f32 %v7818_v58, %v3358_v49  ;;  %v3891_v49 = vpop.f32.mrf.mxu3 }
 0xb83   : > { %v3450_v33 = vadd.f32 1e-05, %v3434_v57  ;;  %v3536_v47 = vmul.f32 %v5821_v24, %v3447_v32  ;;  %vm3542_vm10 = vweird.f32 %v5821_v24  ;;  %v3658_v32 = vadd.f32 %v7694_v48, %v3641_v51 }
 0xb84   : > { %v3390_v30 = vmul.f32 %v7893_v5, %v7893_v5  ;;  %vm3543_vm12 = vmor %vm3541_vm11, %vm3542_vm10  ;;  %v3560_v57 = vmul.f32 %v7886_v46, %v3559_v62 }
 0xb85   : > { %5822 = vrsqrt.f32 %v3450_v33  ;;  %v3537_v4 = vmul.f32 %v5821_v24, %v3536_v47  ;;  %vm3571_vm1 = vweird.f32 %v3450_v33 }
 0xb86   : > { %3421 = vadd.xlane.f32.xlu1 %v3390_v30 }
 0xb87   : > { %v3538_v16 = vmul.f32 0.5, %v3537_v4  ;;  %v3674_v4 = vmax.f32 %v3658_v32, 0.0 }
 0xb88   : > { %v3416_v53 = vpop.xlane.xlu1 %3415 }
 0xb89   : > { %v3435_v58 = vmul.f32 %v3416_v53, %v6357_v10  ;;  %v3539_v0 = vsub.f32 1.5, %v3538_v16  ;;  %v3564_v16 = vsel %vm7912_vm0, %v7886_v46, %v3560_v57  ;;  %v5707_v46 = vld [vmem:[%s8490_s1 + $0x1] ss:$0 sm:$0xff] }
 0xb8b   : > { %v5823_v50 = vpop.eup %5822  ;;  %v7900_v19 = vadd.f32 1e-05, %v3435_v58  ;;  %v3540_v42 = vmul.f32 %v5821_v24, %v3539_v0 }
 0xb8c   : > { %v3566_v27 = vmul.f32 %v5823_v50, %v3450_v33  ;;  %vm3572_vm14 = vweird.f32 %v5823_v50 }
 0xb8d   : > { %5824 = vrsqrt.f32 %v7900_v19  ;;  %v3544_v38 = vsel %vm3543_vm12, %v5821_v24, %v3540_v42  ;;  %vm3573_vm2 = vmor %vm3571_vm1, %vm3572_vm14  ;;  %v3625_v42 = vmul.f32 %v3564_v16, %v7705_v45  ;;  %vm3581_vm6 = vweird.f32 %v7900_v19 }
 0xb8e   : > { %v3567_v43 = vmul.f32 %v5823_v50, %v3566_v27  ;;  %v3623_v25 = vmul.f32 %v3544_v38, %v7771_v1 }
 0xb8f   : > { %v3418_v15 = vpop.xlane.xlu0 %3417  ;;  %v3642_v45 = vmul.f32 %v7684_v13, %v3625_v42 }
 0xb90   : > { %v3568_v8 = vmul.f32 0.5, %v3567_v43  ;;  %v3436_v20 = vmul.f32 %v3418_v15, %v6357_v10  ;;  %v3640_v26 = vmul.f32 %v7684_v13, %v3623_v25 }
 0xb92   : > { %v3569_v31 = vsub.f32 1.5, %v3568_v8  ;;  %v3452_v55 = vadd.f32 1e-05, %v3436_v20  ;;  %v3657_v1 = vadd.f32 %v7694_v48, %v3640_v26 }
 0xb93   : > { %v5825_v24 = vpop.eup %5824 }
 0xb94   : > { %v3570_v30 = vmul.f32 %v5823_v50, %v3569_v31  ;;  %v3576_v6 = vmul.f32 %v5825_v24, %v7900_v19  ;;  %5826 = vrsqrt.f32 %v3452_v55  ;;  %v3673_v29 = vmax.f32 %v3657_v1, 0.0  ;;  %v7924_v35 = vpop.f32.mrf.mxu1  ;;  %v5708_v19 = vld [vmem:[%s8490_s1 + $0x2] ss:$0 sm:$0xff] }
 0xb95   : > { %v4008_v0 = vadd.f32 %v7924_v35, %v3889_v39  ;;  %v3659_v31 = vadd.f32 %v7694_v48, %v3642_v45  ;;  %vm3582_vm4 = vweird.f32 %v5825_v24  ;;  %vm3591_vm5 = vweird.f32 %v3452_v55 }
 0xb96   : > { %v3574_v53 = vsel %vm3573_vm2, %v5823_v50, %v3570_v30  ;;  %v3577_v7 = vmul.f32 %v5825_v24, %v3576_v6  ;;  %v3828_v33 = vpack.c.bf16 %v3674_v4, %v3673_v29  ;;  %vm3583_vm8 = vmor %vm3581_vm6, %vm3582_vm4 }
 0xb97   : > { %v3626_v58 = vmul.f32 %v3574_v53, %v7809_v60  ;;  %v7931_v51 = vadd.f32 %v5706_v37, %v4008_v0  ;;  %v3675_v53 = vmax.f32 %v3659_v31, 0.0 }
 0xb98   : > { %3908 = vmatmul.bf16.gmra.mxu3 %v3828_v33  ;;  %v3578_v27 = vmul.f32 0.5, %v3577_v7 }
 0xb99   : > { %v3894_v62 = vpop.f32.mrf.mxu3  ;;  %v3643_v43 = vmul.f32 %v7684_v13, %v3626_v58  ;;  %4072 = vadd.xlane.f32.xlu0 %v7931_v51 }
 0xb9a   : > { %v5827_v50 = vpop.eup %5826  ;;  %v4010_v60 = vadd.f32 %v7924_v35, %v3894_v62  ;;  %v3579_v15 = vsub.f32 1.5, %v3578_v27 }
 0xb9b   : > { %v3586_v38 = vmul.f32 %v5827_v50, %v3452_v55  ;;  %v3660_v26 = vadd.f32 %v7694_v48, %v3643_v43  ;;  %vm3592_vm3 = vweird.f32 %v5827_v50 }
 0xb9c   : > { %v7936_v25 = vadd.f32 %v5707_v46, %v4010_v60  ;;  %v7939_v20 = vpop.f32.mrf.mxu1  ;;  %v3580_v1 = vmul.f32 %v5825_v24, %v3579_v15  ;;  %vm3593_vm7 = vmor %vm3591_vm5, %vm3592_vm3 }
 0xb9d   : > { %v3587_v39 = vmul.f32 %v5827_v50, %v3586_v38  ;;  %v4009_v32 = vadd.f32 %v7939_v20, %v3891_v49  ;;  %v3676_v4 = vmax.f32 %v3660_v26, 0.0  ;;  %v3420_v26 = vpop.xlane.xlu2 %3419 }
 0xb9e   : > { %4076 = vadd.xlane.f32.xlu1 %v7936_v25  ;;  %v3584_v7 = vsel %vm3583_vm8, %v5825_v24, %v3580_v1 }
 0xb9f   : > { %v3588_v8 = vmul.f32 0.5, %v3587_v39  ;;  %v7945_v47 = vadd.f32 %v5706_v37, %v4009_v32  ;;  %v3829_v58 = vpack.c.bf16 %v3676_v4, %v3675_v53  ;;  %v3627_v55 = vmul.f32 %v3584_v7, %v7836_v54  ;;  %v5709_v39 = vld [vmem:[%s8490_s1 + $0x3] ss:$0 sm:$0xff] }
 0xba0   : > { %v3437_v32 = vmul.f32 %v3420_v26, %v6357_v10 }
 0xba1   : > { %v3589_v57 = vsub.f32 1.5, %v3588_v8  ;;  %v3896_v30 = vpop.f32.mrf.mxu3  ;;  %4074 = vadd.xlane.f32.xlu2 %v7945_v47  ;;  %v3644_v24 = vmul.f32 %v7684_v13, %v3627_v55 }
 0xba2   : > { %v4011_v29 = vadd.f32 %v7939_v20, %v3896_v30 }
 0xba3   : > { %v3590_v6 = vmul.f32 %v5827_v50, %v3589_v57  ;;  %v3661_v54 = vadd.f32 %v7694_v48, %v3644_v24  ;;  %v3453_v57 = vadd.f32 1e-05, %v3437_v32 }
 0xba4   : > { %v7950_v16 = vadd.f32 %v5707_v46, %v4011_v29 }
 0xba5   : > { %v3594_v49 = vsel %vm3593_vm7, %v5827_v50, %v3590_v6  ;;  %v3677_v60 = vmax.f32 %v3661_v54, 0.0  ;;  %5828 = vrsqrt.f32 %v3453_v57  ;;  %vm3601_vm10 = vweird.f32 %v3453_v57 }
 0xba6   : > { %v3628_v37 = vmul.f32 %v3594_v49, %v7853_v59  ;;  %4078 = vadd.xlane.f32.xlu0 %v7950_v16 }
 0xba8   : > { %3913 = vmatmul.bf16.gmra.mxu3 %v3829_v58  ;;  %v3645_v42 = vmul.f32 %v7684_v13, %v3628_v37 }
 0xba9   : > { %v3899_v33 = vpop.f32.mrf.mxu3 }
 0xbaa   : > { %v4012_v0 = vadd.f32 %v7924_v35, %v3899_v33  ;;  %v3662_v59 = vadd.f32 %v7694_v48, %v3645_v42 }
 0xbab   : > { %v5829_v31 = vpop.eup %5828 }
 0xbac   : > { %v7960_v46 = vadd.f32 %v5708_v19, %v4012_v0  ;;  %v3678_v62 = vmax.f32 %v3662_v59, 0.0  ;;  %v3596_v1 = vmul.f32 %v5829_v31, %v3453_v57  ;;  %vm3602_vm9 = vweird.f32 %v5829_v31 }
 0xbad   : > { %vm3603_vm11 = vmor %vm3601_vm10, %vm3602_vm9 }
 0xbae   : > { %4080 = vadd.xlane.f32.xlu2 %v7960_v46  ;;  %v3830_v43 = vpack.c.bf16 %v3678_v62, %v3677_v60  ;;  %v3597_v30 = vmul.f32 %v5829_v31, %v3596_v1 }
 0xbb0   : > { %v3598_v4 = vmul.f32 0.5, %v3597_v30 }
 0xbb1   : > { %v3901_v50 = vpop.f32.mrf.mxu3 }
 0xbb2   : > { %v4013_v27 = vadd.f32 %v7939_v20, %v3901_v50  ;;  %v3599_v53 = vsub.f32 1.5, %v3598_v4 }
 0xbb4   : > { %v7967_v38 = vadd.f32 %v5708_v19, %v4013_v27  ;;  %v3600_v7 = vmul.f32 %v5829_v31, %v3599_v53 }
 0xbb6   : > { %4082 = vadd.xlane.f32.xlu1 %v7967_v38  ;;  %v3604_v55 = vsel %vm3603_vm11, %v5829_v31, %v3600_v7 }
 0xbb7   : > { %v3629_v0 = vmul.f32 %v3604_v55, %v7866_v23 }
 0xbb8   : > { %3918 = vmatmul.bf16.gmra.mxu3 %v3830_v43 }
 0xbb9   : > { %v3904_v45 = vpop.f32.mrf.mxu3  ;;  %v3646_v54 = vmul.f32 %v7684_v13, %v3629_v0 }
 0xbba   : > { %v4014_v15 = vadd.f32 %v7924_v35, %v3904_v45 }
 0xbbb   : > { %v3663_v23 = vadd.f32 %v7694_v48, %v3646_v54 }
 0xbbc   : > { %v7974_v8 = vadd.f32 %v5709_v39, %v4014_v15 }
 0xbbd   : > { %v3679_v57 = vmax.f32 %v3663_v23, 0.0  ;;  %v5711_v23 = vld [vmem:[%s8490_s1 + $0x5] ss:$0 sm:$0xff] }
 0xbbe   : > { %4084 = vadd.xlane.f32.xlu1 %v7974_v8 }
 0xbc1   : > { %v3906_v45 = vpop.f32.mrf.mxu3 }
 0xbc2   : > { %v4015_v1 = vadd.f32 %v7939_v20, %v3906_v45 }
 0xbc4   : > { %v7997_v4 = vadd.f32 %v5709_v39, %v4015_v1 }
 0xbf9   : > { %v3422_v6 = vpop.xlane.xlu1 %3421 }
 0xbfa   : > { %v3438_v29 = vmul.f32 %v3422_v6, %v6357_v10 }
 0xbfc   : > { %v3454_v49 = vadd.f32 1e-05, %v3438_v29 }
 0xbfe   : > { %5830 = vrsqrt.f32 %v3454_v49  ;;  %vm3611_vm13 = vweird.f32 %v3454_v49 }
 0xc04   : > { %v5831_v37 = vpop.eup %5830 }
 0xc05   : > { %v3606_v58 = vmul.f32 %v5831_v37, %v3454_v49  ;;  %vm3612_vm12 = vweird.f32 %v5831_v37 }
 0xc06   : > { %vm3613_vm14 = vmor %vm3611_vm13, %vm3612_vm12 }
 0xc07   : > { %v3607_v19 = vmul.f32 %v5831_v37, %v3606_v58  ;;  %v5710_v58 = vld [vmem:[%s8490_s1 + $0x4] ss:$0 sm:$0xff] }
 0xc09   : > { %v3608_v33 = vmul.f32 0.5, %v3607_v19 }
 0xc0b   : > { %v3609_v42 = vsub.f32 1.5, %v3608_v33 }
 0xc0c   : > { %v4073_v59 = vpop.xlane.xlu0 %4072 }
 0xc0d   : > { %v3610_v24 = vmul.f32 %v5831_v37, %v3609_v42  ;;  %v4104_v27 = vmul.f32 %v4073_v59, %v6357_v10 }
 0xc0f   : > { %v3614_v50 = vsel %vm3613_vm14, %v5831_v37, %v3610_v24  ;;  %v7984_v60 = vsub.f32 %v7931_v51, %v4104_v27 }
 0xc10   : > { %v3630_v62 = vmul.f32 %v3614_v50, %v7893_v5 }
 0xc11   : > { %v4136_v15 = vmul.f32 %v7984_v60, %v7984_v60  ;;  %v4077_v51 = vpop.xlane.xlu1 %4076 }
 0xc12   : > { %v3647_v43 = vmul.f32 %v7684_v13, %v3630_v62 }
 0xc13   : > { %4152 = vadd.xlane.f32.xlu0 %v4136_v15 }
 0xc14   : > { %v3664_v26 = vadd.f32 %v7694_v48, %v3647_v43  ;;  %v4075_v32 = vpop.xlane.xlu2 %4074  ;;  %v4106_v48 = vmul.f32 %v4077_v51, %v6357_v10 }
 0xc15   : > { %v4105_v5 = vmul.f32 %v4075_v32, %v6357_v10 }
 0xc16   : > { %v3680_v31 = vmax.f32 %v3664_v26, 0.0  ;;  %v8009_v37 = vsub.f32 %v7936_v25, %v4106_v48 }
 0xc17   : > { %v7994_v13 = vsub.f32 %v7945_v47, %v4105_v5  ;;  %v5712_v5 = vld [vmem:[%s8490_s1 + $0x6] ss:$0 sm:$0xff] }
 0xc18   : > { %v3831_v30 = vpack.c.bf16 %v3680_v31, %v3679_v57  ;;  %v4138_v33 = vmul.f32 %v8009_v37, %v8009_v37 }
 0xc19   : > { %v4079_v6 = vpop.xlane.xlu0 %4078  ;;  %v4137_v49 = vmul.f32 %v7994_v13, %v7994_v13 }
 0xc1a   : > { %v4107_v29 = vmul.f32 %v4079_v6, %v6357_v10  ;;  %3923 = vmatmul.bf16.gmra.mxu3 %v3831_v30 }
 0xc1b   : > { %v3909_v53 = vpop.f32.mrf.mxu3  ;;  %4086 = vadd.xlane.f32.xlu0 %v7997_v4  ;;  %4154 = vadd.xlane.f32.xlu2 %v4137_v49  ;;  %v5556_v49 = vld [vmem:[%s8401_s22 + $0x38] sm:$0xff] }
 0xc1c   : > { %v8003_v7 = vsub.f32 %v7950_v16, %v4107_v29  ;;  %v4016_v39 = vadd.f32 %v7924_v35, %v3909_v53  ;;  %4514 = vmatpush.bf16.msrb.mxu2 %v5556_v49  ;;  %v5555_v53 = vld [vmem:[%s8401_s22 + $0x30] sm:$0xff] }
 0xc1e   : > { %v4139_v47 = vmul.f32 %v8003_v7, %v8003_v7  ;;  %v8016_v19 = vadd.f32 %v5710_v58, %v4016_v39  ;;  %v5553_v39 = vld [vmem:[%s8401_s22 + $0x20] sm:$0xff] }
 0xc20   : > { %4158 = vadd.xlane.f32.xlu1 %v4139_v47  ;;  %4515 = vmatpush.bf16.msrb.mxu2 %v5555_v53  ;;  %v5554_v47 = vld [vmem:[%s8401_s22 + $0x28] sm:$0xff] }
 0xc21   : > { %v4081_v55 = vpop.xlane.xlu2 %4080 }
 0xc22   : > { %v4108_v16 = vmul.f32 %v4081_v55, %v6357_v10  ;;  %v5551_v55 = vld [vmem:[%s8401_s22 + $0x10] sm:$0xff] }
 0xc23   : > { %v3911_v0 = vpop.f32.mrf.mxu3  ;;  %4088 = vadd.xlane.f32.xlu0 %v8016_v19  ;;  %4156 = vadd.xlane.f32.xlu2 %v4138_v33  ;;  %v5550_v33 = vld [vmem:[%s8401_s22 + $0x8] sm:$0xff] }
 0xc24   : > { %v8021_v42 = vsub.f32 %v7960_v46, %v4108_v16  ;;  %v4017_v24 = vadd.f32 %v7939_v20, %v3911_v0  ;;  %4516 = vmatpush.bf16.msrb.mxu2 %v5554_v47 }
 0xc26   : > { %v4140_v25 = vmul.f32 %v8021_v42, %v8021_v42  ;;  %v8028_v50 = vadd.f32 %v5710_v58, %v4017_v24  ;;  %v5552_v58 = vld [vmem:[%s8401_s22 + $0x18] sm:$0xff]  ;;  %v5549_v24 = vld [vmem:[%s8401_s22] sm:$0xff] }
 0xc28   : > { %4160 = vadd.xlane.f32.xlu1 %v4140_v25  ;;  %4517 = vmatpush.bf16.msrb.mxu2 %v5553_v39 }
 0xc29   : > { %v4083_v59 = vpop.xlane.xlu1 %4082 }
 0xc2a   : > { %v4109_v54 = vmul.f32 %v4083_v59, %v6357_v10 }
 0xc2b   : > { %v3914_v27 = vpop.f32.mrf.mxu3  ;;  %4090 = vadd.xlane.f32.xlu2 %v8028_v50 }
 0xc2c   : > { %v8031_v62 = vsub.f32 %v7967_v38, %v4109_v54  ;;  %v4018_v43 = vadd.f32 %v7924_v35, %v3914_v27  ;;  %4518 = vmatpush.bf16.msrb.mxu2 %v5552_v58 }
 0xc2e   : > { %v4141_v46 = vmul.f32 %v8031_v62, %v8031_v62  ;;  %v8041_v26 = vadd.f32 %v5711_v23, %v4018_v43 }
 0xc30   : > { %4162 = vadd.xlane.f32.xlu0 %v4141_v46  ;;  %4519 = vmatpush.bf16.msrb.mxu2 %v5551_v55 }
 0xc31   : > { %v4085_v45 = vpop.xlane.xlu1 %4084 }
 0xc32   : > { %v4110_v15 = vmul.f32 %v4085_v45, %v6357_v10 }
 0xc33   : > { %v3916_v32 = vpop.f32.mrf.mxu3  ;;  %4092 = vadd.xlane.f32.xlu2 %v8041_v26 }
 0xc34   : > { %v8044_v38 = vsub.f32 %v7974_v8, %v4110_v15  ;;  %v4019_v57 = vadd.f32 %v7939_v20, %v3916_v32  ;;  %4520 = vmatpush.bf16.msrb.mxu2 %v5550_v33 }
 0xc36   : > { %v8048_v31 = vadd.f32 %v5711_v23, %v4019_v57  ;;  %v4142_v1 = vmul.f32 %v8044_v38, %v8044_v38 }
 0xc38   : > { %4094 = vadd.xlane.f32.xlu1 %v8048_v31  ;;  %4164 = vadd.xlane.f32.xlu0 %v4142_v1 }
 0xc39   : > { %4521 = vmatpush.bf16.msrb.mxu2 %v5549_v24  ;;  %v5713_v24 = vld [vmem:[%s8490_s1 + $0x7] ss:$0 sm:$0xff]  ;;  %s4865_s1 = sshll.u32 %s4862_s26, 4  ;;  %s4866_s1 = int_to_ptr.hbm [resolvable:$true] %s4865_s1 }
 0xc3a   : > { %s5891_s3 = sshra.s32 %s4866_s1, 4  ;;  %s5892_s3 = int_to_ptr.hbm [resolvable:$true] %s5891_s3 }
 0xc3b   : > { %v3919_v51 = vpop.f32.mrf.mxu3  ;;  %s5893_s4 = scalar_lea.hbm %s5892_s3, 16  ;;  %p5898_p0 = scmp.lt.s32.totalorder %s5892_s3, %s8502_s27 }
 0xc3c   : > { %v4020_v8 = vadd.f32 %v7924_v35, %v3919_v51  ;;  %p5894_p11 = scmp.ne.s32.totalorder %s5892_s3, %s5893_s4  ;;  %p5899_p1 = scmp.lt.s32.totalorder %s5897_s8, %s5893_s4 }
 0xc3e   : > { %v8057_v30 = vadd.f32 %v5712_v5, %v4020_v8  ;;  %p5895_p12 = pnand %p5894_p11, %p6119_p5  ;;  %p5900_p2 = por %p5899_p1, %p5898_p0 }
 0xc40   : > { %4096 = vadd.xlane.f32.xlu1 %v8057_v30  ;;  %p5896_p13 = pneg %p5895_p12 }
 0xc42   : > { %p5901_p3 = pnand %p5900_p2, %p5896_p13 }
 0xc43   : > { %v3921_v6 = vpop.f32.mrf.mxu3 }
 0xc44   : > { %v4021_v29 = vadd.f32 %v7939_v20, %v3921_v6 }
 0xc46   : > { %v8061_v48 = vadd.f32 %v5712_v5, %v4021_v29 }
 0xc48   : > { %4098 = vadd.xlane.f32.xlu0 %v8061_v48 }
 0xc86   : > { %v4153_v16 = vpop.xlane.xlu0 %4152 }
 0xc87   : > { %v4184_v0 = vmul.f32 %v4153_v16, %v6357_v10 }
 0xc89   : > { %v4200_v25 = vadd.f32 1e-05, %v4184_v0 }
 0xc8b   : > { %5832 = vrsqrt.f32 %v4200_v25  ;;  %vm4222_vm0 = vweird.f32 %v4200_v25 }
 0xc8e   : > { %v4087_v59 = vpop.xlane.xlu0 %4086  ;;  %v4155_v54 = vpop.xlane.xlu2 %4154 }
 0xc8f   : > { %v4111_v27 = vmul.f32 %v4087_v59, %v6357_v10  ;;  %v4185_v46 = vmul.f32 %v4155_v54, %v6357_v10 }
 0xc91   : > { %v5833_v43 = vpop.eup %5832  ;;  %v8092_v23 = vsub.f32 %v7997_v4, %v4111_v27  ;;  %v4201_v45 = vadd.f32 1e-05, %v4185_v46 }
 0xc92   : > { %v4217_v32 = vmul.f32 %v5833_v43, %v4200_v25  ;;  %vm4223_vm15 = vweird.f32 %v5833_v43 }
 0xc93   : > { %v4159_v15 = vpop.xlane.xlu1 %4158  ;;  %5834 = vrsqrt.f32 %v4201_v45  ;;  %v4143_v1 = vmul.f32 %v8092_v23, %v8092_v23  ;;  %vm8111_vm1 = vmor %vm4222_vm0, %vm4223_vm15  ;;  %vm4232_vm3 = vweird.f32 %v4201_v45 }
 0xc94   : > { %v4187_v57 = vmul.f32 %v4159_v15, %v6357_v10  ;;  %v4218_v5 = vmul.f32 %v5833_v43, %v4217_v32 }
 0xc95   : > { %4166 = vadd.xlane.f32.xlu2 %v4143_v1  ;;  %v8130_v1 = vld [vmem:[%s8467_s9 + $0x8] sm:$0xff] }
 0xc96   : > { %v8097_v51 = vadd.f32 1e-05, %v4187_v57  ;;  %v4219_v8 = vmul.f32 0.5, %v4218_v5  ;;  %v4089_v6 = vpop.xlane.xlu0 %4088  ;;  %v4157_v29 = vpop.xlane.xlu2 %4156  ;;  %v8133_v5 = vperm.slane %v8130_v1, 4 }
 0xc97   : > { %v4112_v4 = vmul.f32 %v4089_v6, %v6357_v10  ;;  %v4186_v49 = vmul.f32 %v4157_v29, %v6357_v10 }
 0xc98   : > { %5836 = vrsqrt.f32 %v8097_v51  ;;  %v4220_v53 = vsub.f32 1.5, %v4219_v8  ;;  %vm4252_vm7 = vweird.f32 %v8097_v51 }
 0xc99   : > { %v5835_v47 = vpop.eup %5834  ;;  %v8103_v39 = vsub.f32 %v8016_v19, %v4112_v4  ;;  %v8105_v58 = vadd.f32 1e-05, %v4186_v49 }
 0xc9a   : > { %v4221_v16 = vmul.f32 %v5833_v43, %v4220_v53  ;;  %v4227_v33 = vmul.f32 %v5835_v47, %v4201_v45  ;;  %vm4233_vm2 = vweird.f32 %v5835_v47 }
 0xc9b   : > { %v4161_v55 = vpop.xlane.xlu1 %4160  ;;  %5838 = vrsqrt.f32 %v8105_v58  ;;  %v4144_v19 = vmul.f32 %v8103_v39, %v8103_v39  ;;  %vm4234_vm4 = vmor %vm4232_vm3, %vm4233_vm2  ;;  %vm4242_vm9 = vweird.f32 %v8105_v58 }
 0xc9c   : > { %v4188_v0 = vmul.f32 %v4161_v55, %v6357_v10  ;;  %v4225_v25 = vsel %vm8111_vm1, %v5833_v43, %v4221_v16  ;;  %v4228_v46 = vmul.f32 %v5835_v47, %v4227_v33 }
 0xc9d   : > { %v3924_v54 = vpop.f32.mrf.mxu3  ;;  %4168 = vadd.xlane.f32.xlu2 %v4144_v19  ;;  %v4376_v29 = vmul.f32 %v4225_v25, %v7984_v60  ;;  %v8148_v19 = vperm.slane %v8130_v1, 5 }
 0xc9e   : > { %v8118_v27 = vpop.eup %5836  ;;  %v8122_v15 = vadd.f32 1e-05, %v4188_v0  ;;  %v4022_v32 = vadd.f32 %v7924_v35, %v3924_v54  ;;  %v4229_v8 = vmul.f32 0.5, %v4228_v46  ;;  %v4091_v43 = vpop.xlane.xlu2 %4090 }
 0xc9f   : > { %v4247_v57 = vmul.f32 %v8118_v27, %v8097_v51  ;;  %v4113_v4 = vmul.f32 %v4091_v43, %v6357_v10  ;;  %vm4253_vm5 = vweird.f32 %v8118_v27 }
 0xca0   : > { %v8135_v6 = vadd.f32 %v5713_v24, %v4022_v32  ;;  %5840 = vrsqrt.f32 %v8122_v15  ;;  %v4230_v49 = vsub.f32 1.5, %v4229_v8  ;;  %v4393_v32 = vmul.f32 %v8133_v5, %v4376_v29  ;;  %vm8175_vm8 = vmor %vm4252_vm7, %vm4253_vm5 }
 0xca1   : > { %v4248_v35 = vmul.f32 %v8118_v27, %v4247_v57  ;;  %v5839_v53 = vpop.eup %5838  ;;  %v8143_v16 = vsub.f32 %v8028_v50, %v4113_v4  ;;  %vm4262_vm15 = vweird.f32 %v8122_v15 }
 0xca2   : > { %4100 = vadd.xlane.f32.xlu0 %v8135_v6  ;;  %v4231_v0 = vmul.f32 %v5835_v47, %v4230_v49  ;;  %v4237_v60 = vmul.f32 %v5839_v53, %v8105_v58  ;;  %vm4243_vm6 = vweird.f32 %v5839_v53 }
 0xca3   : > { %v4249_v55 = vmul.f32 0.5, %v4248_v35  ;;  %v4163_v33 = vpop.xlane.xlu0 %4162  ;;  %v4145_v25 = vmul.f32 %v8143_v16, %v8143_v16  ;;  %vm4244_vm10 = vmor %vm4242_vm9, %vm4243_vm6 }
 0xca4   : > { %v4189_v59 = vmul.f32 %v4163_v33, %v6357_v10  ;;  %v4235_v50 = vsel %vm4234_vm4, %v5835_v47, %v4231_v0  ;;  %v4238_v57 = vmul.f32 %v5839_v53, %v4237_v60  ;;  %v4410_v33 = vadd.f32 %v8148_v19, %v4393_v32 }
 0xca5   : > { %v4250_v54 = vsub.f32 1.5, %v4249_v55  ;;  %v3926_v46 = vpop.f32.mrf.mxu3  ;;  %v4377_v35 = vmul.f32 %v4235_v50, %v7994_v13  ;;  %4170 = vadd.xlane.f32.xlu1 %v4145_v25 }
 0xca6   : > { %v8153_v8 = vadd.f32 1e-05, %v4189_v59  ;;  %v4023_v45 = vadd.f32 %v7939_v20, %v3926_v46  ;;  %v8156_v43 = vpop.eup %5840  ;;  %v4239_v4 = vmul.f32 0.5, %v4238_v57  ;;  %v4093_v55 = vpop.xlane.xlu2 %4092  ;;  %v4426_v51 = vmax.f32 %v4410_v33, 0.0 }
 0xca7   : > { %v4114_v47 = vmul.f32 %v4093_v55, %v6357_v10  ;;  %v4394_v29 = vmul.f32 %v8133_v5, %v4377_v35  ;;  %v4251_v20 = vmul.f32 %v8118_v27, %v4250_v54  ;;  %v4257_v13 = vmul.f32 %v8156_v43, %v8122_v15 }
 0xca8   : > { %5842 = vrsqrt.f32 %v8153_v8  ;;  %v8160_v49 = vadd.f32 %v5713_v24, %v4023_v45  ;;  %v4240_v0 = vsub.f32 1.5, %v4239_v4  ;;  %vm4263_vm12 = vweird.f32 %v8156_v43 }
 0xca9   : > { %v8172_v24 = vsub.f32 %v8041_v26, %v4114_v47  ;;  %v4411_v59 = vadd.f32 %v8148_v19, %v4394_v29  ;;  %v4255_v57 = vsel %vm8175_vm8, %v8118_v27, %v4251_v20  ;;  %v4258_v35 = vmul.f32 %v8156_v43, %v4257_v13  ;;  %vm4264_vm0 = vmor %vm4262_vm15, %vm4263_vm12 }
 0xcaa   : > { %4102 = vadd.xlane.f32.xlu2 %v8160_v49  ;;  %v4241_v54 = vmul.f32 %v5839_v53, %v4240_v0  ;;  %v4379_v0 = vmul.f32 %v4255_v57, %v8003_v7  ;;  %vm4272_vm13 = vweird.f32 %v8153_v8 }
 0xcab   : > { %v4095_v60 = vpop.xlane.xlu1 %4094  ;;  %v4146_v32 = vmul.f32 %v8172_v24, %v8172_v24  ;;  %v4427_v50 = vmax.f32 %v4411_v59, 0.0  ;;  %v4259_v27 = vmul.f32 0.5, %v4258_v35  ;;  %v4165_v20 = vpop.xlane.xlu0 %4164 }
 0xcac   : > { %v4115_v46 = vmul.f32 %v4095_v60, %v6357_v10  ;;  %v4245_v45 = vsel %vm4244_vm10, %v5839_v53, %v4241_v54  ;;  %v4396_v25 = vmul.f32 %v8133_v5, %v4379_v0 }
 0xcad   : > { %4172 = vadd.xlane.f32.xlu1 %v4146_v32  ;;  %v4458_v55 = vpack.c.bf16 %v4427_v50, %v4426_v51  ;;  %v4378_v29 = vmul.f32 %v4245_v45, %v8009_v37  ;;  %v4260_v54 = vsub.f32 1.5, %v4259_v27 }
 0xcae   : > { %v5843_v26 = vpop.eup %5842  ;;  %v8188_v4 = vsub.f32 %v8048_v31, %v4115_v46  ;;  %v4413_v51 = vadd.f32 %v8148_v19, %v4396_v25 }
 0xcaf   : > { %v4267_v58 = vmul.f32 %v5843_v26, %v8153_v8  ;;  %4522 = vmatmul.bf16.vlgmr.msrb.gmra.mxu2 %v4458_v55  ;;  %v4395_v31 = vmul.f32 %v8133_v5, %v4378_v29  ;;  %vm4273_vm11 = vweird.f32 %v5843_v26  ;;  %v4261_v50 = vmul.f32 %v8156_v43, %v4260_v54 }
 0xcb0   : > { %v4147_v47 = vmul.f32 %v8188_v4, %v8188_v4  ;;  %vm4274_vm14 = vmor %vm4272_vm13, %vm4273_vm11 }
 0xcb1   : > { %v4268_v33 = vmul.f32 %v5843_v26, %v4267_v58  ;;  %v4412_v37 = vadd.f32 %v8148_v19, %v4395_v31  ;;  %v4429_v58 = vmax.f32 %v4413_v51, 0.0  ;;  %v4265_v55 = vsel %vm4264_vm0, %v8156_v43, %v4261_v50 }
 0xcb2   : > { %4174 = vadd.xlane.f32.xlu0 %v4147_v47  ;;  %v4380_v0 = vmul.f32 %v4265_v55, %v8021_v42 }
 0xcb3   : > { %v4269_v53 = vmul.f32 0.5, %v4268_v33  ;;  %v4097_v13 = vpop.xlane.xlu1 %4096 }
 0xcb4   : > { %v4116_v60 = vmul.f32 %v4097_v13, %v6357_v10 }
 0xcb5   : > { %v4270_v59 = vsub.f32 1.5, %v4269_v53 }
 0xcb6   : > { %v8199_v46 = vsub.f32 %v8057_v30, %v4116_v60  ;;  %v4428_v30 = vmax.f32 %v4412_v37, 0.0 }
 0xcb7   : > { %v4271_v32 = vmul.f32 %v5843_v26, %v4270_v59 }
 0xcb8   : > { %v4148_v7 = vmul.f32 %v8199_v46, %v8199_v46  ;;  %v4459_v29 = vpack.c.bf16 %v4429_v58, %v4428_v30 }
 0xcb9   : > { %v4275_v45 = vsel %vm4274_vm14, %v5843_v26, %v4271_v32  ;;  %v4397_v26 = vmul.f32 %v8133_v5, %v4380_v0 }
 0xcba   : > { %4176 = vadd.xlane.f32.xlu2 %v4148_v7  ;;  %v4381_v33 = vmul.f32 %v4275_v45, %v8031_v62  ;;  %v4190_v62 = vmul.f32 %v4165_v20, %v6357_v10 }
 0xcbb   : > { %v4099_v57 = vpop.xlane.xlu0 %4098  ;;  %v4414_v43 = vadd.f32 %v8148_v19, %v4397_v26 }
 0xcbc   : > { %v4117_v35 = vmul.f32 %v4099_v57, %v6357_v10  ;;  %v4398_v15 = vmul.f32 %v8133_v5, %v4381_v33  ;;  %v4206_v31 = vadd.f32 1e-05, %v4190_v62 }
 0xcbd   : > { %v4430_v53 = vmax.f32 %v4414_v43, 0.0 }
 0xcbe   : > { %v8212_v47 = vsub.f32 %v8061_v48, %v4117_v35  ;;  %v4415_v27 = vadd.f32 %v8148_v19, %v4398_v15  ;;  %5844 = vrsqrt.f32 %v4206_v31  ;;  %vm4282_vm2 = vweird.f32 %v4206_v31 }
 0xcbf   : > { %4527 = vmatmul.bf16.gmra.mxu2 %v4459_v29 }
 0xcc0   : > { %v4149_v8 = vmul.f32 %v8212_v47, %v8212_v47  ;;  %v4431_v48 = vmax.f32 %v4415_v27, 0.0 }
 0xcc2   : > { %4178 = vadd.xlane.f32.xlu1 %v4149_v8  ;;  %v4460_v13 = vpack.c.bf16 %v4431_v48, %v4430_v53 }
 0xcc4   : > { %v5845_v60 = vpop.eup %5844 }
 0xcc5   : > { %v4277_v59 = vmul.f32 %v5845_v60, %v4206_v31  ;;  %vm4283_vm1 = vweird.f32 %v5845_v60 }
 0xcc6   : > { %vm4284_vm3 = vmor %vm4282_vm2, %vm4283_vm1 }
 0xcc7   : > { %v4278_v42 = vmul.f32 %v5845_v60, %v4277_v59 }
 0xcc9   : > { %v4279_v37 = vmul.f32 0.5, %v4278_v42 }
 0xccb   : > { %v4280_v7 = vsub.f32 1.5, %v4279_v37 }
 0xccd   : > { %v4281_v57 = vmul.f32 %v5845_v60, %v4280_v7 }
 0xccf   : > { %4532 = vmatmul.bf16.gmra.mxu2 %v4460_v13  ;;  %v4285_v55 = vsel %vm4284_vm3, %v5845_v60, %v4281_v57 }
 0xcd0   : > { %v4382_v27 = vmul.f32 %v4285_v55, %v8044_v38 }
 0xcd2   : > { %v4399_v60 = vmul.f32 %v8133_v5, %v4382_v27 }
 0xd08   : > { %v4167_v25 = vpop.xlane.xlu2 %4166 }
 0xd09   : > { %v4191_v54 = vmul.f32 %v4167_v25, %v6357_v10 }
 0xd0b   : > { %v4207_v32 = vadd.f32 1e-05, %v4191_v54 }
 0xd0d   : > { %5846 = vrsqrt.f32 %v4207_v32  ;;  %vm4292_vm5 = vweird.f32 %v4207_v32 }
 0xd10   : > { %v4169_v51 = vpop.xlane.xlu2 %4168 }
 0xd11   : > { %v4192_v50 = vmul.f32 %v4169_v51, %v6357_v10 }
 0xd13   : > { %v5847_v30 = vpop.eup %5846  ;;  %v4208_v45 = vadd.f32 1e-05, %v4192_v50  ;;  %v4416_v50 = vadd.f32 %v8148_v19, %v4399_v60 }
 0xd14   : > { %v4287_v35 = vmul.f32 %v5847_v30, %v4207_v32  ;;  %vm4293_vm4 = vweird.f32 %v5847_v30 }
 0xd15   : > { %v4101_v20 = vpop.xlane.xlu0 %4100  ;;  %5848 = vrsqrt.f32 %v4208_v45  ;;  %vm4294_vm6 = vmor %vm4292_vm5, %vm4293_vm4  ;;  %vm4302_vm8 = vweird.f32 %v4208_v45 }
 0xd16   : > { %v4118_v58 = vmul.f32 %v4101_v20, %v6357_v10  ;;  %v4288_v29 = vmul.f32 %v5847_v30, %v4287_v35 }
 0xd18   : > { %v8227_v33 = vsub.f32 %v8135_v6, %v4118_v58  ;;  %v4289_v8 = vmul.f32 0.5, %v4288_v29  ;;  %v4171_v0 = vpop.xlane.xlu1 %4170  ;;  %v4432_v29 = vmax.f32 %v4416_v50, 0.0 }
 0xd19   : > { %v4193_v26 = vmul.f32 %v4171_v0, %v6357_v10 }
 0xd1a   : > { %v4150_v15 = vmul.f32 %v8227_v33, %v8227_v33  ;;  %v4290_v43 = vsub.f32 1.5, %v4289_v8 }
 0xd1b   : > { %v5849_v48 = vpop.eup %5848  ;;  %v4209_v53 = vadd.f32 1e-05, %v4193_v26 }
 0xd1c   : > { %4180 = vadd.xlane.f32.xlu0 %v4150_v15  ;;  %v4291_v62 = vmul.f32 %v5847_v30, %v4290_v43  ;;  %v4297_v31 = vmul.f32 %v5849_v48, %v4208_v45  ;;  %vm4303_vm7 = vweird.f32 %v5849_v48 }
 0xd1d   : > { %v4103_v13 = vpop.xlane.xlu2 %4102  ;;  %5850 = vrsqrt.f32 %v4209_v53  ;;  %vm4304_vm9 = vmor %vm4302_vm8, %vm4303_vm7  ;;  %vm4312_vm11 = vweird.f32 %v4209_v53 }
 0xd1e   : > { %v4119_v6 = vmul.f32 %v4103_v13, %v6357_v10  ;;  %v4295_v59 = vsel %vm4294_vm6, %v5847_v30, %v4291_v62  ;;  %v4298_v42 = vmul.f32 %v5849_v48, %v4297_v31 }
 0xd1f   : > { %v4383_v38 = vmul.f32 %v4295_v59, %v8092_v23 }
 0xd20   : > { %v8236_v25 = vsub.f32 %v8160_v49, %v4119_v6  ;;  %v4299_v54 = vmul.f32 0.5, %v4298_v42  ;;  %v4173_v37 = vpop.xlane.xlu1 %4172 }
 0xd21   : > { %v4194_v32 = vmul.f32 %v4173_v37, %v6357_v10  ;;  %v4400_v51 = vmul.f32 %v8133_v5, %v4383_v38 }
 0xd22   : > { %v4151_v7 = vmul.f32 %v8236_v25, %v8236_v25  ;;  %v4300_v57 = vsub.f32 1.5, %v4299_v54 }
 0xd23   : > { %v5851_v30 = vpop.eup %5850  ;;  %v4210_v20 = vadd.f32 1e-05, %v4194_v32  ;;  %v4417_v35 = vadd.f32 %v8148_v19, %v4400_v51 }
 0xd24   : > { %4182 = vadd.xlane.f32.xlu2 %v4151_v7  ;;  %v4301_v23 = vmul.f32 %v5849_v48, %v4300_v57  ;;  %v4307_v58 = vmul.f32 %v5851_v30, %v4209_v53  ;;  %vm4313_vm10 = vweird.f32 %v5851_v30 }
 0xd25   : > { %v4175_v49 = vpop.xlane.xlu0 %4174  ;;  %5852 = vrsqrt.f32 %v4210_v20  ;;  %v4433_v8 = vmax.f32 %v4417_v35, 0.0  ;;  %vm4314_vm12 = vmor %vm4312_vm11, %vm4313_vm10  ;;  %vm4322_vm14 = vweird.f32 %v4210_v20 }
 0xd26   : > { %v4195_v55 = vmul.f32 %v4175_v49, %v6357_v10  ;;  %v4308_v0 = vmul.f32 %v5851_v30, %v4307_v58  ;;  %v4305_v26 = vsel %vm4304_vm9, %v5849_v48, %v4301_v23 }
 0xd27   : > { %v4461_v27 = vpack.c.bf16 %v4433_v8, %v4432_v29  ;;  %v4384_v13 = vmul.f32 %v4305_v26, %v8103_v39 }
 0xd28   : > { %v4211_v15 = vadd.f32 1e-05, %v4195_v55  ;;  %v4309_v43 = vmul.f32 0.5, %v4308_v0 }
 0xd29   : > { %4537 = vmatmul.bf16.gmra.mxu2 %v4461_v27  ;;  %v4401_v37 = vmul.f32 %v8133_v5, %v4384_v13 }
 0xd2a   : > { %5854 = vrsqrt.f32 %v4211_v15  ;;  %v4310_v62 = vsub.f32 1.5, %v4309_v43  ;;  %vm4332_vm1 = vweird.f32 %v4211_v15 }
 0xd2b   : > { %v5853_v31 = vpop.eup %5852  ;;  %v4418_v49 = vadd.f32 %v8148_v19, %v4401_v37 }
 0xd2c   : > { %v4311_v60 = vmul.f32 %v5851_v30, %v4310_v62  ;;  %v4317_v45 = vmul.f32 %v5853_v31, %v4210_v20  ;;  %vm4323_vm13 = vweird.f32 %v5853_v31 }
 0xd2d   : > { %v4177_v6 = vpop.xlane.xlu2 %4176  ;;  %vm4324_vm0 = vmor %vm4322_vm14, %vm4323_vm13  ;;  %v4434_v26 = vmax.f32 %v4418_v49, 0.0 }
 0xd2e   : > { %v4196_v59 = vmul.f32 %v4177_v6, %v6357_v10  ;;  %v4315_v38 = vsel %vm4314_vm12, %v5851_v30, %v4311_v60  ;;  %v4318_v54 = vmul.f32 %v5853_v31, %v4317_v45 }
 0xd2f   : > { %v4385_v7 = vmul.f32 %v4315_v38, %v8143_v16 }
 0xd30   : > { %v5855_v42 = vpop.eup %5854  ;;  %v4212_v48 = vadd.f32 1e-05, %v4196_v59  ;;  %v4319_v39 = vmul.f32 0.5, %v4318_v54 }
 0xd31   : > { %v4327_v32 = vmul.f32 %v5855_v42, %v4211_v15  ;;  %v4402_v50 = vmul.f32 %v8133_v5, %v4385_v7  ;;  %vm4333_vm15 = vweird.f32 %v5855_v42 }
 0xd32   : > { %5856 = vrsqrt.f32 %v4212_v48  ;;  %v4320_v57 = vsub.f32 1.5, %v4319_v39  ;;  %v4523_v53 = vpop.f32.mrf.mxu2  ;;  %vm4334_vm2 = vmor %vm4332_vm1, %vm4333_vm15  ;;  %vm4342_vm4 = vweird.f32 %v4212_v48 }
 0xd33   : > { %v4328_v51 = vmul.f32 %v5855_v42, %v4327_v32  ;;  %v4419_v30 = vadd.f32 %v8148_v19, %v4402_v50 }
 0xd34   : > { %v4321_v58 = vmul.f32 %v5853_v31, %v4320_v57 }
 0xd35   : > { %v4329_v35 = vmul.f32 0.5, %v4328_v51  ;;  %v4179_v23 = vpop.xlane.xlu1 %4178  ;;  %v4435_v29 = vmax.f32 %v4419_v30, 0.0 }
 0xd36   : > { %v4197_v55 = vmul.f32 %v4179_v23, %v6357_v10  ;;  %v4325_v27 = vsel %vm4324_vm0, %v5853_v31, %v4321_v58 }
 0xd37   : > { %v4330_v16 = vsub.f32 1.5, %v4329_v35  ;;  %v4462_v62 = vpack.c.bf16 %v4435_v29, %v4434_v26  ;;  %v4386_v45 = vmul.f32 %v4325_v27, %v8172_v24 }
 0xd38   : > { %v5857_v8 = vpop.eup %5856  ;;  %v4213_v0 = vadd.f32 1e-05, %v4197_v55 }
 0xd39   : > { %v4331_v43 = vmul.f32 %v5855_v42, %v4330_v16  ;;  %v4337_v13 = vmul.f32 %v5857_v8, %v4212_v48  ;;  %4542 = vmatmul.bf16.gmra.mxu2 %v4462_v62  ;;  %v4403_v31 = vmul.f32 %v8133_v5, %v4386_v45  ;;  %vm4343_vm3 = vweird.f32 %v5857_v8 }
 0xd3a   : > { %5858 = vrsqrt.f32 %v4213_v0  ;;  %v4525_v59 = vpop.f32.mrf.mxu2  ;;  %vm4344_vm6 = vmor %vm4342_vm4, %vm4343_vm3  ;;  %vm4352_vm7 = vweird.f32 %v4213_v0 }
 0xd3b   : > { %v4335_v6 = vsel %vm4334_vm2, %v5855_v42, %v4331_v43  ;;  %v4338_v60 = vmul.f32 %v5857_v8, %v4337_v13  ;;  %v4579_v42 = vmul.f32 %v5635_v3, %v4523_v53  ;;  %v4420_v24 = vadd.f32 %v8148_v19, %v4403_v31 }
 0xd3c   : > { %v4387_v20 = vmul.f32 %v4335_v6, %v8188_v4 }
 0xd3d   : > { %v4339_v38 = vmul.f32 0.5, %v4338_v60  ;;  %v4436_v30 = vmax.f32 %v4420_v24, 0.0 }
 0xd3e   : > { %v4404_v54 = vmul.f32 %v8133_v5, %v4387_v20 }
 0xd3f   : > { %v4340_v7 = vsub.f32 1.5, %v4339_v38 }
 0xd40   : > { %v5859_v37 = vpop.eup %5858  ;;  %v4421_v32 = vadd.f32 %v8148_v19, %v4404_v54 }
 0xd41   : > { %v4347_v15 = vmul.f32 %v5859_v37, %v4213_v0  ;;  %v4341_v4 = vmul.f32 %v5857_v8, %v4340_v7  ;;  %vm4353_vm5 = vweird.f32 %v5859_v37 }
 0xd42   : > { %v4528_v51 = vpop.f32.mrf.mxu2  ;;  %v4437_v49 = vmax.f32 %v4421_v32, 0.0  ;;  %vm4354_vm8 = vmor %vm4352_vm7, %vm4353_vm5 }
 0xd43   : > { %v4348_v39 = vmul.f32 %v5859_v37, %v4347_v15  ;;  %v4581_v57 = vmul.f32 %v5641_v36, %v4528_v51  ;;  %v4345_v58 = vsel %vm4344_vm6, %v5857_v8, %v4341_v4  ;;  %v4580_v36 = vmul.f32 %v5636_v11, %v4525_v59 }
 0xd44   : > { %v4463_v3 = vpack.c.bf16 %v4437_v49, %v4436_v30  ;;  %v4388_v16 = vmul.f32 %v4345_v58, %v8199_v46 }
 0xd45   : > { %v4349_v50 = vmul.f32 0.5, %v4348_v39  ;;  %v4595_v23 = vadd.f32 %v4581_v57, %v4579_v42 }
 0xd46   : > { %v4405_v0 = vmul.f32 %v8133_v5, %v4388_v16 }
 0xd47   : > { %v4350_v35 = vsub.f32 1.5, %v4349_v50 }
 0xd48   : > { %v4422_v46 = vadd.f32 %v8148_v19, %v4405_v0 }
 0xd49   : > { %v4351_v55 = vmul.f32 %v5859_v37, %v4350_v35  ;;  %4547 = vmatmul.bf16.gmra.mxu2 %v4463_v3 }
 0xd4a   : > { %v4530_v26 = vpop.f32.mrf.mxu2  ;;  %v4438_v2 = vmax.f32 %v4422_v46, 0.0 }
 0xd4b   : > { %v4355_v53 = vsel %vm4354_vm8, %v5859_v37, %v4351_v55  ;;  %v4582_v48 = vmul.f32 %v5642_v28, %v4530_v26 }
 0xd4c   : > { %v4389_v29 = vmul.f32 %v4355_v53, %v8212_v47 }
 0xd4d   : > { %v4602_v8 = vadd.f32 %v4582_v48, %v4580_v36 }
 0xd4e   : > { %v4406_v27 = vmul.f32 %v8133_v5, %v4389_v29 }
 0xd50   : > { %v4423_v43 = vadd.f32 %v8148_v19, %v4406_v27 }
 0xd52   : > { %v4533_v13 = vpop.f32.mrf.mxu2  ;;  %v4439_v62 = vmax.f32 %v4423_v43, 0.0 }
 0xd53   : > { %v4583_v47 = vmul.f32 %v5647_v44, %v4533_v13 }
 0xd54   : > { %v4464_v11 = vpack.c.bf16 %v4439_v62, %v4438_v2 }
 0xd55   : > { %v4596_v6 = vadd.f32 %v4595_v23, %v4583_v47  ;;  %v8495_v47 = vunpack.i.h.bf16 %v7352_v17 }
 0xd59   : > { %4552 = vmatmul.bf16.gmra.mxu2 %v4464_v11 }
 0xd5a   : > { %v4535_v52 = vpop.f32.mrf.mxu2 }
 0xd5b   : > { %v4584_v28 = vmul.f32 %v5648_v63, %v4535_v52  ;;  %v8496_v52 = vunpack.i.h.bf16 %v7358_v61 }
 0xd5d   : > { %v4603_v60 = vadd.f32 %v4602_v8, %v4584_v28 }
 0xd8f   : > { %v4181_v45 = vpop.xlane.xlu0 %4180 }
 0xd90   : > { %v4198_v20 = vmul.f32 %v4181_v45, %v6357_v10  ;;  %v8497_v45 = vunpack.i.l.bf16 %v7401_v18 }
 0xd92   : > { %v4214_v59 = vadd.f32 1e-05, %v4198_v20 }
 0xd94   : > { %5860 = vrsqrt.f32 %v4214_v59  ;;  %vm4362_vm10 = vweird.f32 %v4214_v59 }
 0xd97   : > { %v4183_v38 = vpop.xlane.xlu2 %4182 }
 0xd98   : > { %v4199_v54 = vmul.f32 %v4183_v38, %v6357_v10 }
 0xd9a   : > { %v5861_v37 = vpop.eup %5860  ;;  %v4215_v44 = vadd.f32 1e-05, %v4199_v54 }
 0xd9b   : > { %v4357_v31 = vmul.f32 %v5861_v37, %v4214_v59  ;;  %vm4363_vm9 = vweird.f32 %v5861_v37 }
 0xd9c   : > { %5862 = vrsqrt.f32 %v4215_v44  ;;  %vm4364_vm11 = vmor %vm4362_vm10, %vm4363_vm9  ;;  %vm4372_vm13 = vweird.f32 %v4215_v44 }
 0xd9d   : > { %v4358_v7 = vmul.f32 %v5861_v37, %v4357_v31 }
 0xd9f   : > { %v4359_v15 = vmul.f32 0.5, %v4358_v7  ;;  %v8500_v7 = vunpack.i.h.bf16 %v7401_v18  ;;  %v5572_v18 = vld [vmem:[%s8403_s24 + $0x38] sm:$0xff] }
 0xda0   : > { %4784 = vmatpush.bf16.msrb.mxu1 %v5572_v18 }
 0xda1   : > { %v4360_v32 = vsub.f32 1.5, %v4359_v15 }
 0xda2   : > { %v5863_v39 = vpop.eup %5862 }
 0xda3   : > { %v4361_v34 = vmul.f32 %v5861_v37, %v4360_v32  ;;  %v4367_v63 = vmul.f32 %v5863_v39, %v4215_v44  ;;  %vm4373_vm12 = vweird.f32 %v5863_v39 }
 0xda4   : > { %vm4374_vm14 = vmor %vm4372_vm13, %vm4373_vm12 }
 0xda5   : > { %v4365_v42 = vsel %vm4364_vm11, %v5861_v37, %v4361_v34  ;;  %v4368_v51 = vmul.f32 %v5863_v39, %v4367_v63 }
 0xda6   : > { %v4390_v4 = vmul.f32 %v4365_v42, %v8227_v33 }
 0xda7   : > { %v4369_v24 = vmul.f32 0.5, %v4368_v51 }
 0xda8   : > { %v4407_v49 = vmul.f32 %v8133_v5, %v4390_v4 }
 0xda9   : > { %v4370_v50 = vsub.f32 1.5, %v4369_v24 }
 0xdaa   : > { %v4424_v58 = vadd.f32 %v8148_v19, %v4407_v49  ;;  %v5569_v49 = vld [vmem:[%s8403_s24 + $0x20] sm:$0xff] }
 0xdab   : > { %v4371_v57 = vmul.f32 %v5863_v39, %v4370_v50  ;;  %v5571_v50 = vld [vmem:[%s8403_s24 + $0x30] sm:$0xff] }
 0xdac   : > { %v4440_v3 = vmax.f32 %v4424_v58, 0.0  ;;  %v4538_v33 = vpop.f32.mrf.mxu2  ;;  %4785 = vmatpush.bf16.msrb.mxu1 %v5571_v50 }
 0xdad   : > { %v4375_v35 = vsel %vm4374_vm14, %v5863_v39, %v4371_v57  ;;  %v5570_v57 = vld [vmem:[%s8403_s24 + $0x28] sm:$0xff] }
 0xdae   : > { %v4391_v23 = vmul.f32 %v4375_v35, %v8236_v25  ;;  %v4585_v25 = vmul.f32 %v5652_v9, %v4538_v33  ;;  %v5568_v35 = vld [vmem:[%s8403_s24 + $0x18] sm:$0xff] }
 0xdb0   : > { %v4408_v30 = vmul.f32 %v8133_v5, %v4391_v23  ;;  %v4597_v43 = vadd.f32 %v4596_v6, %v4585_v25  ;;  %v4666_v6 = vpop.f32.mrf.mxu1  ;;  %4786 = vmatpush.bf16.msrb.mxu1 %v5570_v57 }
 0xdb2   : > { %v4425_v55 = vadd.f32 %v8148_v19, %v4408_v30  ;;  %v5567_v30 = vld [vmem:[%s8403_s24 + $0x10] sm:$0xff] }
 0xdb4   : > { %v4441_v53 = vmax.f32 %v4425_v55, 0.0  ;;  %v4540_v29 = vpop.f32.mrf.mxu2  ;;  %4787 = vmatpush.bf16.msrb.mxu1 %v5569_v49 }
 0xdb5   : > { %v4586_v62 = vmul.f32 %v8495_v47, %v4540_v29 }
 0xdb6   : > { %v4465_v16 = vpack.c.bf16 %v4441_v53, %v4440_v3  ;;  %v5566_v3 = vld [vmem:[%s8403_s24 + $0x8] sm:$0xff]  ;;  %v5565_v53 = vld [vmem:[%s8403_s24] sm:$0xff] }
 0xdb7   : > { %v4604_v20 = vadd.f32 %v4603_v60, %v4586_v62 }
 0xdb8   : > { %4557 = vmatmul.bf16.gmra.mxu2 %v4465_v16  ;;  %v4668_v39 = vpop.f32.mrf.mxu1  ;;  %4788 = vmatpush.bf16.msrb.mxu1 %v5568_v35 }
 0xdbc   : > { %v4543_v26 = vpop.f32.mrf.mxu2  ;;  %4789 = vmatpush.bf16.msrb.mxu1 %v5567_v30 }
 0xdbd   : > { %v4587_v5 = vmul.f32 %v5657_v22, %v4543_v26 }
 0xdbf   : > { %v4598_v13 = vadd.f32 %v4597_v43, %v4587_v5 }
 0xdc0   : > { %4790 = vmatpush.bf16.msrb.mxu1 %v5566_v3 }
 0xdc4   : > { %v4545_v36 = vpop.f32.mrf.mxu2  ;;  %4791 = vmatpush.bf16.msrb.mxu1 %v5565_v53 }
 0xdc5   : > { %v4588_v9 = vmul.f32 %v8496_v52, %v4545_v36 }
 0xdc7   : > { %v4605_v54 = vadd.f32 %v4604_v20, %v4588_v9 }
 0xdcc   : > { %v4548_v48 = vpop.f32.mrf.mxu2 }
 0xdcd   : > { %v4589_v19 = vmul.f32 %v5662_v41, %v4548_v48  ;;  %v8498_v41 = vunpack.i.h.bf16 %v7375_v21 }
 0xdcf   : > { %v4599_v2 = vadd.f32 %v4598_v13, %v4589_v19 }
 0xdd4   : > { %v4550_v27 = vpop.f32.mrf.mxu2 }
 0xdd5   : > { %v4590_v59 = vmul.f32 %v8498_v41, %v4550_v27 }
 0xdd7   : > { %v4606_v44 = vadd.f32 %v4605_v54, %v4590_v59 }
 0xddc   : > { %v4553_v8 = vpop.f32.mrf.mxu2 }
 0xddd   : > { %v4591_v46 = vmul.f32 %v5667_v56, %v4553_v8  ;;  %v8499_v56 = vunpack.i.h.bf16 %v7381_v14 }
 0xddf   : > { %v4600_v28 = vadd.f32 %v4599_v2, %v4591_v46  ;;  %v4711_v46 = vperm.slane %v8130_v1, 6 }
 0xde4   : > { %v4555_v0 = vpop.f32.mrf.mxu2 }
 0xde5   : > { %v4592_v17 = vmul.f32 %v8499_v56, %v4555_v0 }
 0xde7   : > { %v4607_v61 = vadd.f32 %v4606_v44, %v4592_v17 }
 0xe3b   : > { %v4558_v11 = vpop.f32.mrf.mxu2 }
 0xe3c   : > { %v4593_v22 = vmul.f32 %v8497_v45, %v4558_v11  ;;  %v4714_v11 = vperm.slane %v8130_v1, 7 }
 0xe3e   : > { %v4601_v38 = vadd.f32 %v4600_v28, %v4593_v22 }
 0xe40   : > { %v4667_v37 = vadd.f32 %v4666_v6, %v4601_v38 }
 0xe42   : > { %4671 = vadd.xlane.f32.xlu1 %v4667_v37 }
 0xe43   : > { %v4560_v31 = vpop.f32.mrf.mxu2 }
 0xe44   : > { %v4594_v15 = vmul.f32 %v8500_v7, %v4560_v31 }
 0xe46   : > { %v4608_v32 = vadd.f32 %v4607_v61, %v4594_v15 }
 0xe48   : > { %v4669_v34 = vadd.f32 %v4668_v39, %v4608_v32 }
 0xe4a   : > { %4673 = vadd.xlane.f32.xlu0 %v4669_v34 }
 0xeb5   : > { %v4672_v60 = vpop.xlane.xlu1 %4671 }
 0xeb6   : > { %v4675_v21 = vmul.f32 %v4672_v60, %v6357_v10 }
 0xeb8   : > { %v4677_v63 = vsub.f32 %v4667_v37, %v4675_v21 }
 0xeba   : > { %v4679_v42 = vmul.f32 %v4677_v63, %v4677_v63 }
 0xebc   : > { %4681 = vadd.xlane.f32.xlu2 %v4679_v42 }
 0xebd   : > { %v4674_v14 = vpop.xlane.xlu0 %4673 }
 0xebe   : > { %v4676_v51 = vmul.f32 %v4674_v14, %v6357_v10 }
 0xec0   : > { %v4678_v24 = vsub.f32 %v4669_v34, %v4676_v51 }
 0xec2   : > { %v4680_v4 = vmul.f32 %v4678_v24, %v4678_v24 }
 0xec4   : > { %4683 = vadd.xlane.f32.xlu1 %v4680_v4 }
 0xf2f   : > { %v4682_v23 = vpop.xlane.xlu2 %4681 }
 0xf30   : > { %v4685_v58 = vmul.f32 %v4682_v23, %v6357_v10 }
 0xf32   : > { %v4687_v55 = vadd.f32 1e-05, %v4685_v58 }
 0xf34   : > { %5864 = vrsqrt.f32 %v4687_v55  ;;  %vm4695_vm0 = vweird.f32 %v4687_v55 }
 0xf37   : > { %v4684_v16 = vpop.xlane.xlu1 %4683 }
 0xf38   : > { %v4686_v33 = vmul.f32 %v4684_v16, %v6357_v10 }
 0xf3a   : > { %v5865_v29 = vpop.eup %5864  ;;  %v4688_v26 = vadd.f32 1e-05, %v4686_v33  ;;  %v8501_v33 = vmax.f32 %v7556_v12, 0.0 }
 0xf3b   : > { %v4690_v36 = vmul.f32 %v5865_v29, %v4687_v55  ;;  %vm4696_vm15 = vweird.f32 %v5865_v29 }
 0xf3c   : > { %5866 = vrsqrt.f32 %v4688_v26  ;;  %vm4697_vm1 = vmor %vm4695_vm0, %vm4696_vm15  ;;  %vm4705_vm3 = vweird.f32 %v4688_v26 }
 0xf3d   : > { %v4691_v48 = vmul.f32 %v5865_v29, %v4690_v36 }
 0xf3f   : > { %v4692_v27 = vmul.f32 0.5, %v4691_v48 }
 0xf41   : > { %v4693_v8 = vsub.f32 1.5, %v4692_v27 }
 0xf42   : > { %v5867_v25 = vpop.eup %5866 }
 0xf43   : > { %v4694_v0 = vmul.f32 %v5865_v29, %v4693_v8  ;;  %v4700_v5 = vmul.f32 %v5867_v25, %v4688_v26  ;;  %vm4706_vm2 = vweird.f32 %v5867_v25 }
 0xf44   : > { %vm4707_vm4 = vmor %vm4705_vm3, %vm4706_vm2 }
 0xf45   : > { %v4698_v43 = vsel %vm4697_vm1, %v5865_v29, %v4694_v0  ;;  %v4701_v19 = vmul.f32 %v5867_v25, %v4700_v5 }
 0xf46   : > { %v4709_v47 = vmul.f32 %v4698_v43, %v4677_v63 }
 0xf47   : > { %v4702_v13 = vmul.f32 0.5, %v4701_v19 }
 0xf48   : > { %v4712_v52 = vmul.f32 %v4711_v46, %v4709_v47 }
 0xf49   : > { %v4703_v62 = vsub.f32 1.5, %v4702_v13 }
 0xf4a   : > { %v4715_v45 = vadd.f32 %v4714_v11, %v4712_v52 }
 0xf4b   : > { %v4704_v2 = vmul.f32 %v5867_v25, %v4703_v62 }
 0xf4c   : > { %v4717_v20 = vmax.f32 %v4715_v45, 0.0 }
 0xf4d   : > { %v4708_v9 = vsel %vm4707_vm4, %v5867_v25, %v4704_v2  ;;  %v8504_v25 = vmax.f32 %v7560_v40, 0.0 }
 0xf4e   : > { %v4710_v28 = vmul.f32 %v4708_v9, %v4678_v24  ;;  %v812_v24 = vld [vmem:[%s8467_s9 + $0x10] sm:$0x3] }
 0xf4f   : > { %v4838_v49 = vperm.slane %v812_v24, 0  ;;  %v4841_v23 = vperm.slane %v812_v24, 1 }
 0xf50   : > { %v4713_v22 = vmul.f32 %v4711_v46, %v4710_v28 }
 0xf52   : > { %v4716_v6 = vadd.f32 %v4714_v11, %v4713_v22 }
 0xf54   : > { %v4718_v41 = vmax.f32 %v4716_v6, 0.0 }
 0xf56   : > { %v4735_v59 = vpack.c.bf16 %v4718_v41, %v4717_v20 }
 0xf58   : > { %4792 = vmatmul.bf16.vlgmr.msrb.gmra.mxu1 %v4735_v59 }
 0xfd5   : > { %v4793_v38 = vpop.f32.mrf.mxu1 }
 0xfd6   : > { %4798 = vadd.xlane.f32.xlu0 %v4793_v38 }
 0xfdd   : > { %v4795_v54 = vpop.f32.mrf.mxu1 }
 0xfde   : > { %4800 = vadd.xlane.f32.xlu2 %v4795_v54 }
0x1049   : > { %v4799_v56 = vpop.xlane.xlu0 %4798 }
0x104a   : > { %v4802_v17 = vmul.f32 %v4799_v56, %v6357_v10 }
0x104c   : > { %v4804_v37 = vsub.f32 %v4793_v38, %v4802_v17 }
0x104e   : > { %v4806_v1 = vmul.f32 %v4804_v37, %v4804_v37 }
0x1050   : > { %4808 = vadd.xlane.f32.xlu1 %v4806_v1 }
0x1051   : > { %v4801_v44 = vpop.xlane.xlu2 %4800 }
0x1052   : > { %v4803_v31 = vmul.f32 %v4801_v44, %v6357_v10 }
0x1054   : > { %v4805_v61 = vsub.f32 %v4795_v54, %v4803_v31 }
0x1056   : > { %v4807_v7 = vmul.f32 %v4805_v61, %v4805_v61 }
0x1058   : > { %4810 = vadd.xlane.f32.xlu0 %v4807_v7 }
0x10c3   : > { %v4809_v15 = vpop.xlane.xlu1 %4808 }
0x10c4   : > { %v4812_v32 = vmul.f32 %v4809_v15, %v6357_v10 }
0x10c6   : > { %v4814_v39 = vadd.f32 1e-05, %v4812_v32 }
0x10c8   : > { %5868 = vrsqrt.f32 %v4814_v39  ;;  %vm4822_vm6 = vweird.f32 %v4814_v39 }
0x10cb   : > { %v4811_v34 = vpop.xlane.xlu0 %4810 }
0x10cc   : > { %v4813_v60 = vmul.f32 %v4811_v34, %v6357_v10 }
0x10ce   : > { %v5869_v21 = vpop.eup %5868  ;;  %v4815_v63 = vadd.f32 1e-05, %v4813_v60 }
0x10cf   : > { %v4817_v42 = vmul.f32 %v5869_v21, %v4814_v39  ;;  %vm4823_vm5 = vweird.f32 %v5869_v21 }
0x10d0   : > { %5870 = vrsqrt.f32 %v4815_v63  ;;  %vm4824_vm7 = vmor %vm4822_vm6, %vm4823_vm5  ;;  %vm4832_vm9 = vweird.f32 %v4815_v63 }
0x10d1   : > { %v4818_v14 = vmul.f32 %v5869_v21, %v4817_v42 }
0x10d3   : > { %v4819_v51 = vmul.f32 0.5, %v4818_v14 }
0x10d5   : > { %v4820_v4 = vsub.f32 1.5, %v4819_v51 }
0x10d6   : > { %v5871_v18 = vpop.eup %5870 }
0x10d7   : > { %v4821_v50 = vmul.f32 %v5869_v21, %v4820_v4  ;;  %v4827_v57 = vmul.f32 %v5871_v18, %v4815_v63  ;;  %vm4833_vm8 = vweird.f32 %v5871_v18 }
0x10d8   : > { %vm4834_vm10 = vmor %vm4832_vm9, %vm4833_vm8 }
0x10d9   : > { %v4825_v10 = vsel %vm4824_vm7, %v5869_v21, %v4821_v50  ;;  %v4828_v35 = vmul.f32 %v5871_v18, %v4827_v57 }
0x10da   : > { %v4836_v30 = vmul.f32 %v4825_v10, %v4804_v37 }
0x10db   : > { %v4829_v58 = vmul.f32 0.5, %v4828_v35 }
0x10dc   : > { %v4839_v55 = vmul.f32 %v4838_v49, %v4836_v30 }
0x10dd   : > { %v4830_v3 = vsub.f32 1.5, %v4829_v58 }
0x10de   : > { %v4842_v53 = vadd.f32 %v4841_v23, %v4839_v55 }
0x10df   : > { %v4831_v16 = vmul.f32 %v5871_v18, %v4830_v3 }
0x10e0   : > { %v4844_v29 = vadd.f32 %v4842_v53, %v8501_v33 }
0x10e1   : > { %v4835_v26 = vsel %vm4834_vm10, %v5871_v18, %v4831_v16 }
0x10e2   : > { %v4837_v36 = vmul.f32 %v4835_v26, %v4805_v61  ;;  %v4846_v48 = vmax.f32 %v4844_v29, 0.0 }
0x10e4   : > { %v4840_v27 = vmul.f32 %v4838_v49, %v4837_v36  ;;  %4848 = vst [vmem:[%s790_s0] sm:$0xff] %v4846_v48 }
0x10e6   : > { %v4843_v8 = vadd.f32 %v4841_v23, %v4840_v27 }
0x10e8   : > { %v4845_v0 = vadd.f32 %v4843_v8, %v8504_v25 }
0x10ea   : > { %v4847_v12 = vmax.f32 %v4845_v0, 0.0 }
0x10ec   : > { %4849 = vst [vmem:[%s790_s0 + $0x8] sm:$0xff] %v4847_v12 }
0x10ed   : > { %5904 = shalt.err (!%p5901_p3)
}
0x10ee   : > { %s5949_s29 = smov 128   ;;  %s5950_s0 = smov 8  }
0x10ef   : > { %5574 = dma.vmem_to_hbm [thread:$0]  (%p6119_p5), %s4864_s28, 256, %s4866_s1, %s4851_s7, %s5949_s29, %s5949_s29, %s5950_s0  }
0x10f0 PF: > { %s8505_s5 = sld [smem:[#allocation7_spill]] }
0x10f1   : > { %s8506_s9 = sld [smem:[#allocation5_spill]] }
0x10f6   : > { %p5580_p4 = scmp.ge.s32.totalorder %s8505_s5, 2 }
0x10f7   : > { %s4880_s25 = sand.u32 1, %s8506_s9  }
0x10f8   : > { %p5577_p7 = pnand %p5580_p4, %p6123_p6  ;;  %s4881_s10 = scalar_lea.sflag [#allocation3], %s4880_s25 }
0x10fa   : > { %p5578_p8 = pneg %p5577_p7 }
0x10fc   : > { %5922 = dma.done.wait (%p5578_p8), %s4881_s10, 256  }
0x10fd   : > { %5924 = vsyncadd (%p5578_p8), %s4881_s10, 4294967040  ;;  %s8508_s30 = sld [smem:[#allocation8_spill]]  ;;  %s8511_s29 = smov %s5931_s2 }
0x10fe   : > { %s8509_s3 = sld [smem:[#allocation6_spill]] }
0x10ff   : > { %s8510_s6 = sld [smem:[#allocation9_spill]] }
0x1103   : > { %p35_p9 = scmp.ge.s32.totalorder %s8508_s30, 4  }
0x1104   : > { %s8512_s2 = smov %s8509_s3 }
0x1105   :  { %37 = sbr.rel (!%p35_p9) target bundleno = 17 (0x11), region = 161 }
0x110a   :  { %4887 = vsyncpa [#allocation3], 1 }
0x110b   :  { %4889 = vsyncpa [#allocation3 + $0x1], 1 }

</bundles_post_ra>
